<compile_context>
chip_gen: v7x
topology: tpu7x:2x2x1
jax: 0.10.0
libtpu: 0.0.40
codegen_flags: <defaults>
</compile_context>

<pallas_src>
import functools

import jax
import jax.numpy as jnp
from jax.experimental import pallas as pl
from jax.experimental.pallas import tpu as pltpu

EPS = 1e-5  # nn.InstanceNorm2d default eps (affine=False, track_running_stats=False)
K = 3       # kernel_size=3, stride=1, padding=1


def _fused_up_kernel(x_ref, w1_ref, w2_ref, o_ref, hpad_ref, *, H, W):
    """ReLU -> conv1(3x3) -> InstanceNorm -> conv2(3x3) -> InstanceNorm, one batch element.

    x_ref:    (1, H+2, W+2, Cin)  zero-padded NHWC input tile (pre-activation)
    w1_ref:   (9, Cin, C1)        conv1 weights, tap-major (t = dy*3 + dx)
    w2_ref:   (9, C1,  C1)        conv2 weights, tap-major
    o_ref:    (1, C1, H*W)        NCHW-flat, lane-dense output
    hpad_ref: (H+2, W+2, C1)      VMEM scratch holding the zero-padded intermediate
    """
    Cin = x_ref.shape[-1]
    C1 = w1_ref.shape[-1]

    # Activation precedes the conv in the Sequential; ReLU(0)=0 so padding is unaffected.
    x = jnp.maximum(x_ref[0], 0.0)  # (H+2, W+2, Cin), f32

    # ---- conv1: 9 shifted matmuls accumulated on the MXU (no im2col tensor) ----
    acc = jnp.zeros((H * W, C1), jnp.float32)
    for t in range(K * K):
        dy, dx = t // K, t % K
        xs = x[dy:dy + H, dx:dx + W, :].reshape(H * W, Cin)
        acc = acc + jnp.dot(xs, w1_ref[t], preferred_element_type=jnp.float32)

    # InstanceNorm2d #1: per-channel stats over spatial positions (biased variance), f32.
    mean1 = jnp.mean(acc, axis=0, keepdims=True)
    var1 = jnp.mean((acc - mean1) ** 2, axis=0, keepdims=True)
    h = (acc - mean1) * jax.lax.rsqrt(var1 + EPS)

    # Stage the intermediate (zero-padded) in VMEM scratch — it never touches HBM.
    hpad_ref[...] = jnp.zeros_like(hpad_ref)
    hpad_ref[1:1 + H, 1:1 + W, :] = h.reshape(H, W, C1)

    # ---- conv2: same 9-tap accumulation on the VMEM-resident intermediate ----
    acc2 = jnp.zeros((H * W, C1), jnp.float32)
    for t in range(K * K):
        dy, dx = t // K, t % K
        hs = hpad_ref[dy:dy + H, dx:dx + W, :].reshape(H * W, C1)
        acc2 = acc2 + jnp.dot(hs, w2_ref[t], preferred_element_type=jnp.float32)

    # InstanceNorm2d #2 (f32 epilogue).
    mean2 = jnp.mean(acc2, axis=0, keepdims=True)
    var2 = jnp.mean((acc2 - mean2) ** 2, axis=0, keepdims=True)
    y = (acc2 - mean2) * jax.lax.rsqrt(var2 + EPS)  # (H*W, C1)

    # Single transpose -> lane-dense (C1, H*W) store, already NCHW-flat.
    o_ref[0] = jnp.transpose(y, (1, 0)).astype(o_ref.dtype)


def upsample_forward(params, x_skip_nchw, upsample_nchw):
    """Upsample.forward(x_skip, upsample=upsample) for mode='up', bilinear=True."""
    N, _, H, W = x_skip_nchw.shape

    # --- tiny XLA glue: NCHW->NHWC, nearest x2 upsample, channel concat, zero pad ---
    x_skip = jnp.transpose(x_skip_nchw, (0, 2, 3, 1))
    up_in = jnp.transpose(upsample_nchw, (0, 2, 3, 1))
    up = jnp.repeat(jnp.repeat(up_in, 2, axis=1), 2, axis=2)   # nn.Upsample(scale=2, nearest)
    x = jnp.concatenate([x_skip, up], axis=-1)                 # (N, H, W, Cin)
    xp = jnp.pad(x, ((0, 0), (1, 1), (1, 1), (0, 0)))          # zero pad for 3x3, pad=1

    Cin = x.shape[-1]
    C1 = params["w1"].shape[-1]
    Hp, Wp = H + 2, W + 2

    # HWIO -> tap-major (t = ky*3 + kx), matching the kernel's tap loop order.
    w1 = params["w1"].reshape(K * K, Cin, C1)
    w2 = params["w2"].reshape(K * K, C1, C1)
    # NOTE: biases are intentionally NOT passed — affine-free InstanceNorm cancels them.

    out = pl.pallas_call(
        functools.partial(_fused_up_kernel, H=H, W=W),
        out_shape=jax.ShapeDtypeStruct((N, C1, H * W), jnp.float32),
        grid_spec=pltpu.PrefetchScalarGridSpec(
            num_scalar_prefetch=0,
            grid=(N,),
            in_specs=[
                pl.BlockSpec((1, Hp, Wp, Cin), lambda n: (n, 0, 0, 0)),
                pl.BlockSpec((K * K, Cin, C1), lambda n: (0, 0, 0)),
                pl.BlockSpec((K * K, C1, C1), lambda n: (0, 0, 0)),
            ],
            out_specs=pl.BlockSpec((1, C1, H * W), lambda n: (n, 0, 0)),
            scratch_shapes=[pltpu.VMEM((Hp, Wp, C1), jnp.float32)],
        ),
        compiler_params=pltpu.CompilerParams(dimension_semantics=("parallel",)),
    )(xp, w1, w2)

    # Output is already NCHW-flat: just split the spatial axis back out.
    return out.reshape(N, C1, H, W)


# ------------------------- pure-JAX reference (for verification) -------------------------
def _ref_layer(x, w, b, apply_relu):
    if apply_relu:
        x = jax.nn.relu(x)
    y = jax.lax.conv_general_dilated(
        x, w, window_strides=(1, 1), padding="SAME",
        dimension_numbers=("NHWC", "HWIO", "NHWC"),
    ) + b.reshape(1, 1, 1, -1)
    mean = jnp.mean(y, axis=(1, 2), keepdims=True)
    var = jnp.mean((y - mean) ** 2, axis=(1, 2), keepdims=True)
    return (y - mean) * jax.lax.rsqrt(var + EPS)


def upsample_forward_ref(params, x_skip_nchw, upsample_nchw):
    x_skip = jnp.transpose(x_skip_nchw, (0, 2, 3, 1))
    up_in = jnp.transpose(upsample_nchw, (0, 2, 3, 1))
    up = jnp.repeat(jnp.repeat(up_in, 2, axis=1), 2, axis=2)
    x = jnp.concatenate([x_skip, up], axis=-1)
    h = _ref_layer(x, params["w1"], params["b1"], True)
    out = _ref_layer(h, params["w2"], params["b2"], False)
    return jnp.transpose(out, (0, 3, 1, 2))


if __name__ == "__main__":
    key = jax.random.PRNGKey(0)
    k1, k2, k3, k4, k5, k6 = jax.random.split(key, 6)

    # Small shapes consistent with the module: batch=2, skip ch=4, upsample ch=4,
    # spatial 16x16 (upsample input 8x8 -> nearest x2 -> 16x16), concat ch = in_channels = 8.
    N, C_skip, C_up, H, W = 2, 4, 4, 16, 16
    C_in = C_skip + C_up   # Sample in_channels
    C_out = 8              # Sample out_channels (mode='up' => final_channels == out_channels)

    x_skip = jax.random.normal(k1, (N, C_skip, H, W), jnp.float32)            # NCHW
    upsample = jax.random.normal(k2, (N, C_up, H // 2, W // 2), jnp.float32)  # NCHW

    # Deterministic synthetic parameters (HWIO conv weights + biases).
    # The biases are used only by the reference; the Pallas kernel drops them because
    # InstanceNorm2d(affine=False) cancels per-channel biases exactly.
    params = {
        "w1": 0.1 * jax.random.normal(k3, (K, K, C_in, C_out), jnp.float32),
        "b1": 0.1 * jax.random.normal(k4, (C_out,), jnp.float32),
        "w2": 0.1 * jax.random.normal(k5, (K, K, C_out, C_out), jnp.float32),
        "b2": 0.1 * jax.random.normal(k6, (C_out,), jnp.float32),
    }

    out = jax.jit(upsample_forward)(params, x_skip, upsample)
    out = jax.block_until_ready(out)

    ref = upsample_forward_ref(params, x_skip, upsample)
    assert out.shape == (N, C_out, H, W), out.shape
    assert jnp.allclose(out, ref, atol=1e-4, rtol=1e-4), float(jnp.max(jnp.abs(out - ref)))
    print("KERNEL_OK")
</pallas_src>

<mosaic_0001>
module attributes {stable_mosaic.version = 11 : i64} {
  func.func @_fused_up_kernel(%arg0: i32, %arg1: memref<1x18x18x8xf32, #tpu.memory_space<vmem>>, %arg2: memref<9x8x8xf32, #tpu.memory_space<vmem>>, %arg3: memref<9x8x8xf32, #tpu.memory_space<vmem>>, %arg4: memref<1x8x256xf32, #tpu.memory_space<vmem>>, %arg5: memref<18x18x8xf32, #tpu.memory_space<vmem>>) attributes {dimension_semantics = [#tpu.dimension_semantics<parallel>], iteration_bounds = array<i64: 2>, scalar_prefetch = 0 : i64, scratch_operands = 1 : i64, tpu.core_type = #tpu.core_type<tc>, window_params = [{transform_indices = @transform_0, window_bounds = array<i64: 1, 18, 18, 8>}, {pipeline_mode = #tpu.pipeline_mode<synchronous>, transform_indices = @transform_1, window_bounds = array<i64: 9, 8, 8>}, {pipeline_mode = #tpu.pipeline_mode<synchronous>, transform_indices = @transform_2, window_bounds = array<i64: 9, 8, 8>}, {transform_indices = @transform_3, window_bounds = array<i64: 1, 8, 256>}]} {
    %c0 = arith.constant 0 : index
    %c0_0 = arith.constant 0 : index
    %c0_1 = arith.constant 0 : index
    %c0_2 = arith.constant 0 : index
    %0 = vector.load %arg1[%c0, %c0_0, %c0_1, %c0_2] : memref<1x18x18x8xf32, #tpu.memory_space<vmem>>, vector<1x18x18x8xf32>
    %1 = vector.shape_cast %0 : vector<1x18x18x8xf32> to vector<18x18x8xf32>
    %cst = arith.constant 0.000000e+00 : f32
    %2 = vector.broadcast %cst : f32 to vector<18x18x8xf32>
    %3 = arith.maximumf %1, %2 : vector<18x18x8xf32>
    %cst_3 = arith.constant 0.000000e+00 : f32
    %4 = vector.broadcast %cst_3 : f32 to vector<256x8xf32>
    %5 = vector.extract_strided_slice %3 {offsets = [0, 0, 0], sizes = [16, 16, 8], strides = [1, 1, 1]} : vector<18x18x8xf32> to vector<16x16x8xf32>
    %6 = vector.shape_cast %5 : vector<16x16x8xf32> to vector<256x8xf32>
    %c0_4 = arith.constant 0 : index
    %c0_5 = arith.constant 0 : index
    %c0_6 = arith.constant 0 : index
    %7 = vector.load %arg2[%c0_4, %c0_5, %c0_6] : memref<9x8x8xf32, #tpu.memory_space<vmem>>, vector<1x8x8xf32>
    %8 = vector.shape_cast %7 : vector<1x8x8xf32> to vector<8x8xf32>
    %cst_7 = arith.constant dense<0.000000e+00> : vector<256x8xf32>
    %9 = tpu.matmul %6, %8, %cst_7 {dimension_numbers = #tpu.dot_dimension_numbers<[1], [0], [0], [1], [0, 0, 1, 1], [], []>} : vector<256x8xf32>, vector<8x8xf32>, vector<256x8xf32> -> vector<256x8xf32>
    %10 = arith.addf %4, %9 : vector<256x8xf32>
    %11 = vector.extract_strided_slice %3 {offsets = [0, 1, 0], sizes = [16, 16, 8], strides = [1, 1, 1]} : vector<18x18x8xf32> to vector<16x16x8xf32>
    %12 = vector.shape_cast %11 : vector<16x16x8xf32> to vector<256x8xf32>
    %c1 = arith.constant 1 : index
    %c0_8 = arith.constant 0 : index
    %c0_9 = arith.constant 0 : index
    %13 = vector.load %arg2[%c1, %c0_8, %c0_9] : memref<9x8x8xf32, #tpu.memory_space<vmem>>, vector<1x8x8xf32>
    %14 = vector.shape_cast %13 : vector<1x8x8xf32> to vector<8x8xf32>
    %cst_10 = arith.constant dense<0.000000e+00> : vector<256x8xf32>
    %15 = tpu.matmul %12, %14, %cst_10 {dimension_numbers = #tpu.dot_dimension_numbers<[1], [0], [0], [1], [0, 0, 1, 1], [], []>} : vector<256x8xf32>, vector<8x8xf32>, vector<256x8xf32> -> vector<256x8xf32>
    %16 = arith.addf %10, %15 : vector<256x8xf32>
    %17 = vector.extract_strided_slice %3 {offsets = [0, 2, 0], sizes = [16, 16, 8], strides = [1, 1, 1]} : vector<18x18x8xf32> to vector<16x16x8xf32>
    %18 = vector.shape_cast %17 : vector<16x16x8xf32> to vector<256x8xf32>
    %c2 = arith.constant 2 : index
    %c0_11 = arith.constant 0 : index
    %c0_12 = arith.constant 0 : index
    %19 = vector.load %arg2[%c2, %c0_11, %c0_12] : memref<9x8x8xf32, #tpu.memory_space<vmem>>, vector<1x8x8xf32>
    %20 = vector.shape_cast %19 : vector<1x8x8xf32> to vector<8x8xf32>
    %cst_13 = arith.constant dense<0.000000e+00> : vector<256x8xf32>
    %21 = tpu.matmul %18, %20, %cst_13 {dimension_numbers = #tpu.dot_dimension_numbers<[1], [0], [0], [1], [0, 0, 1, 1], [], []>} : vector<256x8xf32>, vector<8x8xf32>, vector<256x8xf32> -> vector<256x8xf32>
    %22 = arith.addf %16, %21 : vector<256x8xf32>
    %23 = vector.extract_strided_slice %3 {offsets = [1, 0, 0], sizes = [16, 16, 8], strides = [1, 1, 1]} : vector<18x18x8xf32> to vector<16x16x8xf32>
    %24 = vector.shape_cast %23 : vector<16x16x8xf32> to vector<256x8xf32>
    %c3 = arith.constant 3 : index
    %c0_14 = arith.constant 0 : index
    %c0_15 = arith.constant 0 : index
    %25 = vector.load %arg2[%c3, %c0_14, %c0_15] : memref<9x8x8xf32, #tpu.memory_space<vmem>>, vector<1x8x8xf32>
    %26 = vector.shape_cast %25 : vector<1x8x8xf32> to vector<8x8xf32>
    %cst_16 = arith.constant dense<0.000000e+00> : vector<256x8xf32>
    %27 = tpu.matmul %24, %26, %cst_16 {dimension_numbers = #tpu.dot_dimension_numbers<[1], [0], [0], [1], [0, 0, 1, 1], [], []>} : vector<256x8xf32>, vector<8x8xf32>, vector<256x8xf32> -> vector<256x8xf32>
    %28 = arith.addf %22, %27 : vector<256x8xf32>
    %29 = vector.extract_strided_slice %3 {offsets = [1, 1, 0], sizes = [16, 16, 8], strides = [1, 1, 1]} : vector<18x18x8xf32> to vector<16x16x8xf32>
    %30 = vector.shape_cast %29 : vector<16x16x8xf32> to vector<256x8xf32>
    %c4 = arith.constant 4 : index
    %c0_17 = arith.constant 0 : index
    %c0_18 = arith.constant 0 : index
    %31 = vector.load %arg2[%c4, %c0_17, %c0_18] : memref<9x8x8xf32, #tpu.memory_space<vmem>>, vector<1x8x8xf32>
    %32 = vector.shape_cast %31 : vector<1x8x8xf32> to vector<8x8xf32>
    %cst_19 = arith.constant dense<0.000000e+00> : vector<256x8xf32>
    %33 = tpu.matmul %30, %32, %cst_19 {dimension_numbers = #tpu.dot_dimension_numbers<[1], [0], [0], [1], [0, 0, 1, 1], [], []>} : vector<256x8xf32>, vector<8x8xf32>, vector<256x8xf32> -> vector<256x8xf32>
    %34 = arith.addf %28, %33 : vector<256x8xf32>
    %35 = vector.extract_strided_slice %3 {offsets = [1, 2, 0], sizes = [16, 16, 8], strides = [1, 1, 1]} : vector<18x18x8xf32> to vector<16x16x8xf32>
    %36 = vector.shape_cast %35 : vector<16x16x8xf32> to vector<256x8xf32>
    %c5 = arith.constant 5 : index
    %c0_20 = arith.constant 0 : index
    %c0_21 = arith.constant 0 : index
    %37 = vector.load %arg2[%c5, %c0_20, %c0_21] : memref<9x8x8xf32, #tpu.memory_space<vmem>>, vector<1x8x8xf32>
    %38 = vector.shape_cast %37 : vector<1x8x8xf32> to vector<8x8xf32>
    %cst_22 = arith.constant dense<0.000000e+00> : vector<256x8xf32>
    %39 = tpu.matmul %36, %38, %cst_22 {dimension_numbers = #tpu.dot_dimension_numbers<[1], [0], [0], [1], [0, 0, 1, 1], [], []>} : vector<256x8xf32>, vector<8x8xf32>, vector<256x8xf32> -> vector<256x8xf32>
    %40 = arith.addf %34, %39 : vector<256x8xf32>
    %41 = vector.extract_strided_slice %3 {offsets = [2, 0, 0], sizes = [16, 16, 8], strides = [1, 1, 1]} : vector<18x18x8xf32> to vector<16x16x8xf32>
    %42 = vector.shape_cast %41 : vector<16x16x8xf32> to vector<256x8xf32>
    %c6 = arith.constant 6 : index
    %c0_23 = arith.constant 0 : index
    %c0_24 = arith.constant 0 : index
    %43 = vector.load %arg2[%c6, %c0_23, %c0_24] : memref<9x8x8xf32, #tpu.memory_space<vmem>>, vector<1x8x8xf32>
    %44 = vector.shape_cast %43 : vector<1x8x8xf32> to vector<8x8xf32>
    %cst_25 = arith.constant dense<0.000000e+00> : vector<256x8xf32>
    %45 = tpu.matmul %42, %44, %cst_25 {dimension_numbers = #tpu.dot_dimension_numbers<[1], [0], [0], [1], [0, 0, 1, 1], [], []>} : vector<256x8xf32>, vector<8x8xf32>, vector<256x8xf32> -> vector<256x8xf32>
    %46 = arith.addf %40, %45 : vector<256x8xf32>
    %47 = vector.extract_strided_slice %3 {offsets = [2, 1, 0], sizes = [16, 16, 8], strides = [1, 1, 1]} : vector<18x18x8xf32> to vector<16x16x8xf32>
    %48 = vector.shape_cast %47 : vector<16x16x8xf32> to vector<256x8xf32>
    %c7 = arith.constant 7 : index
    %c0_26 = arith.constant 0 : index
    %c0_27 = arith.constant 0 : index
    %49 = vector.load %arg2[%c7, %c0_26, %c0_27] : memref<9x8x8xf32, #tpu.memory_space<vmem>>, vector<1x8x8xf32>
    %50 = vector.shape_cast %49 : vector<1x8x8xf32> to vector<8x8xf32>
    %cst_28 = arith.constant dense<0.000000e+00> : vector<256x8xf32>
    %51 = tpu.matmul %48, %50, %cst_28 {dimension_numbers = #tpu.dot_dimension_numbers<[1], [0], [0], [1], [0, 0, 1, 1], [], []>} : vector<256x8xf32>, vector<8x8xf32>, vector<256x8xf32> -> vector<256x8xf32>
    %52 = arith.addf %46, %51 : vector<256x8xf32>
    %53 = vector.extract_strided_slice %3 {offsets = [2, 2, 0], sizes = [16, 16, 8], strides = [1, 1, 1]} : vector<18x18x8xf32> to vector<16x16x8xf32>
    %54 = vector.shape_cast %53 : vector<16x16x8xf32> to vector<256x8xf32>
    %c8 = arith.constant 8 : index
    %c0_29 = arith.constant 0 : index
    %c0_30 = arith.constant 0 : index
    %55 = vector.load %arg2[%c8, %c0_29, %c0_30] : memref<9x8x8xf32, #tpu.memory_space<vmem>>, vector<1x8x8xf32>
    %56 = vector.shape_cast %55 : vector<1x8x8xf32> to vector<8x8xf32>
    %cst_31 = arith.constant dense<0.000000e+00> : vector<256x8xf32>
    %57 = tpu.matmul %54, %56, %cst_31 {dimension_numbers = #tpu.dot_dimension_numbers<[1], [0], [0], [1], [0, 0, 1, 1], [], []>} : vector<256x8xf32>, vector<8x8xf32>, vector<256x8xf32> -> vector<256x8xf32>
    %58 = arith.addf %52, %57 : vector<256x8xf32>
    %cst_32 = arith.constant dense<0.000000e+00> : vector<8xf32>
    %59 = vector.multi_reduction <add>, %58, %cst_32 [0] : vector<256x8xf32> to vector<8xf32>
    %60 = vector.shape_cast %59 : vector<8xf32> to vector<1x8xf32>
    %cst_33 = arith.constant 2.560000e+02 : f32
    %61 = vector.broadcast %cst_33 : f32 to vector<1x8xf32>
    %62 = arith.divf %60, %61 : vector<1x8xf32>
    %63 = vector.broadcast %62 : vector<1x8xf32> to vector<256x8xf32>
    %64 = arith.subf %58, %63 : vector<256x8xf32>
    %65 = arith.mulf %64, %64 : vector<256x8xf32>
    %cst_34 = arith.constant dense<0.000000e+00> : vector<8xf32>
    %66 = vector.multi_reduction <add>, %65, %cst_34 [0] : vector<256x8xf32> to vector<8xf32>
    %67 = vector.shape_cast %66 : vector<8xf32> to vector<1x8xf32>
    %cst_35 = arith.constant 2.560000e+02 : f32
    %68 = vector.broadcast %cst_35 : f32 to vector<1x8xf32>
    %69 = arith.divf %67, %68 : vector<1x8xf32>
    %70 = vector.broadcast %62 : vector<1x8xf32> to vector<256x8xf32>
    %71 = arith.subf %58, %70 : vector<256x8xf32>
    %cst_36 = arith.constant 9.99999974E-6 : f32
    %72 = vector.broadcast %cst_36 : f32 to vector<1x8xf32>
    %73 = arith.addf %69, %72 : vector<1x8xf32>
    %74 = math.rsqrt %73 : vector<1x8xf32>
    %75 = vector.broadcast %74 : vector<1x8xf32> to vector<256x8xf32>
    %76 = arith.mulf %71, %75 : vector<256x8xf32>
    %cst_37 = arith.constant 0.000000e+00 : f32
    %77 = vector.broadcast %cst_37 : f32 to vector<18x18x8xf32>
    %c0_38 = arith.constant 0 : index
    %c0_39 = arith.constant 0 : index
    %c0_40 = arith.constant 0 : index
    %78 = vector.load %arg5[%c0_38, %c0_39, %c0_40] : memref<18x18x8xf32, #tpu.memory_space<vmem>>, vector<18x18x8xf32>
    tpu.vector_store %arg5[%c0_38, %c0_39, %c0_40], %77 {strides = array<i32>} : memref<18x18x8xf32, #tpu.memory_space<vmem>>, vector<18x18x8xf32>,
    %79 = vector.shape_cast %76 : vector<256x8xf32> to vector<16x16x8xf32>
    %c1_41 = arith.constant 1 : index
    %c1_42 = arith.constant 1 : index
    %c0_43 = arith.constant 0 : index
    %80 = vector.load %arg5[%c1_41, %c1_42, %c0_43] : memref<18x18x8xf32, #tpu.memory_space<vmem>>, vector<16x16x8xf32>
    tpu.vector_store %arg5[%c1_41, %c1_42, %c0_43], %79 {strides = array<i32>} : memref<18x18x8xf32, #tpu.memory_space<vmem>>, vector<16x16x8xf32>,
    %cst_44 = arith.constant 0.000000e+00 : f32
    %81 = vector.broadcast %cst_44 : f32 to vector<256x8xf32>
    %c0_45 = arith.constant 0 : index
    %c0_46 = arith.constant 0 : index
    %c0_47 = arith.constant 0 : index
    %82 = vector.load %arg5[%c0_45, %c0_46, %c0_47] : memref<18x18x8xf32, #tpu.memory_space<vmem>>, vector<16x16x8xf32>
    %83 = vector.shape_cast %82 : vector<16x16x8xf32> to vector<256x8xf32>
    %c0_48 = arith.constant 0 : index
    %c0_49 = arith.constant 0 : index
    %c0_50 = arith.constant 0 : index
    %84 = vector.load %arg3[%c0_48, %c0_49, %c0_50] : memref<9x8x8xf32, #tpu.memory_space<vmem>>, vector<1x8x8xf32>
    %85 = vector.shape_cast %84 : vector<1x8x8xf32> to vector<8x8xf32>
    %cst_51 = arith.constant dense<0.000000e+00> : vector<256x8xf32>
    %86 = tpu.matmul %83, %85, %cst_51 {dimension_numbers = #tpu.dot_dimension_numbers<[1], [0], [0], [1], [0, 0, 1, 1], [], []>} : vector<256x8xf32>, vector<8x8xf32>, vector<256x8xf32> -> vector<256x8xf32>
    %87 = arith.addf %81, %86 : vector<256x8xf32>
    %c0_52 = arith.constant 0 : index
    %c1_53 = arith.constant 1 : index
    %c0_54 = arith.constant 0 : index
    %88 = vector.load %arg5[%c0_52, %c1_53, %c0_54] : memref<18x18x8xf32, #tpu.memory_space<vmem>>, vector<16x16x8xf32>
    %89 = vector.shape_cast %88 : vector<16x16x8xf32> to vector<256x8xf32>
    %c1_55 = arith.constant 1 : index
    %c0_56 = arith.constant 0 : index
    %c0_57 = arith.constant 0 : index
    %90 = vector.load %arg3[%c1_55, %c0_56, %c0_57] : memref<9x8x8xf32, #tpu.memory_space<vmem>>, vector<1x8x8xf32>
    %91 = vector.shape_cast %90 : vector<1x8x8xf32> to vector<8x8xf32>
    %cst_58 = arith.constant dense<0.000000e+00> : vector<256x8xf32>
    %92 = tpu.matmul %89, %91, %cst_58 {dimension_numbers = #tpu.dot_dimension_numbers<[1], [0], [0], [1], [0, 0, 1, 1], [], []>} : vector<256x8xf32>, vector<8x8xf32>, vector<256x8xf32> -> vector<256x8xf32>
    %93 = arith.addf %87, %92 : vector<256x8xf32>
    %c0_59 = arith.constant 0 : index
    %c2_60 = arith.constant 2 : index
    %c0_61 = arith.constant 0 : index
    %94 = vector.load %arg5[%c0_59, %c2_60, %c0_61] : memref<18x18x8xf32, #tpu.memory_space<vmem>>, vector<16x16x8xf32>
    %95 = vector.shape_cast %94 : vector<16x16x8xf32> to vector<256x8xf32>
    %c2_62 = arith.constant 2 : index
    %c0_63 = arith.constant 0 : index
    %c0_64 = arith.constant 0 : index
    %96 = vector.load %arg3[%c2_62, %c0_63, %c0_64] : memref<9x8x8xf32, #tpu.memory_space<vmem>>, vector<1x8x8xf32>
    %97 = vector.shape_cast %96 : vector<1x8x8xf32> to vector<8x8xf32>
    %cst_65 = arith.constant dense<0.000000e+00> : vector<256x8xf32>
    %98 = tpu.matmul %95, %97, %cst_65 {dimension_numbers = #tpu.dot_dimension_numbers<[1], [0], [0], [1], [0, 0, 1, 1], [], []>} : vector<256x8xf32>, vector<8x8xf32>, vector<256x8xf32> -> vector<256x8xf32>
    %99 = arith.addf %93, %98 : vector<256x8xf32>
    %c1_66 = arith.constant 1 : index
    %c0_67 = arith.constant 0 : index
    %c0_68 = arith.constant 0 : index
    %100 = vector.load %arg5[%c1_66, %c0_67, %c0_68] : memref<18x18x8xf32, #tpu.memory_space<vmem>>, vector<16x16x8xf32>
    %101 = vector.shape_cast %100 : vector<16x16x8xf32> to vector<256x8xf32>
    %c3_69 = arith.constant 3 : index
    %c0_70 = arith.constant 0 : index
    %c0_71 = arith.constant 0 : index
    %102 = vector.load %arg3[%c3_69, %c0_70, %c0_71] : memref<9x8x8xf32, #tpu.memory_space<vmem>>, vector<1x8x8xf32>
    %103 = vector.shape_cast %102 : vector<1x8x8xf32> to vector<8x8xf32>
    %cst_72 = arith.constant dense<0.000000e+00> : vector<256x8xf32>
    %104 = tpu.matmul %101, %103, %cst_72 {dimension_numbers = #tpu.dot_dimension_numbers<[1], [0], [0], [1], [0, 0, 1, 1], [], []>} : vector<256x8xf32>, vector<8x8xf32>, vector<256x8xf32> -> vector<256x8xf32>
    %105 = arith.addf %99, %104 : vector<256x8xf32>
    %c1_73 = arith.constant 1 : index
    %c1_74 = arith.constant 1 : index
    %c0_75 = arith.constant 0 : index
    %106 = vector.load %arg5[%c1_73, %c1_74, %c0_75] : memref<18x18x8xf32, #tpu.memory_space<vmem>>, vector<16x16x8xf32>
    %107 = vector.shape_cast %106 : vector<16x16x8xf32> to vector<256x8xf32>
    %c4_76 = arith.constant 4 : index
    %c0_77 = arith.constant 0 : index
    %c0_78 = arith.constant 0 : index
    %108 = vector.load %arg3[%c4_76, %c0_77, %c0_78] : memref<9x8x8xf32, #tpu.memory_space<vmem>>, vector<1x8x8xf32>
    %109 = vector.shape_cast %108 : vector<1x8x8xf32> to vector<8x8xf32>
    %cst_79 = arith.constant dense<0.000000e+00> : vector<256x8xf32>
    %110 = tpu.matmul %107, %109, %cst_79 {dimension_numbers = #tpu.dot_dimension_numbers<[1], [0], [0], [1], [0, 0, 1, 1], [], []>} : vector<256x8xf32>, vector<8x8xf32>, vector<256x8xf32> -> vector<256x8xf32>
    %111 = arith.addf %105, %110 : vector<256x8xf32>
    %c1_80 = arith.constant 1 : index
    %c2_81 = arith.constant 2 : index
    %c0_82 = arith.constant 0 : index
    %112 = vector.load %arg5[%c1_80, %c2_81, %c0_82] : memref<18x18x8xf32, #tpu.memory_space<vmem>>, vector<16x16x8xf32>
    %113 = vector.shape_cast %112 : vector<16x16x8xf32> to vector<256x8xf32>
    %c5_83 = arith.constant 5 : index
    %c0_84 = arith.constant 0 : index
    %c0_85 = arith.constant 0 : index
    %114 = vector.load %arg3[%c5_83, %c0_84, %c0_85] : memref<9x8x8xf32, #tpu.memory_space<vmem>>, vector<1x8x8xf32>
    %115 = vector.shape_cast %114 : vector<1x8x8xf32> to vector<8x8xf32>
    %cst_86 = arith.constant dense<0.000000e+00> : vector<256x8xf32>
    %116 = tpu.matmul %113, %115, %cst_86 {dimension_numbers = #tpu.dot_dimension_numbers<[1], [0], [0], [1], [0, 0, 1, 1], [], []>} : vector<256x8xf32>, vector<8x8xf32>, vector<256x8xf32> -> vector<256x8xf32>
    %117 = arith.addf %111, %116 : vector<256x8xf32>
    %c2_87 = arith.constant 2 : index
    %c0_88 = arith.constant 0 : index
    %c0_89 = arith.constant 0 : index
    %118 = vector.load %arg5[%c2_87, %c0_88, %c0_89] : memref<18x18x8xf32, #tpu.memory_space<vmem>>, vector<16x16x8xf32>
    %119 = vector.shape_cast %118 : vector<16x16x8xf32> to vector<256x8xf32>
    %c6_90 = arith.constant 6 : index
    %c0_91 = arith.constant 0 : index
    %c0_92 = arith.constant 0 : index
    %120 = vector.load %arg3[%c6_90, %c0_91, %c0_92] : memref<9x8x8xf32, #tpu.memory_space<vmem>>, vector<1x8x8xf32>
    %121 = vector.shape_cast %120 : vector<1x8x8xf32> to vector<8x8xf32>
    %cst_93 = arith.constant dense<0.000000e+00> : vector<256x8xf32>
    %122 = tpu.matmul %119, %121, %cst_93 {dimension_numbers = #tpu.dot_dimension_numbers<[1], [0], [0], [1], [0, 0, 1, 1], [], []>} : vector<256x8xf32>, vector<8x8xf32>, vector<256x8xf32> -> vector<256x8xf32>
    %123 = arith.addf %117, %122 : vector<256x8xf32>
    %c2_94 = arith.constant 2 : index
    %c1_95 = arith.constant 1 : index
    %c0_96 = arith.constant 0 : index
    %124 = vector.load %arg5[%c2_94, %c1_95, %c0_96] : memref<18x18x8xf32, #tpu.memory_space<vmem>>, vector<16x16x8xf32>
    %125 = vector.shape_cast %124 : vector<16x16x8xf32> to vector<256x8xf32>
    %c7_97 = arith.constant 7 : index
    %c0_98 = arith.constant 0 : index
    %c0_99 = arith.constant 0 : index
    %126 = vector.load %arg3[%c7_97, %c0_98, %c0_99] : memref<9x8x8xf32, #tpu.memory_space<vmem>>, vector<1x8x8xf32>
    %127 = vector.shape_cast %126 : vector<1x8x8xf32> to vector<8x8xf32>
    %cst_100 = arith.constant dense<0.000000e+00> : vector<256x8xf32>
    %128 = tpu.matmul %125, %127, %cst_100 {dimension_numbers = #tpu.dot_dimension_numbers<[1], [0], [0], [1], [0, 0, 1, 1], [], []>} : vector<256x8xf32>, vector<8x8xf32>, vector<256x8xf32> -> vector<256x8xf32>
    %129 = arith.addf %123, %128 : vector<256x8xf32>
    %c2_101 = arith.constant 2 : index
    %c2_102 = arith.constant 2 : index
    %c0_103 = arith.constant 0 : index
    %130 = vector.load %arg5[%c2_101, %c2_102, %c0_103] : memref<18x18x8xf32, #tpu.memory_space<vmem>>, vector<16x16x8xf32>
    %131 = vector.shape_cast %130 : vector<16x16x8xf32> to vector<256x8xf32>
    %c8_104 = arith.constant 8 : index
    %c0_105 = arith.constant 0 : index
    %c0_106 = arith.constant 0 : index
    %132 = vector.load %arg3[%c8_104, %c0_105, %c0_106] : memref<9x8x8xf32, #tpu.memory_space<vmem>>, vector<1x8x8xf32>
    %133 = vector.shape_cast %132 : vector<1x8x8xf32> to vector<8x8xf32>
    %cst_107 = arith.constant dense<0.000000e+00> : vector<256x8xf32>
    %134 = tpu.matmul %131, %133, %cst_107 {dimension_numbers = #tpu.dot_dimension_numbers<[1], [0], [0], [1], [0, 0, 1, 1], [], []>} : vector<256x8xf32>, vector<8x8xf32>, vector<256x8xf32> -> vector<256x8xf32>
    %135 = arith.addf %129, %134 : vector<256x8xf32>
    %cst_108 = arith.constant dense<0.000000e+00> : vector<8xf32>
    %136 = vector.multi_reduction <add>, %135, %cst_108 [0] : vector<256x8xf32> to vector<8xf32>
    %137 = vector.shape_cast %136 : vector<8xf32> to vector<1x8xf32>
    %cst_109 = arith.constant 2.560000e+02 : f32
    %138 = vector.broadcast %cst_109 : f32 to vector<1x8xf32>
    %139 = arith.divf %137, %138 : vector<1x8xf32>
    %140 = vector.broadcast %139 : vector<1x8xf32> to vector<256x8xf32>
    %141 = arith.subf %135, %140 : vector<256x8xf32>
    %142 = arith.mulf %141, %141 : vector<256x8xf32>
    %cst_110 = arith.constant dense<0.000000e+00> : vector<8xf32>
    %143 = vector.multi_reduction <add>, %142, %cst_110 [0] : vector<256x8xf32> to vector<8xf32>
    %144 = vector.shape_cast %143 : vector<8xf32> to vector<1x8xf32>
    %cst_111 = arith.constant 2.560000e+02 : f32
    %145 = vector.broadcast %cst_111 : f32 to vector<1x8xf32>
    %146 = arith.divf %144, %145 : vector<1x8xf32>
    %147 = vector.broadcast %139 : vector<1x8xf32> to vector<256x8xf32>
    %148 = arith.subf %135, %147 : vector<256x8xf32>
    %cst_112 = arith.constant 9.99999974E-6 : f32
    %149 = vector.broadcast %cst_112 : f32 to vector<1x8xf32>
    %150 = arith.addf %146, %149 : vector<1x8xf32>
    %151 = math.rsqrt %150 : vector<1x8xf32>
    %152 = vector.broadcast %151 : vector<1x8xf32> to vector<256x8xf32>
    %153 = arith.mulf %148, %152 : vector<256x8xf32>
    %154 = tpu.transpose %153, [1, 0] : vector<256x8xf32> -> vector<8x256xf32>
    %c0_113 = arith.constant 0 : index
    %c0_114 = arith.constant 0 : index
    %c0_115 = arith.constant 0 : index
    %155 = vector.load %arg4[%c0_113, %c0_114, %c0_115] : memref<1x8x256xf32, #tpu.memory_space<vmem>>, vector<1x8x256xf32>
    %156 = vector.shape_cast %155 : vector<1x8x256xf32> to vector<8x256xf32>
    %157 = vector.shape_cast %154 : vector<8x256xf32> to vector<1x8x256xf32>
    tpu.vector_store %arg4[%c0_113, %c0_114, %c0_115], %157 {strides = array<i32>} : memref<1x8x256xf32, #tpu.memory_space<vmem>>, vector<1x8x256xf32>,
    return
  }
  func.func @transform_0(%arg0: i32) -> (i32, i32, i32, i32) {
    %c0_i32 = arith.constant 0 : i32
    %c0_i32_0 = arith.constant 0 : i32
    %c0_i32_1 = arith.constant 0 : i32
    %c0_i32_2 = arith.constant 0 : i32
    return %arg0, %c0_i32, %c0_i32_0, %c0_i32_1 : i32, i32, i32, i32
  }
  func.func @transform_1(%arg0: i32) -> (i32, i32, i32) {
    %c0_i32 = arith.constant 0 : i32
    %c0_i32_0 = arith.constant 0 : i32
    %c0_i32_1 = arith.constant 0 : i32
    %c0_i32_2 = arith.constant 0 : i32
    return %c0_i32, %c0_i32_0, %c0_i32_1 : i32, i32, i32
  }
  func.func @transform_2(%arg0: i32) -> (i32, i32, i32) {
    %c0_i32 = arith.constant 0 : i32
    %c0_i32_0 = arith.constant 0 : i32
    %c0_i32_1 = arith.constant 0 : i32
    %c0_i32_2 = arith.constant 0 : i32
    return %c0_i32, %c0_i32_0, %c0_i32_1 : i32, i32, i32
  }
  func.func @transform_3(%arg0: i32) -> (i32, i32, i32) {
    %c0_i32 = arith.constant 0 : i32
    %c0_i32_0 = arith.constant 0 : i32
    %c0_i32_1 = arith.constant 0 : i32
    return %arg0, %c0_i32, %c0_i32_0 : i32, i32, i32
  }
}

</mosaic_0001>

<bundles_post_ra>
// kernel: upsample_forward.1
= control target key start
LH: loop header
LB: loop body
LE: loop exit
PB: predicated region body
PF: predicated region fallthrough
CT: control target
= control target key end

     0   :  { %s9755_s12 = smov 0   ;;  %s12416_s0 = inlined_call_operand.vmem [shape: f32[2,18,18,8], index: 0, kind: input, shape index: {}]   ;;  %s12417_s1 = inlined_call_operand.vmem [shape: f32[9,8,8], index: 1, kind: input, shape index: {}]   ;;  %s12418_s2 = inlined_call_operand.vmem [shape: f32[9,8,8], index: 2, kind: input, shape index: {}]   ;;  %s12419_s3 = inlined_call_operand.vmem [shape: f32[2,8,256], index: 3, kind: output, shape index: {}]  }
   0x1 LB: > { %s7103_s13 = sadd.s32 4294967295, %s9732_s12   ;;  %p7107_p0 = scmp.ge.s32.totalorder %s9732_s12, 1  ;;  %s9732_s12 = sphi %s9755_s12, %s13_s12  }
   0x2   : > { %p137_p1 = scmp.lt.s32.totalorder %s9732_s12, 3 }
   0x4   : > { %p138_p2 = pnand %p7107_p0, %p137_p1 }
   0x6   : > { %141 = sbr.rel (%p138_p2) target bundleno = 1974 (0x7b6), region = 32 }
   0xd   : > { %v7111_v0 = vld [vmem:[%s12417_s1 + $0x8] sm:$0xff]  ;;  %p161_p3 = scmp.lt.s32.totalorder %s7103_s13, 1  ;;  %v279_v1 = vld [vmem:[%s12417_s1] sm:$0xff]  ;;  %vm328_vm0 = vcmask 1046528   ;;  %vm411_vm1 = vcmask 64512   ;;  %v9835_v37 = vld [vmem:[%s12417_s1 + $0x10] sm:$0xff] }
   0xe   : > { %8300 = vmatprep.subr.mxu0 %v7111_v0  ;;  %vm990_vm2 = vcmask 1045504   ;;  %vm3239_vm3 = vcmask 58368  }
   0xf   : > { %8301 = vmatpush3.msra.mxu0 %v7111_v0  ;;  %s12788_s13 = smov (!%p161_p3, %s7103_s13), 1 }
  0x10   : > { %8350 = vmatprep.subr.mxu0 %v279_v1  ;;  %s9712_s18 = smul.u32 432, %s12788_s13  ;;  %s7705_s29 = sshll.u32 %s12788_s13, 4 }
  0x11   : > { %s170_s5 = scalar_lea.vmem %s12419_s3, %s7705_s29 }
  0x12   : > { %s9775_s21 = scalar_lea.vmem %s12416_s0, %s9712_s18 }
  0x13   : > { %v171_v2 = vld [vmem:[%s9775_s21] sm:$0xff]  ;;  %v172_v3 = vld [vmem:[%s9775_s21 + $0x8] sm:$0xff]  ;;  %v9780_v4 = vld [vmem:[%s9775_s21 + $0x10] sm:$0x3] }
  0x14   : > { %v9782_v5 = vmax.f32 %v171_v2, 0.0  ;;  %v9784_v6 = vmax.f32 %v172_v3, 0.0  ;;  %v12428_v7 = vmax.f32 %v9780_v4, 0.0  ;;  %v174_v8 = vld [vmem:[%s9775_s21 + $0x18] sm:$0xff]  ;;  %v175_v9 = vld [vmem:[%s9775_s21 + $0x20] sm:$0xff]  ;;  %v177_v10 = vld [vmem:[%s9775_s21 + $0x30] sm:$0xff] }
  0x15   : > { %v9790_v11 = vmax.f32 %v174_v8, 0.0  ;;  %v9792_v12 = vmax.f32 %v175_v9, 0.0  ;;  %v9795_v13 = vld [vmem:[%s9775_s21 + $0x28] sm:$0x3]  ;;  %v178_v14 = vld [vmem:[%s9775_s21 + $0x38] sm:$0xff]  ;;  %v9798_v15 = vmax.f32 %v177_v10, 0.0 }
  0x16   : > { %v329_v16 = vrot.slane %v9782_v5, 1  ;;  %v330_v17 = vrot.slane %v9784_v6, 1  ;;  %v332_v18 = vrot.slane %v12428_v7, 1  ;;  %v9805_v19 = vld [vmem:[%s9775_s21 + $0x40] sm:$0x3]  ;;  %v12427_v22 = vmax.f32 %v9795_v13, 0.0 }
  0x17   : > { %v334_v20 = vrot.slane %v9790_v11, 1  ;;  %v335_v21 = vrot.slane %v9792_v12, 1  ;;  %v9810_v23 = vmax.f32 %v178_v14, 0.0  ;;  %v180_v24 = vld [vmem:[%s9775_s21 + $0x48] sm:$0xff]  ;;  %v181_v25 = vld [vmem:[%s9775_s21 + $0x50] sm:$0xff]  ;;  %v339_v28 = vrot.slane %v9798_v15, 1 }
  0x18   : > { %v331_v26 = vsel %vm328_vm0, %v329_v16, %v330_v17  ;;  %v333_v27 = vsel %vm328_vm0, %v330_v17, %v332_v18  ;;  %v12426_v29 = vmax.f32 %v9805_v19, 0.0  ;;  %v9819_v30 = vld [vmem:[%s9775_s21 + $0x58] sm:$0x3]  ;;  %v183_v31 = vld [vmem:[%s9775_s21 + $0x60] sm:$0xff]  ;;  %v337_v33 = vrot.slane %v12427_v22, 1  ;;  %v184_v36 = vld [vmem:[%s9775_s21 + $0x68] sm:$0xff] }
  0x19   : > { %8302 = vmatprep.mubr.msk.f32.mxu0 %vm411_vm1, %v331_v26  ;;  %v9824_v32 = vsel %vm328_vm0, %v334_v20, %v335_v21  ;;  %v340_v34 = vrot.slane %v9810_v23, 1  ;;  %v9829_v35 = vmax.f32 %v180_v24, 0.0  ;;  %v9838_v38 = vmax.f32 %v181_v25, 0.0  ;;  %v9858_v47 = vld [vmem:[%s9775_s21 + $0x70] sm:$0x3]  ;;  %v186_v48 = vld [vmem:[%s9775_s21 + $0x78] sm:$0xff] }
  0x1a   : > { %8303 = vmatmul.mubr.msk.f32.vlgmr.msra.gmra.mrb[0].mxu0 %vm411_vm1, %v333_v27  ;;  %v9843_v39 = vsel %vm328_vm0, %v335_v21, %v337_v33  ;;  %v342_v40 = vrot.slane %v12426_v29, 1  ;;  %v12425_v41 = vmax.f32 %v9819_v30, 0.0  ;;  %v9848_v42 = vmax.f32 %v183_v31, 0.0  ;;  %v187_v49 = vld [vmem:[%s9775_s21 + $0x80] sm:$0xff]  ;;  %v9875_v54 = vld [vmem:[%s9775_s21 + $0x88] sm:$0x3] }
  0x1b   : > { %8351 = vmatpush3.msra.mxu0 %v279_v1  ;;  %8305 = vmatprep.mubr.msk.f32.mxu0 %vm411_vm1, %v9824_v32  ;;  %v9851_v43 = vsel %vm328_vm0, %v339_v28, %v340_v34  ;;  %v344_v44 = vrot.slane %v9829_v35, 1  ;;  %v345_v45 = vrot.slane %v9838_v38, 1  ;;  %v9855_v46 = vmax.f32 %v184_v36, 0.0  ;;  %v189_v59 = vld [vmem:[%s9775_s21 + $0x90] sm:$0xff]  ;;  %v190_v60 = vld [vmem:[%s9775_s21 + $0x98] sm:$0xff]  ;;  %v192_v1 = vld [vmem:[%s9775_s21 + $0xa8] sm:$0xff] }
  0x1c   : > { %12571 = vst [vmem:[#allocation3_spill] sm:$0xff] %v9851_v43  ;;  %8400 = vmatprep.subr.mxu0 %v9835_v37  ;;  %v9868_v50 = vsel %vm328_vm0, %v340_v34, %v342_v40  ;;  %v347_v51 = vrot.slane %v12425_v41, 1  ;;  %v349_v52 = vrot.slane %v9848_v42, 1  ;;  %v12424_v53 = vmax.f32 %v9858_v47, 0.0  ;;  %v9908_v10 = vld [vmem:[%s9775_s21 + $0xa0] sm:$0x3] }
  0x1d   : > { %12572 = vst [vmem:[#allocation4_spill] sm:$0xff] %v9868_v50  ;;  %v9878_v55 = vsel %vm328_vm0, %v344_v44, %v345_v45  ;;  %v350_v56 = vrot.slane %v9855_v46, 1  ;;  %v9881_v57 = vmax.f32 %v186_v48, 0.0  ;;  %v9883_v58 = vmax.f32 %v187_v49, 0.0  ;;  %v193_v14 = vld [vmem:[%s9775_s21 + $0xb0] sm:$0xff]  ;;  %v195_v28 = vld [vmem:[%s9775_s21 + $0xc0] sm:$0xff] }
  0x1e   : > { %8306 = vmatmul.mubr.msk.f32.gmra.mrb[2].mxu0 %vm411_vm1, %v9843_v39  ;;  %12573 = vst [vmem:[#allocation5_spill] sm:$0xff] %v9878_v55  ;;  %v12423_v61 = vmax.f32 %v9875_v54, 0.0  ;;  %v9893_v62 = vsel %vm328_vm0, %v345_v45, %v347_v51  ;;  %v352_v63 = vrot.slane %v12424_v53, 1  ;;  %v9897_v0 = vmax.f32 %v189_v59, 0.0  ;;  %v9931_v27 = vld [vmem:[%s9775_s21 + $0xb8] sm:$0x3] }
  0x1f   : > { %8308 = vmatprep.mubr.msk.f32.mxu0 %vm411_vm1, %v9851_v43  ;;  %12574 = vst [vmem:[#allocation6_spill] sm:$0xff] %v9893_v62  ;;  %v9901_v2 = vsel %vm328_vm0, %v349_v52, %v350_v56  ;;  %v354_v3 = vrot.slane %v9881_v57, 1  ;;  %v355_v8 = vrot.slane %v9883_v58, 1  ;;  %v9905_v9 = vmax.f32 %v190_v60, 0.0  ;;  %v196_v31 = vld [vmem:[%s9775_s21 + $0xc8] sm:$0xff]  ;;  %v198_v52 = vld [vmem:[%s9775_s21 + $0xd8] sm:$0xff] }
  0x20   : > { %12575 = vst [vmem:[#allocation7_spill] sm:$0xff] %v9901_v2  ;;  %v357_v16 = vrot.slane %v12423_v61, 1  ;;  %v9918_v17 = vsel %vm328_vm0, %v350_v56, %v352_v63  ;;  %v12421_v18 = vmax.f32 %v9908_v10, 0.0  ;;  %v9921_v20 = vmax.f32 %v192_v1, 0.0  ;;  %v9948_v45 = vld [vmem:[%s9775_s21 + $0xd0] sm:$0x3] }
  0x21   : > { %12576 = vst [vmem:[#allocation8_spill] sm:$0xff] %v9918_v17  ;;  %v9923_v21 = vmax.f32 %v193_v14, 0.0  ;;  %v9926_v24 = vsel %vm328_vm0, %v354_v3, %v355_v8  ;;  %v359_v25 = vrot.slane %v9897_v0, 1  ;;  %v360_v26 = vrot.slane %v9905_v9, 1  ;;  %v199_v56 = vld [vmem:[%s9775_s21 + $0xe0] sm:$0xff] }
  0x22   : > { %8309 = vmatmul.mubr.msk.f32.gmra.mrb[4].mxu0 %vm411_vm1, %v9868_v50  ;;  %12577 = vst [vmem:[#allocation9_spill] sm:$0xff] %v9926_v24  ;;  %v9938_v33 = vsel %vm328_vm0, %v355_v8, %v357_v16  ;;  %v362_v34 = vrot.slane %v12421_v18, 1  ;;  %v364_v36 = vrot.slane %v9921_v20, 1  ;;  %v12420_v44 = vmax.f32 %v9931_v27, 0.0  ;;  %v9973_v3 = vld [vmem:[%s9775_s21 + $0xe8] sm:$0x3] }
  0x23   : > { %8311 = vmatprep.mubr.msk.f32.mxu0 %vm411_vm1, %v9878_v55  ;;  %12578 = vst [vmem:[#allocation10_spill] sm:$0xff] %v9938_v33  ;;  %v365_v40 = vrot.slane %v9923_v21, 1  ;;  %v9951_v48 = vsel %vm328_vm0, %v359_v25, %v360_v26  ;;  %v9953_v49 = vmax.f32 %v195_v28, 0.0  ;;  %v9955_v51 = vmax.f32 %v196_v31, 0.0  ;;  %v202_v28 = vld [vmem:[%s9775_s21 + $0xf8] sm:$0xff]  ;;  %v207_v7 = vld [vmem:[%s9775_s21 + $0x120] sm:$0xff] }
  0x24   : > { %12579 = vst [vmem:[#allocation11_spill] sm:$0xff] %v9951_v48  ;;  %v12422_v59 = vmax.f32 %v9948_v45, 0.0  ;;  %v9965_v60 = vsel %vm328_vm0, %v360_v26, %v362_v34  ;;  %v367_v1 = vrot.slane %v12420_v44, 1  ;;  %v9977_v16 = vmax.f32 %v198_v52, 0.0  ;;  %v201_v26 = vld [vmem:[%s9775_s21 + $0xf0] sm:$0xff] }
  0x25   : > { %12580 = vst [vmem:[#allocation12_spill] sm:$0xff] %v9965_v60  ;;  %v9968_v63 = vsel %vm328_vm0, %v364_v36, %v365_v40  ;;  %v369_v8 = vrot.slane %v9953_v49, 1  ;;  %v370_v14 = vrot.slane %v9955_v51, 1  ;;  %v9979_v25 = vmax.f32 %v199_v56, 0.0  ;;  %v10003_v61 = vld [vmem:[%s9775_s21 + $0x100] sm:$0x3] }
  0x26   : > { %8312 = vmatmul.mubr.msk.f32.gmra.mrb[6].mxu0 %vm411_vm1, %v9893_v62  ;;  %12581 = vst [vmem:[#allocation13_spill] sm:$0xff] %v9968_v63  ;;  %v372_v31 = vrot.slane %v12422_v59, 1  ;;  %v9990_v34 = vsel %vm328_vm0, %v365_v40, %v367_v1  ;;  %v12429_v36 = vmax.f32 %v9973_v3, 0.0  ;;  %v9993_v52 = vmax.f32 %v201_v26, 0.0  ;;  %v204_v40 = vld [vmem:[%s9775_s21 + $0x108] sm:$0xff]  ;;  %v205_v1 = vld [vmem:[%s9775_s21 + $0x110] sm:$0xff] }
  0x27   : > { %8314 = vmatprep.mubr.msk.f32.mxu0 %vm411_vm1, %v9901_v2  ;;  %12582 = vst [vmem:[#allocation14_spill] sm:$0xff] %v9990_v34  ;;  %v9995_v56 = vmax.f32 %v202_v28, 0.0  ;;  %v9998_v44 = vsel %vm328_vm0, %v369_v8, %v370_v14  ;;  %v374_v18 = vrot.slane %v9977_v16, 1  ;;  %v375_v59 = vrot.slane %v9979_v25, 1  ;;  %v10020_v29 = vld [vmem:[%s9775_s21 + $0x118] sm:$0x3] }
  0x28   : > { %12583 = vst [vmem:[#allocation15_spill] sm:$0xff] %v9998_v44  ;;  %v10010_v26 = vsel %vm328_vm0, %v370_v14, %v372_v31  ;;  %v377_v8 = vrot.slane %v12429_v36, 1  ;;  %v379_v28 = vrot.slane %v9993_v52, 1  ;;  %v10025_v14 = vmax.f32 %v204_v40, 0.0  ;;  %v208_v36 = vld [vmem:[%s9775_s21 + $0x128] sm:$0xff]  ;;  %v217_v62 = vld [vmem:[%s9775_s21 + $0x170] sm:$0xff] }
  0x29   : > { %12584 = vst [vmem:[#allocation16_spill] sm:$0xff] %v10010_v26  ;;  %v380_v53 = vrot.slane %v9995_v56, 1  ;;  %v10023_v22 = vsel %vm328_vm0, %v374_v18, %v375_v59  ;;  %v10027_v31 = vmax.f32 %v205_v1, 0.0  ;;  %v12588_v40 = vmax.f32 %v10003_v61, 0.0 }
  0x2a   : > { %8315 = vmatmul.mubr.msk.f32.gmra.mrb[8].mxu0 %vm411_vm1, %v9918_v17  ;;  %12585 = vst [vmem:[#allocation17_spill] sm:$0xff] %v10023_v22  ;;  %v10037_v41 = vsel %vm328_vm0, %v375_v59, %v377_v8  ;;  %v210_v59 = vld [vmem:[%s9775_s21 + $0x138] sm:$0xff]  ;;  %v211_v8 = vld [vmem:[%s9775_s21 + $0x140] sm:$0xff] }
  0x2b   : > { %8317 = vmatprep.mubr.msk.f32.mxu0 %vm411_vm1, %v9926_v24  ;;  %12586 = vst [vmem:[#allocation18_spill] sm:$0xff] %v10037_v41  ;;  %v10040_v18 = vsel %vm328_vm0, %v379_v28, %v380_v53  ;;  %v382_v1 = vrot.slane %v12588_v40, 1  ;;  %v12589_v28 = vmax.f32 %v10020_v29, 0.0 }
  0x2c   : > { %12587 = vst [vmem:[#allocation19_spill] sm:$0xff] %v10040_v18 }
  0x2d   : > { %v387_v40 = vrot.slane %v12589_v28, 1 }
  0x2e   : > { %8318 = vmatmul.mubr.msk.f32.gmra.mrb[10].mxu0 %vm411_vm1, %v9938_v33 }
  0x2f   : > { %8320 = vmatprep.mubr.msk.f32.mxu0 %vm411_vm1, %v9951_v48  ;;  %v10065_v48 = vmax.f32 %v210_v59, 0.0 }
  0x32   : > { %8321 = vmatmul.mubr.msk.f32.gmra.mrb[12].mxu0 %vm411_vm1, %v9965_v60  ;;  %v10062_v60 = vsel %vm328_vm0, %v380_v53, %v382_v1  ;;  %v213_v53 = vld [vmem:[%s9775_s21 + $0x150] sm:$0xff]  ;;  %v214_v1 = vld [vmem:[%s9775_s21 + $0x158] sm:$0xff] }
  0x33   : > { %8323 = vmatprep.mubr.msk.f32.mxu0 %vm411_vm1, %v9968_v63  ;;  %v384_v63 = vrot.slane %v10025_v14, 1  ;;  %12590 = vst [vmem:[#allocation20_spill] sm:$0xff] %v10062_v60 }
  0x36   : > { %8324 = vmatmul.mubr.msk.f32.gmra.mrb[14].mxu0 %vm411_vm1, %v9990_v34  ;;  %v10045_v34 = vld [vmem:[%s9775_s21 + $0x130] sm:$0x3] }
  0x37   : > { %8326 = vmatprep.mubr.msk.f32.mxu0 %vm411_vm1, %v9998_v44  ;;  %v10049_v44 = vmax.f32 %v207_v7, 0.0  ;;  %v12462_v7 = vmax.f32 %v10045_v34, 0.0 }
  0x3a   : > { %8327 = vmatmul.mubr.msk.f32.gmra.mrb[16].mxu0 %vm411_vm1, %v10010_v26  ;;  %v385_v26 = vrot.slane %v10027_v31, 1 }
  0x3b   : > { %8329 = vmatprep.mubr.msk.f32.mxu0 %vm411_vm1, %v10023_v22  ;;  %v10051_v22 = vmax.f32 %v208_v36, 0.0  ;;  %v10067_v36 = vmax.f32 %v211_v8, 0.0  ;;  %v394_v8 = vrot.slane %v10065_v48, 1 }
  0x3c   : > { %v10070_v33 = vsel %vm328_vm0, %v384_v63, %v385_v26  ;;  %v10082_v59 = vsel %vm328_vm0, %v385_v26, %v387_v40  ;;  %v392_v63 = vrot.slane %v12462_v7, 1  ;;  %v10096_v26 = vmax.f32 %v214_v1, 0.0  ;;  %v10099_v40 = vld [vmem:[%s9775_s21 + $0x160] sm:$0x3] }
  0x3d   : > { %12591 = vst [vmem:[#allocation21_spill] sm:$0xff] %v10070_v33  ;;  %v390_v28 = vrot.slane %v10051_v22, 1  ;;  %12592 = vst [vmem:[#allocation22_spill] sm:$0xff] %v10082_v59  ;;  %v395_v24 = vrot.slane %v10067_v36, 1  ;;  %v12474_v1 = vmax.f32 %v10099_v40, 0.0 }
  0x3e   : > { %8330 = vmatmul.mubr.msk.f32.gmra.mrb[18].mxu0 %vm411_vm1, %v10037_v41  ;;  %v389_v41 = vrot.slane %v10049_v44, 1  ;;  %v400_v50 = vrot.slane %v10096_v26, 1 }
  0x3f   : > { %8332 = vmatprep.mubr.msk.f32.mxu0 %vm411_vm1, %v10040_v18  ;;  %v10075_v18 = vld [vmem:[%s9775_s21 + $0x148] sm:$0x3]  ;;  %v10108_v7 = vsel %vm328_vm0, %v390_v28, %v392_v63  ;;  %v402_v63 = vrot.slane %v12474_v1, 1 }
  0x40   : > { %v12473_v17 = vmax.f32 %v10075_v18, 0.0  ;;  %v10092_v2 = vsel %vm328_vm0, %v389_v41, %v390_v28  ;;  %12594 = vst [vmem:[#allocation24_spill] sm:$0xff] %v10108_v7  ;;  %v10111_v41 = vsel %vm328_vm0, %v394_v8, %v395_v24 }
  0x41   : > { %12593 = vst [vmem:[#allocation23_spill] sm:$0xff] %v10092_v2  ;;  %12595 = vst [vmem:[#allocation25_spill] sm:$0xff] %v10111_v41 }
  0x42   : > { %8333 = vmatmul.mubr.msk.f32.gmra.mrb[20].mxu0 %vm411_vm1, %v10062_v60  ;;  %v10094_v60 = vmax.f32 %v213_v53, 0.0  ;;  %v397_v53 = vrot.slane %v12473_v17, 1 }
  0x43   : > { %8335 = vmatprep.mubr.msk.f32.mxu0 %vm411_vm1, %v10070_v33  ;;  %v216_v33 = vld [vmem:[%s9775_s21 + $0x168] sm:$0xff] }
  0x44   : > { %v399_v55 = vrot.slane %v10094_v60, 1  ;;  %v10118_v43 = vmax.f32 %v216_v33, 0.0  ;;  %v10130_v28 = vsel %vm328_vm0, %v395_v24, %v397_v53  ;;  %v10145_v24 = vsel %vm328_vm0, %v400_v50, %v402_v63 }
  0x45   : > { %12596 = vst [vmem:[#allocation26_spill] sm:$0xff] %v10145_v24  ;;  %v12599_v63 = vmax.f32 %v9780_v4, 0.0 }
  0x46   : > { %8336 = vmatmul.mubr.msk.f32.gmra.mrb[22].mxu0 %vm411_vm1, %v10082_v59  ;;  %v10120_v59 = vmax.f32 %v217_v62, 0.0  ;;  %v10136_v33 = vsel %vm328_vm0, %v399_v55, %v400_v50  ;;  %v404_v62 = vrot.slane %v10118_v43, 1  ;;  %v7209_v50 = vld [vmem:[%s12417_s1 + $0x18] sm:$0xff] }
  0x47   : > { %8338 = vmatprep.mubr.msk.f32.mxu0 %vm411_vm1, %v10092_v2  ;;  %v10123_v2 = vld [vmem:[%s9775_s21 + $0x178] sm:$0x3] }
  0x48   : > { %v12475_v8 = vmax.f32 %v10123_v2, 0.0  ;;  %v405_v17 = vrot.slane %v10120_v59, 1 }
  0x4a   : > { %8339 = vmatmul.mubr.msk.f32.gmra.mrb[24].mxu0 %vm411_vm1, %v10108_v7  ;;  %v407_v53 = vrot.slane %v12475_v8, 1  ;;  %v10150_v1 = vsel %vm328_vm0, %v404_v62, %v405_v17  ;;  %v994_v62 = vrot.slane %v12599_v63, 2  ;;  %v996_v8 = vrot.slane %v9790_v11, 2 }
  0x4b   : > { %8341 = vmatprep.mubr.msk.f32.mxu0 %vm411_vm1, %v10111_v41  ;;  %12597 = vst [vmem:[#allocation27_spill] sm:$0xff] %v10150_v1 }
  0x4c   : > { %v10157_v55 = vsel %vm328_vm0, %v405_v17, %v407_v53  ;;  %v992_v17 = vrot.slane %v9784_v6, 2 }
  0x4d   : > { %12598 = vst [vmem:[#allocation28_spill] sm:$0xff] %v10157_v55 }
  0x4e   : > { %8342 = vmatmul.mubr.msk.f32.gmra.mrb[26].mxu0 %vm411_vm1, %v10130_v28 }
  0x4f   : > { %8344 = vmatprep.mubr.msk.f32.mxu0 %vm411_vm1, %v10136_v33 }
  0x52   : > { %8345 = vmatmul.mubr.msk.f32.gmra.mrb[28].mxu0 %vm411_vm1, %v10145_v24  ;;  %v10248_v24 = vld [vmem:[%s12417_s1 + $0x20] sm:$0xff] }
  0x53   : > { %8347 = vmatprep.mubr.msk.f32.mxu0 %vm411_vm1, %v10150_v1  ;;  %v1001_v1 = vrot.slane %v9798_v15, 2 }
  0x56   : > { %8348 = vmatmul.mubr.msk.f32.gmra.mrb[30].mxu0 %vm411_vm1, %v10157_v55  ;;  %v997_v55 = vrot.slane %v9792_v12, 2 }
  0x57   : > { %8352 = vmatprep.mubr.msk.f32.mxu0 %vm411_vm1, %v9782_v5 }
  0x58   : > { %v10241_v63 = vsel %vm990_vm2, %v996_v8, %v997_v55  ;;  %v12601_v8 = vmax.f32 %v9805_v19, 0.0  ;;  %v12602_v19 = vmax.f32 %v9819_v30, 0.0 }
  0x5a   : > { %8353 = vmatmul.mubr.msk.f32.vlgmr.msra.gmra.mrb[0].mxu0 %vm411_vm1, %v9784_v6  ;;  %v12600_v6 = vmax.f32 %v9795_v13, 0.0 }
  0x5b   : > { %8401 = vmatpush3.msra.mxu0 %v9835_v37  ;;  %8355 = vmatprep.mubr.msk.f32.mxu0 %vm411_vm1, %v9790_v11  ;;  %v991_v37 = vrot.slane %v9782_v5, 2  ;;  %v995_v5 = vsel %vm990_vm2, %v992_v17, %v994_v62 }
  0x5c   : > { %8450 = vmatprep.subr.mxu0 %v7209_v50  ;;  %v999_v4 = vrot.slane %v12600_v6, 2  ;;  %v1007_v6 = vrot.slane %v9838_v38, 2 }
  0x5d   : > { %v993_v53 = vsel %vm990_vm2, %v991_v37, %v992_v17  ;;  %v1002_v37 = vrot.slane %v9810_v23, 2  ;;  %v1004_v17 = vrot.slane %v12601_v8, 2 }
  0x5e   : > { %8356 = vmatmul.mubr.msk.f32.gmra.mrb[2].mxu0 %vm411_vm1, %v9792_v12  ;;  %v10254_v13 = vsel %vm990_vm2, %v997_v55, %v999_v4  ;;  %v1012_v4 = vrot.slane %v9855_v46, 2 }
  0x5f   : > { %8358 = vmatprep.mubr.msk.f32.mxu0 %vm411_vm1, %v9798_v15  ;;  %v10259_v62 = vsel %vm990_vm2, %v1001_v1, %v1002_v37  ;;  %v10269_v55 = vsel %vm990_vm2, %v1002_v37, %v1004_v17  ;;  %v12604_v37 = vmax.f32 %v9858_v47, 0.0 }
  0x61   : > { %v1014_v30 = vrot.slane %v12604_v37, 2  ;;  %v1022_v37 = vrot.slane %v9905_v9, 2 }
  0x62   : > { %8359 = vmatmul.mubr.msk.f32.gmra.mrb[4].mxu0 %vm411_vm1, %v9810_v23 }
  0x63   : > { %8361 = vmatprep.mubr.msk.f32.mxu0 %vm411_vm1, %v9829_v35 }
  0x66   : > { %8362 = vmatmul.mubr.msk.f32.gmra.mrb[6].mxu0 %vm411_vm1, %v9838_v38 }
  0x67   : > { %8364 = vmatprep.mubr.msk.f32.mxu0 %vm411_vm1, %v9848_v42 }
  0x6a   : > { %8365 = vmatmul.mubr.msk.f32.gmra.mrb[8].mxu0 %vm411_vm1, %v9855_v46 }
  0x6b   : > { %8367 = vmatprep.mubr.msk.f32.mxu0 %vm411_vm1, %v9881_v57 }
  0x6e   : > { %8368 = vmatmul.mubr.msk.f32.gmra.mrb[10].mxu0 %vm411_vm1, %v9883_v58 }
  0x6f   : > { %8370 = vmatprep.mubr.msk.f32.mxu0 %vm411_vm1, %v9897_v0 }
  0x72   : > { %8371 = vmatmul.mubr.msk.f32.gmra.mrb[12].mxu0 %vm411_vm1, %v9905_v9 }
  0x73   : > { %8373 = vmatprep.mubr.msk.f32.mxu0 %vm411_vm1, %v9921_v20 }
  0x76   : > { %8374 = vmatmul.mubr.msk.f32.gmra.mrb[14].mxu0 %vm411_vm1, %v9923_v21 }
  0x77   : > { %8376 = vmatprep.mubr.msk.f32.mxu0 %vm411_vm1, %v9953_v49 }
  0x7a   : > { %8377 = vmatmul.mubr.msk.f32.gmra.mrb[16].mxu0 %vm411_vm1, %v9955_v51 }
  0x7b   : > { %8379 = vmatprep.mubr.msk.f32.mxu0 %vm411_vm1, %v9977_v16 }
  0x7e   : > { %8380 = vmatmul.mubr.msk.f32.gmra.mrb[18].mxu0 %vm411_vm1, %v9979_v25 }
  0x7f   : > { %8382 = vmatprep.mubr.msk.f32.mxu0 %vm411_vm1, %v9993_v52 }
  0x82   : > { %8383 = vmatmul.mubr.msk.f32.gmra.mrb[20].mxu0 %vm411_vm1, %v9995_v56 }
  0x83   : > { %8385 = vmatprep.mubr.msk.f32.mxu0 %vm411_vm1, %v10025_v14 }
  0x86   : > { %8386 = vmatmul.mubr.msk.f32.gmra.mrb[22].mxu0 %vm411_vm1, %v10027_v31 }
  0x87   : > { %8388 = vmatprep.mubr.msk.f32.mxu0 %vm411_vm1, %v10049_v44 }
  0x8a   : > { %8389 = vmatmul.mubr.msk.f32.gmra.mrb[24].mxu0 %vm411_vm1, %v10051_v22 }
  0x8b   : > { %8391 = vmatprep.mubr.msk.f32.mxu0 %vm411_vm1, %v10065_v48 }
  0x8e   : > { %8392 = vmatmul.mubr.msk.f32.gmra.mrb[26].mxu0 %vm411_vm1, %v10067_v36 }
  0x8f   : > { %8394 = vmatprep.mubr.msk.f32.mxu0 %vm411_vm1, %v10094_v60 }
  0x92   : > { %8395 = vmatmul.mubr.msk.f32.gmra.mrb[28].mxu0 %vm411_vm1, %v10096_v26 }
  0x93   : > { %8397 = vmatprep.mubr.msk.f32.mxu0 %vm411_vm1, %v10118_v43 }
  0x96   : > { %8398 = vmatmul.mubr.msk.f32.gmra.mrb[30].mxu0 %vm411_vm1, %v10120_v59 }
  0x97   : > { %8402 = vmatprep.mubr.msk.f32.mxu0 %vm411_vm1, %v993_v53  ;;  %v1006_v53 = vrot.slane %v9829_v35, 2 }
  0x99   : > { %v10274_v1 = vsel %vm990_vm2, %v1006_v53, %v1007_v6  ;;  %v1016_v53 = vrot.slane %v9881_v57, 2 }
  0x9a   : > { %8403 = vmatmul.mubr.msk.f32.vlgmr.msra.gmra.mrb[0].mxu0 %vm411_vm1, %v995_v5  ;;  %12603 = vst [vmem:[#allocation29_spill] sm:$0xff] %v10274_v1  ;;  %v1011_v5 = vrot.slane %v9848_v42, 2 }
  0x9b   : > { %8451 = vmatpush3.msra.mxu0 %v7209_v50  ;;  %8405 = vmatprep.mubr.msk.f32.mxu0 %vm411_vm1, %v10241_v63  ;;  %v1009_v50 = vrot.slane %v12602_v19, 2  ;;  %v1017_v19 = vrot.slane %v9883_v58, 2 }
  0x9c   : > { %8500 = vmatprep.subr.mxu0 %v10248_v24  ;;  %v10288_v17 = vsel %vm990_vm2, %v1011_v5, %v1012_v4  ;;  %v1021_v5 = vrot.slane %v9897_v0, 2 }
  0x9d   : > { %v10283_v8 = vsel %vm990_vm2, %v1007_v6, %v1009_v50  ;;  %12605 = vst [vmem:[#allocation30_spill] sm:$0xff] %v10288_v17  ;;  %v12606_v6 = vmax.f32 %v9875_v54, 0.0  ;;  %v10302_v50 = vsel %vm990_vm2, %v1016_v53, %v1017_v19  ;;  %v1026_v53 = vrot.slane %v9921_v20, 2 }
  0x9e   : > { %8406 = vmatmul.mubr.msk.f32.gmra.mrb[2].mxu0 %vm411_vm1, %v10254_v13  ;;  %12607 = vst [vmem:[#allocation31_spill] sm:$0xff] %v10302_v50 }
  0x9f   : > { %8408 = vmatprep.mubr.msk.f32.mxu0 %vm411_vm1, %v10259_v62  ;;  %v1019_v47 = vrot.slane %v12606_v6, 2  ;;  %v1027_v6 = vrot.slane %v9923_v21, 2 }
  0xa2   : > { %8409 = vmatmul.mubr.msk.f32.gmra.mrb[4].mxu0 %vm411_vm1, %v10269_v55 }
  0xa3   : > { %8411 = vmatprep.mubr.msk.f32.mxu0 %vm411_vm1, %v10274_v1  ;;  %v10297_v1 = vsel %vm990_vm2, %v1012_v4, %v1014_v30  ;;  %v12608_v4 = vmax.f32 %v9908_v10, 0.0  ;;  %v10316_v30 = vsel %vm990_vm2, %v1021_v5, %v1022_v37  ;;  %v1031_v5 = vrot.slane %v9953_v49, 2 }
  0xa4   : > { %12609 = vst [vmem:[#allocation32_spill] sm:$0xff] %v10316_v30 }
  0xa5   : > { %v1024_v54 = vrot.slane %v12608_v4, 2  ;;  %v1032_v4 = vrot.slane %v9955_v51, 2 }
  0xa6   : > { %8412 = vmatmul.mubr.msk.f32.gmra.mrb[6].mxu0 %vm411_vm1, %v10283_v8 }
  0xa7   : > { %8414 = vmatprep.mubr.msk.f32.mxu0 %vm411_vm1, %v10288_v17  ;;  %v10311_v17 = vsel %vm990_vm2, %v1017_v19, %v1019_v47  ;;  %v12610_v19 = vmax.f32 %v9931_v27, 0.0  ;;  %v10330_v47 = vsel %vm990_vm2, %v1026_v53, %v1027_v6  ;;  %v1036_v53 = vrot.slane %v9977_v16, 2 }
  0xa8   : > { %12611 = vst [vmem:[#allocation33_spill] sm:$0xff] %v10330_v47 }
  0xa9   : > { %v1029_v10 = vrot.slane %v12610_v19, 2  ;;  %v1037_v19 = vrot.slane %v9979_v25, 2 }
  0xaa   : > { %8415 = vmatmul.mubr.msk.f32.gmra.mrb[8].mxu0 %vm411_vm1, %v10297_v1 }
  0xab   : > { %8417 = vmatprep.mubr.msk.f32.mxu0 %vm411_vm1, %v10302_v50  ;;  %v10325_v50 = vsel %vm990_vm2, %v1022_v37, %v1024_v54  ;;  %v12612_v37 = vmax.f32 %v9948_v45, 0.0  ;;  %v10344_v54 = vsel %vm990_vm2, %v1031_v5, %v1032_v4  ;;  %v1041_v5 = vrot.slane %v9993_v52, 2 }
  0xac   : > { %12613 = vst [vmem:[#allocation34_spill] sm:$0xff] %v10344_v54 }
  0xad   : > { %v1034_v27 = vrot.slane %v12612_v37, 2  ;;  %v1042_v37 = vrot.slane %v9995_v56, 2 }
  0xae   : > { %8418 = vmatmul.mubr.msk.f32.gmra.mrb[10].mxu0 %vm411_vm1, %v10311_v17 }
  0xaf   : > { %8420 = vmatprep.mubr.msk.f32.mxu0 %vm411_vm1, %v10316_v30  ;;  %v10339_v30 = vsel %vm990_vm2, %v1027_v6, %v1029_v10  ;;  %v12614_v6 = vmax.f32 %v9973_v3, 0.0  ;;  %v10358_v10 = vsel %vm990_vm2, %v1036_v53, %v1037_v19  ;;  %v1046_v53 = vrot.slane %v10025_v14, 2 }
  0xb0   : > { %12615 = vst [vmem:[#allocation35_spill] sm:$0xff] %v10358_v10 }
  0xb1   : > { %v1039_v45 = vrot.slane %v12614_v6, 2  ;;  %v1047_v6 = vrot.slane %v10027_v31, 2 }
  0xb2   : > { %8421 = vmatmul.mubr.msk.f32.gmra.mrb[12].mxu0 %vm411_vm1, %v10325_v50 }
  0xb3   : > { %8423 = vmatprep.mubr.msk.f32.mxu0 %vm411_vm1, %v10330_v47  ;;  %v10353_v47 = vsel %vm990_vm2, %v1032_v4, %v1034_v27  ;;  %v12616_v4 = vmax.f32 %v10003_v61, 0.0  ;;  %v10372_v27 = vsel %vm990_vm2, %v1041_v5, %v1042_v37  ;;  %v1051_v5 = vrot.slane %v10049_v44, 2 }
  0xb4   : > { %12617 = vst [vmem:[#allocation36_spill] sm:$0xff] %v10372_v27 }
  0xb5   : > { %v1044_v3 = vrot.slane %v12616_v4, 2  ;;  %v1052_v4 = vrot.slane %v10051_v22, 2 }
  0xb6   : > { %8424 = vmatmul.mubr.msk.f32.gmra.mrb[14].mxu0 %vm411_vm1, %v10339_v30 }
  0xb7   : > { %8426 = vmatprep.mubr.msk.f32.mxu0 %vm411_vm1, %v10344_v54  ;;  %v10367_v54 = vsel %vm990_vm2, %v1037_v19, %v1039_v45  ;;  %v12619_v19 = vmax.f32 %v10020_v29, 0.0  ;;  %v10386_v45 = vsel %vm990_vm2, %v1046_v53, %v1047_v6  ;;  %v1056_v53 = vrot.slane %v10065_v48, 2 }
  0xb8   : > { %12620 = vst [vmem:[#allocation38_spill] sm:$0xff] %v10386_v45 }
  0xb9   : > { %v1049_v61 = vrot.slane %v12619_v19, 2  ;;  %v1057_v19 = vrot.slane %v10067_v36, 2 }
  0xba   : > { %8427 = vmatmul.mubr.msk.f32.gmra.mrb[16].mxu0 %vm411_vm1, %v10353_v47 }
  0xbb   : > { %8429 = vmatprep.mubr.msk.f32.mxu0 %vm411_vm1, %v10358_v10  ;;  %v10381_v10 = vsel %vm990_vm2, %v1042_v37, %v1044_v3  ;;  %v12621_v37 = vmax.f32 %v10045_v34, 0.0  ;;  %v10400_v3 = vsel %vm990_vm2, %v1051_v5, %v1052_v4  ;;  %v1061_v5 = vrot.slane %v10094_v60, 2 }
  0xbc   : > { %12618 = vst [vmem:[#allocation37_spill] sm:$0xff] %v10381_v10  ;;  %12622 = vst [vmem:[#allocation39_spill] sm:$0xff] %v10400_v3 }
  0xbd   : > { %v1054_v29 = vrot.slane %v12621_v37, 2  ;;  %v1062_v37 = vrot.slane %v10096_v26, 2 }
  0xbe   : > { %8430 = vmatmul.mubr.msk.f32.gmra.mrb[18].mxu0 %vm411_vm1, %v10367_v54 }
  0xbf   : > { %8432 = vmatprep.mubr.msk.f32.mxu0 %vm411_vm1, %v10372_v27  ;;  %v10395_v27 = vsel %vm990_vm2, %v1047_v6, %v1049_v61  ;;  %v12624_v6 = vmax.f32 %v10075_v18, 0.0  ;;  %v10414_v61 = vsel %vm990_vm2, %v1056_v53, %v1057_v19  ;;  %v1066_v53 = vrot.slane %v10118_v43, 2 }
  0xc0   : > { %12625 = vst [vmem:[#allocation41_spill] sm:$0xff] %v10414_v61 }
  0xc1   : > { %v1059_v34 = vrot.slane %v12624_v6, 2  ;;  %v1067_v6 = vrot.slane %v10120_v59, 2 }
  0xc2   : > { %8433 = vmatmul.mubr.msk.f32.gmra.mrb[20].mxu0 %vm411_vm1, %v10381_v10 }
  0xc3   : > { %8435 = vmatprep.mubr.msk.f32.mxu0 %vm411_vm1, %v10386_v45  ;;  %v10409_v45 = vsel %vm990_vm2, %v1052_v4, %v1054_v29  ;;  %v12626_v4 = vmax.f32 %v10099_v40, 0.0  ;;  %v10428_v29 = vsel %vm990_vm2, %v1061_v5, %v1062_v37 }
  0xc4   : > { %12623 = vst [vmem:[#allocation40_spill] sm:$0xff] %v10409_v45  ;;  %12627 = vst [vmem:[#allocation42_spill] sm:$0xff] %v10428_v29 }
  0xc5   : > { %v1064_v18 = vrot.slane %v12626_v4, 2  ;;  %v7308_v4 = vld [vmem:[%s12417_s1 + $0x30] sm:$0xff] }
  0xc6   : > { %8436 = vmatmul.mubr.msk.f32.gmra.mrb[22].mxu0 %vm411_vm1, %v10395_v27 }
  0xc7   : > { %8438 = vmatprep.mubr.msk.f32.mxu0 %vm411_vm1, %v10400_v3  ;;  %v10423_v3 = vsel %vm990_vm2, %v1057_v19, %v1059_v34  ;;  %v12628_v19 = vmax.f32 %v10123_v2, 0.0  ;;  %v10442_v34 = vsel %vm990_vm2, %v1066_v53, %v1067_v6  ;;  %v7275_v2 = vld [vmem:[%s12417_s1 + $0x28] sm:$0xff]  ;;  %v12630_v53 = vld [vmem:[#allocation4_spill] sm:$0xff] }
  0xc9   : > { %v1069_v40 = vrot.slane %v12628_v19, 2  ;;  %v12632_v19 = vld [vmem:[#allocation6_spill] sm:$0xff] }
  0xca   : > { %8439 = vmatmul.mubr.msk.f32.gmra.mrb[24].mxu0 %vm411_vm1, %v10409_v45 }
  0xcb   : > { %8441 = vmatprep.mubr.msk.f32.mxu0 %vm411_vm1, %v10414_v61  ;;  %v10437_v61 = vsel %vm990_vm2, %v1062_v37, %v1064_v18  ;;  %v10449_v5 = vsel %vm990_vm2, %v1067_v6, %v1069_v40  ;;  %v12629_v18 = vld [vmem:[#allocation3_spill] sm:$0xff]  ;;  %v12631_v6 = vld [vmem:[#allocation5_spill] sm:$0xff]  ;;  %v12634_v40 = vld [vmem:[#allocation8_spill] sm:$0xff] }
  0xce   : > { %8442 = vmatmul.mubr.msk.f32.gmra.mrb[26].mxu0 %vm411_vm1, %v10423_v3 }
  0xcf   : > { %8444 = vmatprep.mubr.msk.f32.mxu0 %vm411_vm1, %v10428_v29 }
  0xd2   : > { %8445 = vmatmul.mubr.msk.f32.gmra.mrb[28].mxu0 %vm411_vm1, %v10437_v61 }
  0xd3   : > { %8447 = vmatprep.mubr.msk.f32.mxu0 %vm411_vm1, %v10442_v34 }
  0xd6   : > { %8448 = vmatmul.mubr.msk.f32.gmra.mrb[30].mxu0 %vm411_vm1, %v10449_v5 }
  0xd7   : > { %8452 = vmatprep.mubr.msk.f32.mxu0 %vm411_vm1, %v9790_v11  ;;  %v219_v11 = vld [vmem:[%s9775_s21 + $0x180] sm:$0xff] }
  0xda   : > { %8453 = vmatmul.mubr.msk.f32.vlgmr.msra.gmra.mrb[0].mxu0 %vm411_vm1, %v9792_v12  ;;  %v10516_v12 = vmax.f32 %v219_v11, 0.0  ;;  %v12637_v11 = vld [vmem:[#allocation11_spill] sm:$0xff] }
  0xdb   : > { %8501 = vmatpush3.msra.mxu0 %v10248_v24  ;;  %8455 = vmatprep.mubr.msk.f32.mxu0 %vm411_vm1, %v9798_v15  ;;  %v220_v24 = vld [vmem:[%s9775_s21 + $0x188] sm:$0xff] }
  0xdc   : > { %8550 = vmatprep.subr.mxu0 %v7275_v2  ;;  %v10521_v37 = vmax.f32 %v220_v24, 0.0  ;;  %v12638_v24 = vld [vmem:[#allocation12_spill] sm:$0xff] }
  0xde   : > { %8456 = vmatmul.mubr.msk.f32.gmra.mrb[2].mxu0 %vm411_vm1, %v9810_v23 }
  0xdf   : > { %8458 = vmatprep.mubr.msk.f32.mxu0 %vm411_vm1, %v9829_v35 }
  0xe2   : > { %8459 = vmatmul.mubr.msk.f32.gmra.mrb[4].mxu0 %vm411_vm1, %v9838_v38 }
  0xe3   : > { %8461 = vmatprep.mubr.msk.f32.mxu0 %vm411_vm1, %v9848_v42 }
  0xe6   : > { %8462 = vmatmul.mubr.msk.f32.gmra.mrb[6].mxu0 %vm411_vm1, %v9855_v46 }
  0xe7   : > { %8464 = vmatprep.mubr.msk.f32.mxu0 %vm411_vm1, %v9881_v57 }
  0xea   : > { %8465 = vmatmul.mubr.msk.f32.gmra.mrb[8].mxu0 %vm411_vm1, %v9883_v58 }
  0xeb   : > { %8467 = vmatprep.mubr.msk.f32.mxu0 %vm411_vm1, %v9897_v0 }
  0xee   : > { %8468 = vmatmul.mubr.msk.f32.gmra.mrb[10].mxu0 %vm411_vm1, %v9905_v9 }
  0xef   : > { %8470 = vmatprep.mubr.msk.f32.mxu0 %vm411_vm1, %v9921_v20 }
  0xf2   : > { %8471 = vmatmul.mubr.msk.f32.gmra.mrb[12].mxu0 %vm411_vm1, %v9923_v21 }
  0xf3   : > { %8473 = vmatprep.mubr.msk.f32.mxu0 %vm411_vm1, %v9953_v49 }
  0xf6   : > { %8474 = vmatmul.mubr.msk.f32.gmra.mrb[14].mxu0 %vm411_vm1, %v9955_v51 }
  0xf7   : > { %8476 = vmatprep.mubr.msk.f32.mxu0 %vm411_vm1, %v9977_v16 }
  0xfa   : > { %8477 = vmatmul.mubr.msk.f32.gmra.mrb[16].mxu0 %vm411_vm1, %v9979_v25 }
  0xfb   : > { %8479 = vmatprep.mubr.msk.f32.mxu0 %vm411_vm1, %v9993_v52 }
  0xfe   : > { %8480 = vmatmul.mubr.msk.f32.gmra.mrb[18].mxu0 %vm411_vm1, %v9995_v56 }
  0xff   : > { %8482 = vmatprep.mubr.msk.f32.mxu0 %vm411_vm1, %v10025_v14 }
 0x102   : > { %8483 = vmatmul.mubr.msk.f32.gmra.mrb[20].mxu0 %vm411_vm1, %v10027_v31 }
 0x103   : > { %8485 = vmatprep.mubr.msk.f32.mxu0 %vm411_vm1, %v10049_v44 }
 0x106   : > { %8486 = vmatmul.mubr.msk.f32.gmra.mrb[22].mxu0 %vm411_vm1, %v10051_v22 }
 0x107   : > { %8488 = vmatprep.mubr.msk.f32.mxu0 %vm411_vm1, %v10065_v48 }
 0x10a   : > { %8489 = vmatmul.mubr.msk.f32.gmra.mrb[24].mxu0 %vm411_vm1, %v10067_v36 }
 0x10b   : > { %8491 = vmatprep.mubr.msk.f32.mxu0 %vm411_vm1, %v10094_v60 }
 0x10e   : > { %8492 = vmatmul.mubr.msk.f32.gmra.mrb[26].mxu0 %vm411_vm1, %v10096_v26 }
 0x10f   : > { %8494 = vmatprep.mubr.msk.f32.mxu0 %vm411_vm1, %v10118_v43 }
 0x112   : > { %8495 = vmatmul.mubr.msk.f32.gmra.mrb[28].mxu0 %vm411_vm1, %v10120_v59 }
 0x113   : > { %8497 = vmatprep.mubr.msk.f32.mxu0 %vm411_vm1, %v10516_v12 }
 0x116   : > { %8498 = vmatmul.mubr.msk.f32.gmra.mrb[30].mxu0 %vm411_vm1, %v10521_v37 }
 0x117   : > { %8502 = vmatprep.mubr.msk.f32.mxu0 %vm411_vm1, %v9824_v32  ;;  %v12633_v32 = vld [vmem:[#allocation7_spill] sm:$0xff] }
 0x11a   : > { %8503 = vmatmul.mubr.msk.f32.vlgmr.msra.gmra.mrb[0].mxu0 %vm411_vm1, %v9843_v39  ;;  %v12635_v39 = vld [vmem:[#allocation9_spill] sm:$0xff] }
 0x11b   : > { %8551 = vmatpush3.msra.mxu0 %v7275_v2  ;;  %8505 = vmatprep.mubr.msk.f32.mxu0 %vm411_vm1, %v12629_v18  ;;  %v12636_v2 = vld [vmem:[#allocation10_spill] sm:$0xff] }
 0x11c   : > { %8600 = vmatprep.subr.mxu0 %v7308_v4 }
 0x11e   : > { %8506 = vmatmul.mubr.msk.f32.gmra.mrb[2].mxu0 %vm411_vm1, %v12630_v53 }
 0x11f   : > { %8508 = vmatprep.mubr.msk.f32.mxu0 %vm411_vm1, %v12631_v6  ;;  %v12644_v6 = vld [vmem:[#allocation18_spill] sm:$0xff] }
 0x122   : > { %8509 = vmatmul.mubr.msk.f32.gmra.mrb[4].mxu0 %vm411_vm1, %v12632_v19  ;;  %v12639_v19 = vld [vmem:[#allocation13_spill] sm:$0xff] }
 0x123   : > { %8511 = vmatprep.mubr.msk.f32.mxu0 %vm411_vm1, %v12633_v32  ;;  %v12640_v32 = vld [vmem:[#allocation14_spill] sm:$0xff] }
 0x126   : > { %8512 = vmatmul.mubr.msk.f32.gmra.mrb[6].mxu0 %vm411_vm1, %v12634_v40  ;;  %v12641_v40 = vld [vmem:[#allocation15_spill] sm:$0xff] }
 0x127   : > { %8514 = vmatprep.mubr.msk.f32.mxu0 %vm411_vm1, %v12635_v39  ;;  %v12642_v39 = vld [vmem:[#allocation16_spill] sm:$0xff] }
 0x12a   : > { %8515 = vmatmul.mubr.msk.f32.gmra.mrb[8].mxu0 %vm411_vm1, %v12636_v2  ;;  %v12643_v2 = vld [vmem:[#allocation17_spill] sm:$0xff] }
 0x12b   : > { %8517 = vmatprep.mubr.msk.f32.mxu0 %vm411_vm1, %v12637_v11  ;;  %v12645_v11 = vld [vmem:[#allocation19_spill] sm:$0xff] }
 0x12e   : > { %8518 = vmatmul.mubr.msk.f32.gmra.mrb[10].mxu0 %vm411_vm1, %v12638_v24  ;;  %v12646_v24 = vld [vmem:[#allocation20_spill] sm:$0xff] }
 0x12f   : > { %8520 = vmatprep.mubr.msk.f32.mxu0 %vm411_vm1, %v12639_v19  ;;  %v12647_v19 = vld [vmem:[#allocation21_spill] sm:$0xff] }
 0x132   : > { %8521 = vmatmul.mubr.msk.f32.gmra.mrb[12].mxu0 %vm411_vm1, %v12640_v32  ;;  %v12648_v32 = vld [vmem:[#allocation22_spill] sm:$0xff] }
 0x133   : > { %8523 = vmatprep.mubr.msk.f32.mxu0 %vm411_vm1, %v12641_v40  ;;  %v12649_v40 = vld [vmem:[#allocation23_spill] sm:$0xff] }
 0x136   : > { %8524 = vmatmul.mubr.msk.f32.gmra.mrb[14].mxu0 %vm411_vm1, %v12642_v39 }
 0x137   : > { %8526 = vmatprep.mubr.msk.f32.mxu0 %vm411_vm1, %v12643_v2  ;;  %v12652_v2 = vld [vmem:[#allocation28_spill] sm:$0xff] }
 0x13a   : > { %8527 = vmatmul.mubr.msk.f32.gmra.mrb[16].mxu0 %vm411_vm1, %v12644_v6  ;;  %v221_v6 = vld [vmem:[%s9775_s21 + $0x190] sm:$0x3] }
 0x13b   : > { %8529 = vmatprep.mubr.msk.f32.mxu0 %vm411_vm1, %v12645_v11  ;;  %v12650_v11 = vld [vmem:[#allocation26_spill] sm:$0xff] }
 0x13e   : > { %8530 = vmatmul.mubr.msk.f32.gmra.mrb[18].mxu0 %vm411_vm1, %v12646_v24  ;;  %v1660_v24 = vrot.slane %v10516_v12, 1 }
 0x13f   : > { %8532 = vmatprep.mubr.msk.f32.mxu0 %vm411_vm1, %v12647_v19  ;;  %v275_v19 = vmax.f32 %v221_v6, 0.0 }
 0x142   : > { %8533 = vmatmul.mubr.msk.f32.gmra.mrb[20].mxu0 %vm411_vm1, %v12648_v32  ;;  %v1661_v32 = vrot.slane %v10521_v37, 1 }
 0x143   : > { %8535 = vmatprep.mubr.msk.f32.mxu0 %vm411_vm1, %v12649_v40  ;;  %v12651_v40 = vld [vmem:[#allocation27_spill] sm:$0xff] }
 0x146   : > { %8536 = vmatmul.mubr.msk.f32.gmra.mrb[22].mxu0 %vm411_vm1, %v10108_v7  ;;  %v1663_v7 = vrot.slane %v275_v19, 1 }
 0x147   : > { %8538 = vmatprep.mubr.msk.f32.mxu0 %vm411_vm1, %v10111_v41  ;;  %v10592_v41 = vsel %vm328_vm0, %v1660_v24, %v1661_v32  ;;  %v7341_v24 = vld [vmem:[%s12417_s1 + $0x38] sm:$0xff] }
 0x148   : > { %v10599_v6 = vsel %vm328_vm0, %v1661_v32, %v1663_v7  ;;  %v12653_v7 = vld [vmem:[#allocation29_spill] sm:$0xff] }
 0x149   : > { %v12657_v32 = vld [vmem:[#allocation33_spill] sm:$0xff] }
 0x14a   : > { %8539 = vmatmul.mubr.msk.f32.gmra.mrb[24].mxu0 %vm411_vm1, %v10130_v28 }
 0x14b   : > { %8541 = vmatprep.mubr.msk.f32.mxu0 %vm411_vm1, %v10136_v33 }
 0x14e   : > { %8542 = vmatmul.mubr.msk.f32.gmra.mrb[26].mxu0 %vm411_vm1, %v12650_v11 }
 0x14f   : > { %8544 = vmatprep.mubr.msk.f32.mxu0 %vm411_vm1, %v12651_v40 }
 0x152   : > { %8545 = vmatmul.mubr.msk.f32.gmra.mrb[28].mxu0 %vm411_vm1, %v12652_v2 }
 0x153   : > { %8547 = vmatprep.mubr.msk.f32.mxu0 %vm411_vm1, %v10592_v41 }
 0x156   : > { %8548 = vmatmul.mubr.msk.f32.gmra.mrb[30].mxu0 %vm411_vm1, %v10599_v6 }
 0x157   : > { %8552 = vmatprep.mubr.msk.f32.mxu0 %vm411_vm1, %v10241_v63  ;;  %v12654_v63 = vld [vmem:[#allocation30_spill] sm:$0xff] }
 0x15a   : > { %8553 = vmatmul.mubr.msk.f32.vlgmr.msra.gmra.mrb[0].mxu0 %vm411_vm1, %v10254_v13  ;;  %v12655_v13 = vld [vmem:[#allocation31_spill] sm:$0xff] }
 0x15b   : > { %8601 = vmatpush3.msra.mxu0 %v7308_v4  ;;  %8555 = vmatprep.mubr.msk.f32.mxu0 %vm411_vm1, %v10259_v62  ;;  %v12656_v4 = vld [vmem:[#allocation32_spill] sm:$0xff] }
 0x15c   : > { %8650 = vmatprep.subr.mxu0 %v7341_v24 }
 0x15e   : > { %8556 = vmatmul.mubr.msk.f32.gmra.mrb[2].mxu0 %vm411_vm1, %v10269_v55 }
 0x15f   : > { %8558 = vmatprep.mubr.msk.f32.mxu0 %vm411_vm1, %v12653_v7 }
 0x162   : > { %8559 = vmatmul.mubr.msk.f32.gmra.mrb[4].mxu0 %vm411_vm1, %v10283_v8 }
 0x163   : > { %8561 = vmatprep.mubr.msk.f32.mxu0 %vm411_vm1, %v12654_v63  ;;  %v12658_v63 = vld [vmem:[#allocation34_spill] sm:$0xff] }
 0x166   : > { %8562 = vmatmul.mubr.msk.f32.gmra.mrb[6].mxu0 %vm411_vm1, %v10297_v1 }
 0x167   : > { %8564 = vmatprep.mubr.msk.f32.mxu0 %vm411_vm1, %v12655_v13  ;;  %v12659_v13 = vld [vmem:[#allocation35_spill] sm:$0xff] }
 0x16a   : > { %8565 = vmatmul.mubr.msk.f32.gmra.mrb[8].mxu0 %vm411_vm1, %v10311_v17 }
 0x16b   : > { %8567 = vmatprep.mubr.msk.f32.mxu0 %vm411_vm1, %v12656_v4  ;;  %v12660_v4 = vld [vmem:[#allocation36_spill] sm:$0xff] }
 0x16e   : > { %8568 = vmatmul.mubr.msk.f32.gmra.mrb[10].mxu0 %vm411_vm1, %v10325_v50 }
 0x16f   : > { %8570 = vmatprep.mubr.msk.f32.mxu0 %vm411_vm1, %v12657_v32  ;;  %v12661_v32 = vld [vmem:[#allocation38_spill] sm:$0xff] }
 0x172   : > { %8571 = vmatmul.mubr.msk.f32.gmra.mrb[12].mxu0 %vm411_vm1, %v10339_v30 }
 0x173   : > { %8573 = vmatprep.mubr.msk.f32.mxu0 %vm411_vm1, %v12658_v63  ;;  %v12662_v63 = vld [vmem:[#allocation39_spill] sm:$0xff] }
 0x176   : > { %8574 = vmatmul.mubr.msk.f32.gmra.mrb[14].mxu0 %vm411_vm1, %v10353_v47 }
 0x177   : > { %8576 = vmatprep.mubr.msk.f32.mxu0 %vm411_vm1, %v12659_v13  ;;  %v12663_v13 = vld [vmem:[#allocation41_spill] sm:$0xff] }
 0x17a   : > { %8577 = vmatmul.mubr.msk.f32.gmra.mrb[16].mxu0 %vm411_vm1, %v10367_v54 }
 0x17b   : > { %8579 = vmatprep.mubr.msk.f32.mxu0 %vm411_vm1, %v12660_v4 }
 0x17e   : > { %8580 = vmatmul.mubr.msk.f32.gmra.mrb[18].mxu0 %vm411_vm1, %v10381_v10  ;;  %v1929_v10 = vrot.slane %v10521_v37, 2 }
 0x17f   : > { %8582 = vmatprep.mubr.msk.f32.mxu0 %vm411_vm1, %v12661_v32  ;;  %v1928_v32 = vrot.slane %v10516_v12, 2 }
 0x182   : > { %8583 = vmatmul.mubr.msk.f32.gmra.mrb[20].mxu0 %vm411_vm1, %v10395_v27 }
 0x183   : > { %8585 = vmatprep.mubr.msk.f32.mxu0 %vm411_vm1, %v12662_v63  ;;  %v10667_v63 = vsel %vm990_vm2, %v1928_v32, %v1929_v10 }
 0x186   : > { %8586 = vmatmul.mubr.msk.f32.gmra.mrb[22].mxu0 %vm411_vm1, %v10409_v45  ;;  %v1931_v45 = vrot.slane %v275_v19, 2  ;;  %v7374_v19 = vld [vmem:[%s12417_s1 + $0x40] sm:$0xff] }
 0x187   : > { %8588 = vmatprep.mubr.msk.f32.mxu0 %vm411_vm1, %v12663_v13 }
 0x18a   : > { %8589 = vmatmul.mubr.msk.f32.gmra.mrb[24].mxu0 %vm411_vm1, %v10423_v3 }
 0x18b   : > { %8591 = vmatprep.mubr.msk.f32.mxu0 %vm411_vm1, %v10428_v29  ;;  %v10674_v29 = vsel %vm990_vm2, %v1929_v10, %v1931_v45  ;;  %v12685_v45 = vld [vmem:[#allocation31_spill] sm:$0xff] }
 0x18e   : > { %8592 = vmatmul.mubr.msk.f32.gmra.mrb[26].mxu0 %vm411_vm1, %v10437_v61 }
 0x18f   : > { %8594 = vmatprep.mubr.msk.f32.mxu0 %vm411_vm1, %v10442_v34 }
 0x192   : > { %8595 = vmatmul.mubr.msk.f32.gmra.mrb[28].mxu0 %vm411_vm1, %v10449_v5 }
 0x193   : > { %8597 = vmatprep.mubr.msk.f32.mxu0 %vm411_vm1, %v10667_v63 }
 0x196   : > { %8598 = vmatmul.mubr.msk.f32.gmra.mrb[30].mxu0 %vm411_vm1, %v10674_v29 }
 0x197   : > { %8602 = vmatprep.mubr.msk.f32.mxu0 %vm411_vm1, %v9798_v15  ;;  %v222_v15 = vld [vmem:[%s9775_s21 + $0x198] sm:$0xff] }
 0x19a   : > { %8603 = vmatmul.mubr.msk.f32.vlgmr.msra.gmra.mrb[0].mxu0 %vm411_vm1, %v9810_v23  ;;  %v223_v23 = vld [vmem:[%s9775_s21 + $0x1a0] sm:$0xff] }
 0x19b   : > { %8651 = vmatpush3.msra.mxu0 %v7341_v24  ;;  %8605 = vmatprep.mubr.msk.f32.mxu0 %vm411_vm1, %v9829_v35  ;;  %v10745_v35 = vmax.f32 %v223_v23, 0.0 }
 0x19c   : > { %8700 = vmatprep.subr.mxu0 %v7374_v19 }
 0x19e   : > { %8606 = vmatmul.mubr.msk.f32.gmra.mrb[2].mxu0 %vm411_vm1, %v9838_v38  ;;  %v12664_v38 = vld [vmem:[#allocation5_spill] sm:$0xff] }
 0x19f   : > { %8608 = vmatprep.mubr.msk.f32.mxu0 %vm411_vm1, %v9848_v42  ;;  %v12665_v42 = vld [vmem:[#allocation6_spill] sm:$0xff] }
 0x1a2   : > { %8609 = vmatmul.mubr.msk.f32.gmra.mrb[4].mxu0 %vm411_vm1, %v9855_v46  ;;  %v12667_v46 = vld [vmem:[#allocation8_spill] sm:$0xff] }
 0x1a3   : > { %8611 = vmatprep.mubr.msk.f32.mxu0 %vm411_vm1, %v9881_v57  ;;  %v12668_v57 = vld [vmem:[#allocation9_spill] sm:$0xff] }
 0x1a6   : > { %8612 = vmatmul.mubr.msk.f32.gmra.mrb[6].mxu0 %vm411_vm1, %v9883_v58  ;;  %v12669_v58 = vld [vmem:[#allocation10_spill] sm:$0xff] }
 0x1a7   : > { %8614 = vmatprep.mubr.msk.f32.mxu0 %vm411_vm1, %v9897_v0  ;;  %v12670_v0 = vld [vmem:[#allocation11_spill] sm:$0xff] }
 0x1aa   : > { %8615 = vmatmul.mubr.msk.f32.gmra.mrb[8].mxu0 %vm411_vm1, %v9905_v9  ;;  %v12671_v9 = vld [vmem:[#allocation12_spill] sm:$0xff] }
 0x1ab   : > { %8617 = vmatprep.mubr.msk.f32.mxu0 %vm411_vm1, %v9921_v20  ;;  %v12672_v20 = vld [vmem:[#allocation13_spill] sm:$0xff] }
 0x1ae   : > { %8618 = vmatmul.mubr.msk.f32.gmra.mrb[10].mxu0 %vm411_vm1, %v9923_v21  ;;  %v12673_v21 = vld [vmem:[#allocation14_spill] sm:$0xff] }
 0x1af   : > { %8620 = vmatprep.mubr.msk.f32.mxu0 %vm411_vm1, %v9953_v49  ;;  %v12676_v49 = vld [vmem:[#allocation18_spill] sm:$0xff] }
 0x1b2   : > { %8621 = vmatmul.mubr.msk.f32.gmra.mrb[12].mxu0 %vm411_vm1, %v9955_v51  ;;  %v12677_v51 = vld [vmem:[#allocation19_spill] sm:$0xff] }
 0x1b3   : > { %8623 = vmatprep.mubr.msk.f32.mxu0 %vm411_vm1, %v9977_v16  ;;  %v12679_v16 = vld [vmem:[#allocation21_spill] sm:$0xff] }
 0x1b6   : > { %8624 = vmatmul.mubr.msk.f32.gmra.mrb[14].mxu0 %vm411_vm1, %v9979_v25  ;;  %v12680_v25 = vld [vmem:[#allocation22_spill] sm:$0xff] }
 0x1b7   : > { %8626 = vmatprep.mubr.msk.f32.mxu0 %vm411_vm1, %v9993_v52  ;;  %v12681_v52 = vld [vmem:[#allocation23_spill] sm:$0xff] }
 0x1ba   : > { %8627 = vmatmul.mubr.msk.f32.gmra.mrb[16].mxu0 %vm411_vm1, %v9995_v56  ;;  %v12682_v56 = vld [vmem:[#allocation24_spill] sm:$0xff] }
 0x1bb   : > { %8629 = vmatprep.mubr.msk.f32.mxu0 %vm411_vm1, %v10025_v14  ;;  %v12683_v14 = vld [vmem:[#allocation25_spill] sm:$0xff] }
 0x1be   : > { %8630 = vmatmul.mubr.msk.f32.gmra.mrb[18].mxu0 %vm411_vm1, %v10027_v31  ;;  %v224_v31 = vld [vmem:[%s9775_s21 + $0x1a8] sm:$0x3] }
 0x1bf   : > { %8632 = vmatprep.mubr.msk.f32.mxu0 %vm411_vm1, %v10049_v44  ;;  %v12674_v44 = vld [vmem:[#allocation15_spill] sm:$0xff] }
 0x1c2   : > { %8633 = vmatmul.mubr.msk.f32.gmra.mrb[20].mxu0 %vm411_vm1, %v10051_v22  ;;  %v10740_v22 = vmax.f32 %v222_v15, 0.0 }
 0x1c3   : > { %8635 = vmatprep.mubr.msk.f32.mxu0 %vm411_vm1, %v10065_v48  ;;  %v12675_v48 = vld [vmem:[#allocation17_spill] sm:$0xff] }
 0x1c6   : > { %8636 = vmatmul.mubr.msk.f32.gmra.mrb[22].mxu0 %vm411_vm1, %v10067_v36  ;;  %v278_v36 = vmax.f32 %v224_v31, 0.0 }
 0x1c7   : > { %8638 = vmatprep.mubr.msk.f32.mxu0 %vm411_vm1, %v10094_v60  ;;  %v12678_v60 = vld [vmem:[#allocation20_spill] sm:$0xff] }
 0x1ca   : > { %8639 = vmatmul.mubr.msk.f32.gmra.mrb[24].mxu0 %vm411_vm1, %v10096_v26  ;;  %v2463_v26 = vrot.slane %v10745_v35, 1 }
 0x1cb   : > { %8641 = vmatprep.mubr.msk.f32.mxu0 %vm411_vm1, %v10118_v43  ;;  %v12666_v43 = vld [vmem:[#allocation7_spill] sm:$0xff] }
 0x1ce   : > { %8642 = vmatmul.mubr.msk.f32.gmra.mrb[26].mxu0 %vm411_vm1, %v10120_v59  ;;  %v2462_v59 = vrot.slane %v10740_v22, 1 }
 0x1cf   : > { %8644 = vmatprep.mubr.msk.f32.mxu0 %vm411_vm1, %v10516_v12  ;;  %v2731_v12 = vrot.slane %v10745_v35, 2 }
 0x1d2   : > { %8645 = vmatmul.mubr.msk.f32.gmra.mrb[28].mxu0 %vm411_vm1, %v10521_v37 }
 0x1d3   : > { %8647 = vmatprep.mubr.msk.f32.mxu0 %vm411_vm1, %v10740_v22 }
 0x1d6   : > { %8648 = vmatmul.mubr.msk.f32.gmra.mrb[30].mxu0 %vm411_vm1, %v10745_v35 }
 0x1d7   : > { %8652 = vmatprep.mubr.msk.f32.mxu0 %vm411_vm1, %v12629_v18 }
 0x1da   : > { %8653 = vmatmul.mubr.msk.f32.vlgmr.msra.gmra.mrb[0].mxu0 %vm411_vm1, %v12630_v53 }
 0x1db   : > { %8701 = vmatpush3.msra.mxu0 %v7374_v19  ;;  %8655 = vmatprep.mubr.msk.f32.mxu0 %vm411_vm1, %v12664_v38 }
 0x1de   : > { %8656 = vmatmul.mubr.msk.f32.gmra.mrb[2].mxu0 %vm411_vm1, %v12665_v42 }
 0x1df   : > { %8658 = vmatprep.mubr.msk.f32.mxu0 %vm411_vm1, %v12666_v43 }
 0x1e2   : > { %8659 = vmatmul.mubr.msk.f32.gmra.mrb[4].mxu0 %vm411_vm1, %v12667_v46 }
 0x1e3   : > { %8661 = vmatprep.mubr.msk.f32.mxu0 %vm411_vm1, %v12668_v57 }
 0x1e6   : > { %8662 = vmatmul.mubr.msk.f32.gmra.mrb[6].mxu0 %vm411_vm1, %v12669_v58 }
 0x1e7   : > { %8664 = vmatprep.mubr.msk.f32.mxu0 %vm411_vm1, %v12670_v0 }
 0x1ea   : > { %8665 = vmatmul.mubr.msk.f32.gmra.mrb[8].mxu0 %vm411_vm1, %v12671_v9 }
 0x1eb   : > { %8667 = vmatprep.mubr.msk.f32.mxu0 %vm411_vm1, %v12672_v20 }
 0x1ee   : > { %8668 = vmatmul.mubr.msk.f32.gmra.mrb[10].mxu0 %vm411_vm1, %v12673_v21 }
 0x1ef   : > { %8670 = vmatprep.mubr.msk.f32.mxu0 %vm411_vm1, %v12674_v44 }
 0x1f2   : > { %8671 = vmatmul.mubr.msk.f32.gmra.mrb[12].mxu0 %vm411_vm1, %v12642_v39 }
 0x1f3   : > { %8673 = vmatprep.mubr.msk.f32.mxu0 %vm411_vm1, %v12675_v48 }
 0x1f6   : > { %8674 = vmatmul.mubr.msk.f32.gmra.mrb[14].mxu0 %vm411_vm1, %v12676_v49 }
 0x1f7   : > { %8676 = vmatprep.mubr.msk.f32.mxu0 %vm411_vm1, %v12677_v51 }
 0x1fa   : > { %8677 = vmatmul.mubr.msk.f32.gmra.mrb[16].mxu0 %vm411_vm1, %v12678_v60 }
 0x1fb   : > { %8679 = vmatprep.mubr.msk.f32.mxu0 %vm411_vm1, %v12679_v16 }
 0x1fe   : > { %8680 = vmatmul.mubr.msk.f32.gmra.mrb[18].mxu0 %vm411_vm1, %v12680_v25 }
 0x1ff   : > { %8682 = vmatprep.mubr.msk.f32.mxu0 %vm411_vm1, %v12681_v52 }
 0x202   : > { %8683 = vmatmul.mubr.msk.f32.gmra.mrb[20].mxu0 %vm411_vm1, %v12682_v56 }
 0x203   : > { %8685 = vmatprep.mubr.msk.f32.mxu0 %vm411_vm1, %v12683_v14 }
 0x206   : > { %8686 = vmatmul.mubr.msk.f32.gmra.mrb[22].mxu0 %vm411_vm1, %v10130_v28  ;;  %v2465_v28 = vrot.slane %v278_v36, 1 }
 0x207   : > { %8688 = vmatprep.mubr.msk.f32.mxu0 %vm411_vm1, %v10136_v33  ;;  %v2464_v33 = vsel %vm328_vm0, %v2462_v59, %v2463_v26 }
 0x208   : > { %v2466_v10 = vsel %vm328_vm0, %v2463_v26, %v2465_v28 }
 0x20a   : > { %8689 = vmatmul.mubr.msk.f32.gmra.mrb[24].mxu0 %vm411_vm1, %v12650_v11 }
 0x20b   : > { %8691 = vmatprep.mubr.msk.f32.mxu0 %vm411_vm1, %v12651_v40 }
 0x20e   : > { %8692 = vmatmul.mubr.msk.f32.gmra.mrb[26].mxu0 %vm411_vm1, %v12652_v2 }
 0x20f   : > { %8694 = vmatprep.mubr.msk.f32.mxu0 %vm411_vm1, %v10592_v41  ;;  %v12684_v41 = vld [vmem:[#allocation30_spill] sm:$0xff] }
 0x212   : > { %8695 = vmatmul.mubr.msk.f32.gmra.mrb[28].mxu0 %vm411_vm1, %v10599_v6 }
 0x213   : > { %8697 = vmatprep.mubr.msk.f32.mxu0 %vm411_vm1, %v2464_v33 }
 0x216   : > { %8698 = vmatmul.mubr.msk.f32.gmra.mrb[30].mxu0 %vm411_vm1, %v2466_v10 }
 0x217   : > { %8702 = vmatprep.mubr.msk.f32.mxu0 %vm411_vm1, %v10259_v62  ;;  %v12686_v62 = vld [vmem:[#allocation32_spill] sm:$0xff] }
 0x21a   : > { %8703 = vmatmul.mubr.msk.f32.vlgmr.msra.gmra.mrb[0].mxu0 %vm411_vm1, %v10269_v55  ;;  %v12687_v55 = vld [vmem:[#allocation33_spill] sm:$0xff] }
 0x21b   : > { %8705 = vmatprep.mubr.msk.f32.mxu0 %vm411_vm1, %v12653_v7 }
 0x21e   : > { %8706 = vmatmul.mubr.msk.f32.gmra.mrb[2].mxu0 %vm411_vm1, %v10283_v8  ;;  %v12688_v8 = vld [vmem:[#allocation34_spill] sm:$0xff] }
 0x21f   : > { %8708 = vmatprep.mubr.msk.f32.mxu0 %vm411_vm1, %v12684_v41 }
 0x222   : > { %8709 = vmatmul.mubr.msk.f32.gmra.mrb[4].mxu0 %vm411_vm1, %v10297_v1  ;;  %v12689_v1 = vld [vmem:[#allocation35_spill] sm:$0xff] }
 0x223   : > { %8711 = vmatprep.mubr.msk.f32.mxu0 %vm411_vm1, %v12685_v45 }
 0x226   : > { %8712 = vmatmul.mubr.msk.f32.gmra.mrb[6].mxu0 %vm411_vm1, %v10311_v17  ;;  %v12690_v17 = vld [vmem:[#allocation37_spill] sm:$0xff] }
 0x227   : > { %8714 = vmatprep.mubr.msk.f32.mxu0 %vm411_vm1, %v12686_v62 }
 0x22a   : > { %8715 = vmatmul.mubr.msk.f32.gmra.mrb[8].mxu0 %vm411_vm1, %v10325_v50  ;;  %v12691_v50 = vld [vmem:[#allocation38_spill] sm:$0xff] }
 0x22b   : > { %8717 = vmatprep.mubr.msk.f32.mxu0 %vm411_vm1, %v12687_v55 }
 0x22e   : > { %8718 = vmatmul.mubr.msk.f32.gmra.mrb[10].mxu0 %vm411_vm1, %v10339_v30  ;;  %v12692_v30 = vld [vmem:[#allocation39_spill] sm:$0xff] }
 0x22f   : > { %8720 = vmatprep.mubr.msk.f32.mxu0 %vm411_vm1, %v12688_v8 }
 0x232   : > { %8721 = vmatmul.mubr.msk.f32.gmra.mrb[12].mxu0 %vm411_vm1, %v10353_v47  ;;  %v12693_v47 = vld [vmem:[#allocation40_spill] sm:$0xff] }
 0x233   : > { %8723 = vmatprep.mubr.msk.f32.mxu0 %vm411_vm1, %v12689_v1 }
 0x236   : > { %8724 = vmatmul.mubr.msk.f32.gmra.mrb[14].mxu0 %vm411_vm1, %v10367_v54  ;;  %v12694_v54 = vld [vmem:[#allocation42_spill] sm:$0xff] }
 0x237   : > { %8726 = vmatprep.mubr.msk.f32.mxu0 %vm411_vm1, %v12660_v4 }
 0x23a   : > { %8727 = vmatmul.mubr.msk.f32.gmra.mrb[16].mxu0 %vm411_vm1, %v12690_v17 }
 0x23b   : > { %8729 = vmatprep.mubr.msk.f32.mxu0 %vm411_vm1, %v12691_v50 }
 0x23e   : > { %8730 = vmatmul.mubr.msk.f32.gmra.mrb[18].mxu0 %vm411_vm1, %v10395_v27  ;;  %v2730_v27 = vrot.slane %v10740_v22, 2 }
 0x23f   : > { %8732 = vmatprep.mubr.msk.f32.mxu0 %vm411_vm1, %v12692_v30 }
 0x240   : > { %v2732_v37 = vsel %vm990_vm2, %v2730_v27, %v2731_v12 }
 0x242   : > { %8733 = vmatmul.mubr.msk.f32.gmra.mrb[20].mxu0 %vm411_vm1, %v12693_v47 }
 0x243   : > { %8735 = vmatprep.mubr.msk.f32.mxu0 %vm411_vm1, %v12663_v13 }
 0x246   : > { %8736 = vmatmul.mubr.msk.f32.gmra.mrb[22].mxu0 %vm411_vm1, %v10423_v3  ;;  %v2733_v3 = vrot.slane %v278_v36, 2 }
 0x247   : > { %8738 = vmatprep.mubr.msk.f32.mxu0 %vm411_vm1, %v12694_v54 }
 0x24a   : > { %8739 = vmatmul.mubr.msk.f32.gmra.mrb[24].mxu0 %vm411_vm1, %v10437_v61  ;;  %v2734_v61 = vsel %vm990_vm2, %v2731_v12, %v2733_v3 }
 0x24b   : > { %8741 = vmatprep.mubr.msk.f32.mxu0 %vm411_vm1, %v10442_v34  ;;  %v9734_v34 = vmov 0.0  }
 0x24c   : > { %3242 = vst.msk [vmem:[#allocation2 + $0x20] sm:$0xff] %vm411_vm1, %v9734_v34  ;;  %3237 = vst.msk [vmem:[#allocation2] sm:$0xff] %vm411_vm1, %v9734_v34 }
 0x24d   : > { %3243 = vst.msk [vmem:[#allocation2 + $0x28] sm:$0x3] %vm3239_vm3, %v9734_v34  ;;  %3240 = vst.msk [vmem:[#allocation2 + $0x10] sm:$0x3] %vm3239_vm3, %v9734_v34 }
 0x24e   : > { %8742 = vmatmul.mubr.msk.f32.gmra.mrb[26].mxu0 %vm411_vm1, %v10449_v5  ;;  %3238 = vst.msk [vmem:[#allocation2 + $0x8] sm:$0xff] %vm411_vm1, %v9734_v34  ;;  %3241 = vst.msk [vmem:[#allocation2 + $0x18] sm:$0xff] %vm411_vm1, %v9734_v34 }
 0x24f   : > { %8744 = vmatprep.mubr.msk.f32.mxu0 %vm411_vm1, %v10667_v63  ;;  %3244 = vst.msk [vmem:[#allocation2 + $0x30] sm:$0xff] %vm411_vm1, %v9734_v34  ;;  %3245 = vst.msk [vmem:[#allocation2 + $0x38] sm:$0xff] %vm411_vm1, %v9734_v34 }
 0x250   : > { %3246 = vst.msk [vmem:[#allocation2 + $0x40] sm:$0x3] %vm3239_vm3, %v9734_v34  ;;  %3249 = vst.msk [vmem:[#allocation2 + $0x58] sm:$0x3] %vm3239_vm3, %v9734_v34 }
 0x251   : > { %3247 = vst.msk [vmem:[#allocation2 + $0x48] sm:$0xff] %vm411_vm1, %v9734_v34  ;;  %3248 = vst.msk [vmem:[#allocation2 + $0x50] sm:$0xff] %vm411_vm1, %v9734_v34 }
 0x252   : > { %8745 = vmatmul.mubr.msk.f32.gmra.mrb[28].mxu0 %vm411_vm1, %v10674_v29  ;;  %3250 = vst.msk [vmem:[#allocation2 + $0x60] sm:$0xff] %vm411_vm1, %v9734_v34  ;;  %3251 = vst.msk [vmem:[#allocation2 + $0x68] sm:$0xff] %vm411_vm1, %v9734_v34 }
 0x253   : > { %8747 = vmatprep.mubr.msk.f32.mxu0 %vm411_vm1, %v2732_v37  ;;  %3252 = vst.msk [vmem:[#allocation2 + $0x70] sm:$0x3] %vm3239_vm3, %v9734_v34  ;;  %3255 = vst.msk [vmem:[#allocation2 + $0x88] sm:$0x3] %vm3239_vm3, %v9734_v34 }
 0x254   : > { %3253 = vst.msk [vmem:[#allocation2 + $0x78] sm:$0xff] %vm411_vm1, %v9734_v34  ;;  %3254 = vst.msk [vmem:[#allocation2 + $0x80] sm:$0xff] %vm411_vm1, %v9734_v34 }
 0x255   : > { %3256 = vst.msk [vmem:[#allocation2 + $0x90] sm:$0xff] %vm411_vm1, %v9734_v34  ;;  %3257 = vst.msk [vmem:[#allocation2 + $0x98] sm:$0xff] %vm411_vm1, %v9734_v34 }
 0x256   : > { %8748 = vmatmul.mubr.msk.f32.gmra.mrb[30].mxu0 %vm411_vm1, %v2734_v61  ;;  %3258 = vst.msk [vmem:[#allocation2 + $0xa0] sm:$0x3] %vm3239_vm3, %v9734_v34  ;;  %3261 = vst.msk [vmem:[#allocation2 + $0xb8] sm:$0x3] %vm3239_vm3, %v9734_v34 }
 0x257   : > { %3259 = vst.msk [vmem:[#allocation2 + $0xa8] sm:$0xff] %vm411_vm1, %v9734_v34  ;;  %3260 = vst.msk [vmem:[#allocation2 + $0xb0] sm:$0xff] %vm411_vm1, %v9734_v34 }
 0x258   : > { %3262 = vst.msk [vmem:[#allocation2 + $0xc0] sm:$0xff] %vm411_vm1, %v9734_v34  ;;  %3263 = vst.msk [vmem:[#allocation2 + $0xc8] sm:$0xff] %vm411_vm1, %v9734_v34 }
 0x259   : > { %3264 = vst.msk [vmem:[#allocation2 + $0xd0] sm:$0x3] %vm3239_vm3, %v9734_v34  ;;  %3267 = vst.msk [vmem:[#allocation2 + $0xe8] sm:$0x3] %vm3239_vm3, %v9734_v34 }
 0x25a   : > { %3265 = vst.msk [vmem:[#allocation2 + $0xd8] sm:$0xff] %vm411_vm1, %v9734_v34  ;;  %3266 = vst.msk [vmem:[#allocation2 + $0xe0] sm:$0xff] %vm411_vm1, %v9734_v34 }
 0x25b   : > { %3268 = vst.msk [vmem:[#allocation2 + $0xf0] sm:$0xff] %vm411_vm1, %v9734_v34  ;;  %3269 = vst.msk [vmem:[#allocation2 + $0xf8] sm:$0xff] %vm411_vm1, %v9734_v34 }
 0x25c   : > { %3270 = vst.msk [vmem:[#allocation2 + $0x100] sm:$0x3] %vm3239_vm3, %v9734_v34  ;;  %3273 = vst.msk [vmem:[#allocation2 + $0x118] sm:$0x3] %vm3239_vm3, %v9734_v34 }
 0x25d   : > { %3271 = vst.msk [vmem:[#allocation2 + $0x108] sm:$0xff] %vm411_vm1, %v9734_v34  ;;  %3272 = vst.msk [vmem:[#allocation2 + $0x110] sm:$0xff] %vm411_vm1, %v9734_v34 }
 0x25e   : > { %3274 = vst.msk [vmem:[#allocation2 + $0x120] sm:$0xff] %vm411_vm1, %v9734_v34  ;;  %3275 = vst.msk [vmem:[#allocation2 + $0x128] sm:$0xff] %vm411_vm1, %v9734_v34 }
 0x25f   : > { %3276 = vst.msk [vmem:[#allocation2 + $0x130] sm:$0x3] %vm3239_vm3, %v9734_v34  ;;  %3279 = vst.msk [vmem:[#allocation2 + $0x148] sm:$0x3] %vm3239_vm3, %v9734_v34 }
 0x260   : > { %3277 = vst.msk [vmem:[#allocation2 + $0x138] sm:$0xff] %vm411_vm1, %v9734_v34  ;;  %3278 = vst.msk [vmem:[#allocation2 + $0x140] sm:$0xff] %vm411_vm1, %v9734_v34 }
 0x261   : > { %3280 = vst.msk [vmem:[#allocation2 + $0x150] sm:$0xff] %vm411_vm1, %v9734_v34  ;;  %3281 = vst.msk [vmem:[#allocation2 + $0x158] sm:$0xff] %vm411_vm1, %v9734_v34 }
 0x262   : > { %3282 = vst.msk [vmem:[#allocation2 + $0x160] sm:$0x3] %vm3239_vm3, %v9734_v34  ;;  %3285 = vst.msk [vmem:[#allocation2 + $0x178] sm:$0x3] %vm3239_vm3, %v9734_v34 }
 0x263   : > { %3283 = vst.msk [vmem:[#allocation2 + $0x168] sm:$0xff] %vm411_vm1, %v9734_v34  ;;  %3284 = vst.msk [vmem:[#allocation2 + $0x170] sm:$0xff] %vm411_vm1, %v9734_v34 }
 0x264   : > { %3286 = vst.msk [vmem:[#allocation2 + $0x180] sm:$0xff] %vm411_vm1, %v9734_v34  ;;  %3287 = vst.msk [vmem:[#allocation2 + $0x188] sm:$0xff] %vm411_vm1, %v9734_v34 }
 0x265   : > { %3288 = vst.msk [vmem:[#allocation2 + $0x190] sm:$0x3] %vm3239_vm3, %v9734_v34  ;;  %3291 = vst.msk [vmem:[#allocation2 + $0x1a8] sm:$0x3] %vm3239_vm3, %v9734_v34 }
 0x266   : > { %3289 = vst.msk [vmem:[#allocation2 + $0x198] sm:$0xff] %vm411_vm1, %v9734_v34  ;;  %3290 = vst.msk [vmem:[#allocation2 + $0x1a0] sm:$0xff] %vm411_vm1, %v9734_v34 }
 0x2ed   : > { %v10938_v29 = vpop.f32.mrb[0].mxu0 }
 0x2ee   : > { %v2999_v5 = vsel %vm411_vm1, %v10938_v29, 0.0  ;;  %v10942_v18 = vpop.f32.mrb[1].mxu0 }
 0x2ef   : > { %v2998_v53 = vsel %vm411_vm1, %v10942_v18, 0.0 }
 0x2f0   : > { %v3000_v40 = vadd.f32 %v2999_v5, %v2998_v53 }
 0x2f1   : > { %v10946_v39 = vpop.f32.mrb[2].mxu0 }
 0x2f2   : > { %v10948_v2 = vpop.f32.mrb[3].mxu0  ;;  %v3003_v24 = vsel %vm411_vm1, %v10946_v39, 0.0 }
 0x2f3   : > { %v3001_v11 = vsel %vm411_vm1, %v10948_v2, 0.0 }
 0x2f4   : > { %v3002_v6 = vadd.f32 %v3001_v11, %v3000_v40 }
 0x2f5   : > { %v10954_v7 = vpop.f32.mrb[4].mxu0 }
 0x2f6   : > { %v10956_v63 = vpop.f32.mrb[5].mxu0  ;;  %v3004_v13 = vadd.f32 %v3003_v24, %v3002_v6  ;;  %v3007_v19 = vsel %vm411_vm1, %v10954_v7, 0.0 }
 0x2f7   : > { %v3005_v4 = vsel %vm411_vm1, %v10956_v63, 0.0 }
 0x2f8   : > { %v3006_v32 = vadd.f32 %v3005_v4, %v3004_v13 }
 0x2f9   : > { %v10962_v15 = vpop.f32.mrb[6].mxu0 }
 0x2fa   : > { %v10964_v22 = vpop.f32.mrb[7].mxu0  ;;  %v3008_v23 = vadd.f32 %v3007_v19, %v3006_v32  ;;  %v3011_v42 = vsel %vm411_vm1, %v10962_v15, 0.0 }
 0x2fb   : > { %v3009_v35 = vsel %vm411_vm1, %v10964_v22, 0.0 }
 0x2fc   : > { %v3010_v38 = vadd.f32 %v3009_v35, %v3008_v23 }
 0x2fd   : > { %v10970_v43 = vpop.f32.mrb[8].mxu0 }
 0x2fe   : > { %v10972_v46 = vpop.f32.mrb[9].mxu0  ;;  %v3012_v57 = vadd.f32 %v3011_v42, %v3010_v38  ;;  %v3015_v9 = vsel %vm411_vm1, %v10970_v43, 0.0 }
 0x2ff   : > { %v3013_v58 = vsel %vm411_vm1, %v10972_v46, 0.0 }
 0x300   : > { %v3014_v0 = vadd.f32 %v3013_v58, %v3012_v57 }
 0x301   : > { %v10978_v20 = vpop.f32.mrb[10].mxu0 }
 0x302   : > { %v10980_v21 = vpop.f32.mrb[11].mxu0  ;;  %v3016_v44 = vadd.f32 %v3015_v9, %v3014_v0  ;;  %v3019_v51 = vsel %vm411_vm1, %v10978_v20, 0.0 }
 0x303   : > { %v3017_v48 = vsel %vm411_vm1, %v10980_v21, 0.0 }
 0x304   : > { %v3018_v49 = vadd.f32 %v3017_v48, %v3016_v44 }
 0x305   : > { %v10986_v60 = vpop.f32.mrb[12].mxu0 }
 0x306   : > { %v10988_v16 = vpop.f32.mrb[13].mxu0  ;;  %v3020_v25 = vadd.f32 %v3019_v51, %v3018_v49  ;;  %v3023_v14 = vsel %vm411_vm1, %v10986_v60, 0.0 }
 0x307   : > { %v3021_v52 = vsel %vm411_vm1, %v10988_v16, 0.0 }
 0x308   : > { %v3022_v56 = vadd.f32 %v3021_v52, %v3020_v25 }
 0x309   : > { %v10994_v31 = vpop.f32.mrb[14].mxu0 }
 0x30a   : > { %v10996_v36 = vpop.f32.mrb[15].mxu0  ;;  %v3024_v59 = vadd.f32 %v3023_v14, %v3022_v56  ;;  %v3027_v33 = vsel %vm411_vm1, %v10994_v31, 0.0 }
 0x30b   : > { %v3025_v26 = vsel %vm411_vm1, %v10996_v36, 0.0 }
 0x30c   : > { %v3026_v28 = vadd.f32 %v3025_v26, %v3024_v59 }
 0x30d   : > { %v11002_v10 = vpop.f32.mrb[16].mxu0 }
 0x30e   : > { %v11004_v41 = vpop.f32.mrb[17].mxu0  ;;  %v3028_v45 = vadd.f32 %v3027_v33, %v3026_v28  ;;  %v3031_v8 = vsel %vm411_vm1, %v11002_v10, 0.0 }
 0x30f   : > { %v3029_v62 = vsel %vm411_vm1, %v11004_v41, 0.0 }
 0x310   : > { %v3030_v55 = vadd.f32 %v3029_v62, %v3028_v45 }
 0x311   : > { %v11010_v1 = vpop.f32.mrb[18].mxu0 }
 0x312   : > { %v11012_v17 = vpop.f32.mrb[19].mxu0  ;;  %v3032_v50 = vadd.f32 %v3031_v8, %v3030_v55  ;;  %v3035_v54 = vsel %vm411_vm1, %v11010_v1, 0.0  ;;  %v7407_v55 = vld [vmem:[%s12418_s2 + $0x8] sm:$0xff] }
 0x313   : > { %v3033_v30 = vsel %vm411_vm1, %v11012_v17, 0.0  ;;  %v3358_v8 = vld [vmem:[#allocation2 + $0x1] sm:$0xff]  ;;  %8750 = vmatprep.subr.mxu1 %v7407_v55 }
 0x314   : > { %v3034_v47 = vadd.f32 %v3033_v30, %v3032_v50  ;;  %v3357_v50 = vld [vmem:[%s12418_s2] sm:$0xff]  ;;  %8752 = vmatprep.mubr.msk.f32.mxu1 %vm411_vm1, %v3358_v8  ;;  %8751 = vmatpush3.msra.mxu1 %v7407_v55 }
 0x315   : > { %v11018_v27 = vpop.f32.mrb[20].mxu0  ;;  %8800 = vmatprep.subr.mxu1 %v3357_v50 }
 0x316   : > { %v11020_v12 = vpop.f32.mrb[21].mxu0  ;;  %v3036_v3 = vadd.f32 %v3035_v54, %v3034_v47  ;;  %v3039_v34 = vsel %vm411_vm1, %v11018_v27, 0.0  ;;  %v3359_v47 = vld [vmem:[#allocation2 + $0x9] sm:$0xff] }
 0x317   : > { %v3037_v37 = vsel %vm411_vm1, %v11020_v12, 0.0  ;;  %8753 = vmatmul.mubr.msk.f32.vlgmr.msra.gmra.mrb[0].mxu1 %vm411_vm1, %v3359_v47 }
 0x318   : > { %v3038_v61 = vadd.f32 %v3037_v37, %v3036_v3  ;;  %8801 = vmatpush3.msra.mxu1 %v3357_v50 }
 0x319   : > { %v11026_v5 = vpop.f32.mrb[22].mxu0 }
 0x31a   : > { %v11028_v53 = vpop.f32.mrb[23].mxu0  ;;  %v3040_v40 = vadd.f32 %v3039_v34, %v3038_v61  ;;  %v3043_v24 = vsel %vm411_vm1, %v11026_v5, 0.0 }
 0x31b   : > { %v3041_v11 = vsel %vm411_vm1, %v11028_v53, 0.0 }
 0x31c   : > { %v3042_v6 = vadd.f32 %v3041_v11, %v3040_v40 }
 0x31d   : > { %v11034_v13 = vpop.f32.mrb[24].mxu0 }
 0x31e   : > { %v11036_v4 = vpop.f32.mrb[25].mxu0  ;;  %v3044_v32 = vadd.f32 %v3043_v24, %v3042_v6  ;;  %v3047_v35 = vsel %vm411_vm1, %v11034_v13, 0.0 }
 0x31f   : > { %v3045_v19 = vsel %vm411_vm1, %v11036_v4, 0.0 }
 0x320   : > { %v3046_v23 = vadd.f32 %v3045_v19, %v3044_v32 }
 0x321   : > { %v11042_v38 = vpop.f32.mrb[26].mxu0 }
 0x322   : > { %v2937_v42 = vpop.f32.mrb[27].mxu0  ;;  %v3048_v57 = vadd.f32 %v3047_v35, %v3046_v23  ;;  %v3051_v9 = vsel %vm411_vm1, %v11042_v38, 0.0 }
 0x323   : > { %v3049_v58 = vsel %vm411_vm1, %v2937_v42, 0.0 }
 0x324   : > { %v3050_v0 = vadd.f32 %v3049_v58, %v3048_v57 }
 0x325   : > { %v8746_v44 = vpop.f32.mrb[28].mxu0 }
 0x326   : > { %v2947_v48 = vpop.f32.mrb[29].mxu0  ;;  %v3052_v49 = vadd.f32 %v3051_v9, %v3050_v0  ;;  %v3055_v52 = vsel %vm411_vm1, %v8746_v44, 0.0 }
 0x327   : > { %v3053_v51 = vsel %vm411_vm1, %v2947_v48, 0.0 }
 0x328   : > { %v3054_v25 = vadd.f32 %v3053_v51, %v3052_v49 }
 0x329   : > { %v8749_v56 = vpop.f32.mrb[30].mxu0 }
 0x32a   : > { %v2957_v14 = vpop.f32.mrb[31].mxu0  ;;  %v3056_v59 = vadd.f32 %v3055_v52, %v3054_v25  ;;  %v3059_v33 = vsel %vm411_vm1, %v8749_v56, 0.0 }
 0x32b   : > { %v3057_v26 = vsel %vm411_vm1, %v2957_v14, 0.0 }
 0x32c   : > { %v3058_v28 = vadd.f32 %v3057_v26, %v3056_v59 }
 0x32e   : > { %v3060_v45 = vadd.f32 %v3059_v33, %v3058_v28 }
 0x330   : > { %v3061_v62 = vrot.slane %v3060_v45, 4 }
 0x332   : > { %v3062_v30 = vadd.f32 %v3061_v62, %v3060_v45 }
 0x334   : > { %v3063_v54 = vrot.slane %v3062_v30, 2 }
 0x336   : > { %v3064_v3 = vadd.f32 %v3063_v54, %v3062_v30 }
 0x338   : > { %v3065_v37 = vrot.slane %v3064_v3, 1 }
 0x33a   : > { %v3066_v61 = vadd.f32 %v3065_v37, %v3064_v3 }
 0x33c   : > { %v3068_v34 = vmul.f32 0.00390625, %v3066_v61 }
 0x33e   : > { %v11060_v40 = vsub.f32 %v10942_v18, %v3068_v34  ;;  %v11063_v11 = vsub.f32 %v10938_v29, %v3068_v34  ;;  %v11066_v6 = vsub.f32 %v10948_v2, %v3068_v34  ;;  %v11069_v24 = vsub.f32 %v10946_v39, %v3068_v34 }
 0x33f   : > { %v11072_v32 = vsub.f32 %v10956_v63, %v3068_v34  ;;  %v11075_v19 = vsub.f32 %v10954_v7, %v3068_v34  ;;  %v11078_v23 = vsub.f32 %v10964_v22, %v3068_v34  ;;  %v11081_v18 = vsub.f32 %v10962_v15, %v3068_v34 }
 0x340   : > { %v11084_v29 = vsub.f32 %v10972_v46, %v3068_v34  ;;  %v11087_v2 = vsub.f32 %v10970_v43, %v3068_v34  ;;  %v11090_v39 = vsub.f32 %v10980_v21, %v3068_v34  ;;  %v11093_v63 = vsub.f32 %v10978_v20, %v3068_v34 }
 0x341   : > { %v11096_v7 = vsub.f32 %v10988_v16, %v3068_v34  ;;  %v11099_v22 = vsub.f32 %v10986_v60, %v3068_v34  ;;  %v11102_v15 = vsub.f32 %v10996_v36, %v3068_v34  ;;  %v11105_v46 = vsub.f32 %v10994_v31, %v3068_v34 }
 0x342   : > { %v11108_v43 = vsub.f32 %v11004_v41, %v3068_v34  ;;  %v11111_v21 = vsub.f32 %v11002_v10, %v3068_v34  ;;  %v11114_v20 = vsub.f32 %v11012_v17, %v3068_v34  ;;  %v11117_v16 = vsub.f32 %v11010_v1, %v3068_v34 }
 0x343   : > { %v11120_v60 = vsub.f32 %v11020_v12, %v3068_v34  ;;  %v11123_v36 = vsub.f32 %v11018_v27, %v3068_v34  ;;  %v11126_v31 = vsub.f32 %v11028_v53, %v3068_v34  ;;  %v11129_v41 = vsub.f32 %v11026_v5, %v3068_v34 }
 0x344   : > { %v11132_v10 = vsub.f32 %v11036_v4, %v3068_v34  ;;  %v11135_v17 = vsub.f32 %v11034_v13, %v3068_v34  ;;  %v11137_v1 = vsub.f32 %v2937_v42, %v3068_v34  ;;  %v11140_v12 = vsub.f32 %v11042_v38, %v3068_v34 }
 0x345   : > { %v11142_v35 = vsub.f32 %v2947_v48, %v3068_v34  ;;  %v11144_v27 = vsub.f32 %v8746_v44, %v3068_v34  ;;  %v11146_v53 = vsub.f32 %v2957_v14, %v3068_v34  ;;  %v11148_v57 = vsub.f32 %v8749_v56, %v3068_v34 }
 0x346   : > { %v3101_v5 = vmul.f32 %v11060_v40, %v11060_v40  ;;  %v3102_v13 = vmul.f32 %v11063_v11, %v11063_v11  ;;  %v3103_v4 = vmul.f32 %v11066_v6, %v11066_v6  ;;  %v3104_v38 = vmul.f32 %v11069_v24, %v11069_v24 }
 0x347   : > { %v3105_v9 = vmul.f32 %v11072_v32, %v11072_v32  ;;  %v3106_v49 = vmul.f32 %v11075_v19, %v11075_v19  ;;  %v3107_v52 = vmul.f32 %v11078_v23, %v11078_v23  ;;  %v3108_v59 = vmul.f32 %v11081_v18, %v11081_v18 }
 0x348   : > { %v3133_v42 = vsel %vm411_vm1, %v3101_v5, 0.0  ;;  %v3134_v58 = vsel %vm411_vm1, %v3102_v13, 0.0  ;;  %v3136_v44 = vsel %vm411_vm1, %v3103_v4, 0.0  ;;  %v3138_v51 = vsel %vm411_vm1, %v3104_v38, 0.0 }
 0x349   : > { %v3135_v0 = vadd.f32 %v3134_v58, %v3133_v42  ;;  %v3140_v56 = vsel %vm411_vm1, %v3105_v9, 0.0  ;;  %v3142_v26 = vsel %vm411_vm1, %v3106_v49, 0.0  ;;  %v3109_v33 = vmul.f32 %v11084_v29, %v11084_v29 }
 0x34a   : > { %v3144_v45 = vsel %vm411_vm1, %v3107_v52, 0.0  ;;  %v3110_v55 = vmul.f32 %v11087_v2, %v11087_v2  ;;  %v3146_v8 = vsel %vm411_vm1, %v3108_v59, 0.0  ;;  %v3111_v30 = vmul.f32 %v11090_v39, %v11090_v39 }
 0x34b   : > { %v3137_v48 = vadd.f32 %v3136_v44, %v3135_v0  ;;  %v3148_v47 = vsel %vm411_vm1, %v3109_v33, 0.0  ;;  %v3112_v3 = vmul.f32 %v11093_v63, %v11093_v63  ;;  %v3113_v34 = vmul.f32 %v11096_v7, %v11096_v7  ;;  %v11208_v33 = vld [vmem:[%s12418_s2 + $0x10] sm:$0xff] }
 0x34c   : > { %v3150_v37 = vsel %vm411_vm1, %v3110_v55, 0.0  ;;  %v3152_v5 = vsel %vm411_vm1, %v3111_v30, 0.0  ;;  %v3114_v4 = vmul.f32 %v11099_v22, %v11099_v22  ;;  %v3115_v58 = vmul.f32 %v11102_v15, %v11102_v15  ;;  %8850 = vmatprep.subr.mxu1 %v11208_v33 }
 0x34d   : > { %v3139_v25 = vadd.f32 %v3138_v51, %v3137_v48  ;;  %v3154_v38 = vsel %vm411_vm1, %v3112_v3, 0.0  ;;  %v3156_v0 = vsel %vm411_vm1, %v3113_v34, 0.0  ;;  %v3116_v44 = vmul.f32 %v11105_v46, %v11105_v46 }
 0x34e   : > { %v3158_v48 = vsel %vm411_vm1, %v3114_v4, 0.0  ;;  %v3117_v51 = vmul.f32 %v11108_v43, %v11108_v43 }
 0x34f   : > { %v3141_v14 = vadd.f32 %v3140_v56, %v3139_v25  ;;  %v3160_v25 = vsel %vm411_vm1, %v3115_v58, 0.0  ;;  %v3118_v56 = vmul.f32 %v11111_v21, %v11111_v21 }
 0x351   : > { %v3143_v28 = vadd.f32 %v3142_v26, %v3141_v14  ;;  %v3162_v14 = vsel %vm411_vm1, %v3116_v44, 0.0  ;;  %v3119_v26 = vmul.f32 %v11114_v20, %v11114_v20  ;;  %v3166_v55 = vsel %vm411_vm1, %v3118_v56, 0.0 }
 0x353   : > { %v3145_v62 = vadd.f32 %v3144_v45, %v3143_v28  ;;  %v3164_v28 = vsel %vm411_vm1, %v3117_v51, 0.0  ;;  %v3168_v30 = vsel %vm411_vm1, %v3119_v26, 0.0 }
 0x355   : > { %v3147_v50 = vadd.f32 %v3146_v8, %v3145_v62  ;;  %v3120_v62 = vmul.f32 %v11117_v16, %v11117_v16 }
 0x357   : > { %v3149_v54 = vadd.f32 %v3148_v47, %v3147_v50  ;;  %v3121_v50 = vmul.f32 %v11120_v60, %v11120_v60  ;;  %v3170_v3 = vsel %vm411_vm1, %v3120_v62, 0.0 }
 0x359   : > { %v3151_v61 = vadd.f32 %v3150_v37, %v3149_v54  ;;  %v3122_v54 = vmul.f32 %v11123_v36, %v11123_v36  ;;  %v3172_v34 = vsel %vm411_vm1, %v3121_v50, 0.0 }
 0x35b   : > { %v3153_v13 = vadd.f32 %v3152_v5, %v3151_v61  ;;  %v3123_v61 = vmul.f32 %v11126_v31, %v11126_v31  ;;  %v3174_v4 = vsel %vm411_vm1, %v3122_v54, 0.0 }
 0x35d   : > { %v3155_v42 = vadd.f32 %v3154_v38, %v3153_v13  ;;  %v3124_v13 = vmul.f32 %v11129_v41, %v11129_v41  ;;  %v3176_v58 = vsel %vm411_vm1, %v3123_v61, 0.0 }
 0x35f   : > { %v3157_v9 = vadd.f32 %v3156_v0, %v3155_v42  ;;  %v3125_v42 = vmul.f32 %v11132_v10, %v11132_v10  ;;  %v3178_v44 = vsel %vm411_vm1, %v3124_v13, 0.0 }
 0x361   : > { %v3159_v49 = vadd.f32 %v3158_v48, %v3157_v9  ;;  %v3126_v9 = vmul.f32 %v11135_v17, %v11135_v17  ;;  %v3180_v51 = vsel %vm411_vm1, %v3125_v42, 0.0 }
 0x363   : > { %v3161_v52 = vadd.f32 %v3160_v25, %v3159_v49  ;;  %v3127_v49 = vmul.f32 %v11137_v1, %v11137_v1  ;;  %v3182_v56 = vsel %vm411_vm1, %v3126_v9, 0.0 }
 0x365   : > { %v3163_v59 = vadd.f32 %v3162_v14, %v3161_v52  ;;  %v3128_v52 = vmul.f32 %v11140_v12, %v11140_v12  ;;  %v3184_v26 = vsel %vm411_vm1, %v3127_v49, 0.0 }
 0x367   : > { %v3165_v45 = vadd.f32 %v3164_v28, %v3163_v59  ;;  %v3129_v59 = vmul.f32 %v11142_v35, %v11142_v35  ;;  %v3186_v62 = vsel %vm411_vm1, %v3128_v52, 0.0 }
 0x369   : > { %v3167_v8 = vadd.f32 %v3166_v55, %v3165_v45  ;;  %v3130_v45 = vmul.f32 %v11144_v27, %v11144_v27  ;;  %v3188_v50 = vsel %vm411_vm1, %v3129_v59, 0.0 }
 0x36b   : > { %v3169_v47 = vadd.f32 %v3168_v30, %v3167_v8  ;;  %v3131_v8 = vmul.f32 %v11146_v53, %v11146_v53  ;;  %v3190_v54 = vsel %vm411_vm1, %v3130_v45, 0.0 }
 0x36d   : > { %v3171_v37 = vadd.f32 %v3170_v3, %v3169_v47  ;;  %v3132_v47 = vmul.f32 %v11148_v57, %v11148_v57 }
 0x36f   : > { %v3173_v5 = vadd.f32 %v3172_v34, %v3171_v37  ;;  %v3192_v37 = vsel %vm411_vm1, %v3131_v8, 0.0  ;;  %v3194_v34 = vsel %vm411_vm1, %v3132_v47, 0.0 }
 0x371   : > { %v3175_v38 = vadd.f32 %v3174_v4, %v3173_v5 }
 0x373   : > { %v3177_v0 = vadd.f32 %v3176_v58, %v3175_v38 }
 0x375   : > { %v3179_v48 = vadd.f32 %v3178_v44, %v3177_v0 }
 0x377   : > { %v3181_v25 = vadd.f32 %v3180_v51, %v3179_v48 }
 0x379   : > { %v3183_v14 = vadd.f32 %v3182_v56, %v3181_v25 }
 0x37b   : > { %v3185_v28 = vadd.f32 %v3184_v26, %v3183_v14 }
 0x37d   : > { %v3187_v55 = vadd.f32 %v3186_v62, %v3185_v28 }
 0x37f   : > { %v3189_v30 = vadd.f32 %v3188_v50, %v3187_v55 }
 0x381   : > { %v3191_v3 = vadd.f32 %v3190_v54, %v3189_v30 }
 0x383   : > { %v3193_v61 = vadd.f32 %v3192_v37, %v3191_v3 }
 0x385   : > { %v3195_v5 = vadd.f32 %v3194_v34, %v3193_v61 }
 0x387   : > { %v3196_v13 = vrot.slane %v3195_v5, 4 }
 0x389   : > { %v3197_v4 = vadd.f32 %v3196_v13, %v3195_v5 }
 0x38b   : > { %v3198_v38 = vrot.slane %v3197_v4, 2 }
 0x38d   : > { %v3199_v42 = vadd.f32 %v3198_v38, %v3197_v4 }
 0x38f   : > { %v3200_v58 = vrot.slane %v3199_v42, 1 }
 0x391   : > { %v3201_v0 = vadd.f32 %v3200_v58, %v3199_v42 }
 0x393   : > { %v3202_v9 = vmul.f32 0.00390625, %v3201_v0 }
 0x395   : > { %v3203_v44 = vadd.f32 1e-05, %v3202_v9 }
 0x397   : > { %9722 = vrsqrt.f32 %v3203_v44  ;;  %v3325_v44 = vld [vmem:[#allocation2] sm:$0xff] }
 0x3a1   : > { %v9723_v48 = vpop.eup %9722 }
 0x3a2   : > { %v3235_v49 = vmul.f32 %v9723_v48, %v11146_v53  ;;  %v3205_v51 = vmul.f32 %v9723_v48, %v11060_v40  ;;  %v3206_v25 = vmul.f32 %v9723_v48, %v11063_v11  ;;  %v3207_v52 = vmul.f32 %v9723_v48, %v11066_v6 }
 0x3a3   : > { %v3208_v56 = vmul.f32 %v9723_v48, %v11069_v24  ;;  %v3209_v14 = vmul.f32 %v9723_v48, %v11072_v32  ;;  %v3210_v59 = vmul.f32 %v9723_v48, %v11075_v19  ;;  %v3211_v26 = vmul.f32 %v9723_v48, %v11078_v23 }
 0x3a4   : > { %3323 = vst.msk [vmem:[#allocation2 + $0x181] sm:$0xff] %vm411_vm1, %v3235_v49  ;;  %v3212_v28 = vmul.f32 %v9723_v48, %v11081_v18  ;;  %v3213_v53 = vmul.f32 %v9723_v48, %v11084_v29  ;;  %v3214_v40 = vmul.f32 %v9723_v48, %v11087_v2  ;;  %v3215_v11 = vmul.f32 %v9723_v48, %v11090_v39  ;;  %v3326_v49 = vld [vmem:[#allocation2 + $0x8] sm:$0xff] }
 0x3a5   : > { %3293 = vst.msk [vmem:[#allocation2 + $0x19] sm:$0xff] %vm411_vm1, %v3205_v51  ;;  %3294 = vst.msk [vmem:[#allocation2 + $0x21] sm:$0xff] %vm411_vm1, %v3206_v25  ;;  %v3216_v6 = vmul.f32 %v9723_v48, %v11093_v63  ;;  %v3217_v24 = vmul.f32 %v9723_v48, %v11096_v7  ;;  %v3218_v32 = vmul.f32 %v9723_v48, %v11099_v22  ;;  %v11440_v51 = vld [vmem:[%s12418_s2 + $0x18] sm:$0xff] }
 0x3a6   : > { %3295 = vst.msk [vmem:[#allocation2 + $0x31] sm:$0xff] %vm411_vm1, %v3207_v52  ;;  %v3219_v19 = vmul.f32 %v9723_v48, %v11102_v15  ;;  %3296 = vst.msk [vmem:[#allocation2 + $0x39] sm:$0xff] %vm411_vm1, %v3208_v56  ;;  %v3220_v23 = vmul.f32 %v9723_v48, %v11105_v46  ;;  %v3221_v18 = vmul.f32 %v9723_v48, %v11108_v43 }
 0x3a7   : > { %3297 = vst.msk [vmem:[#allocation2 + $0x49] sm:$0xff] %vm411_vm1, %v3209_v14  ;;  %3298 = vst.msk [vmem:[#allocation2 + $0x51] sm:$0xff] %vm411_vm1, %v3210_v59  ;;  %v3222_v29 = vmul.f32 %v9723_v48, %v11111_v21  ;;  %v3223_v2 = vmul.f32 %v9723_v48, %v11114_v20  ;;  %v3224_v39 = vmul.f32 %v9723_v48, %v11117_v16 }
 0x3a8   : > { %3299 = vst.msk [vmem:[#allocation2 + $0x61] sm:$0xff] %vm411_vm1, %v3211_v26  ;;  %3300 = vst.msk [vmem:[#allocation2 + $0x69] sm:$0xff] %vm411_vm1, %v3212_v28  ;;  %v3225_v63 = vmul.f32 %v9723_v48, %v11120_v60  ;;  %v3226_v7 = vmul.f32 %v9723_v48, %v11123_v36  ;;  %v3227_v22 = vmul.f32 %v9723_v48, %v11126_v31 }
 0x3a9   : > { %3301 = vst.msk [vmem:[#allocation2 + $0x79] sm:$0xff] %vm411_vm1, %v3213_v53  ;;  %3302 = vst.msk [vmem:[#allocation2 + $0x81] sm:$0xff] %vm411_vm1, %v3214_v40  ;;  %v3228_v15 = vmul.f32 %v9723_v48, %v11129_v41  ;;  %v3229_v46 = vmul.f32 %v9723_v48, %v11132_v10  ;;  %v3230_v43 = vmul.f32 %v9723_v48, %v11135_v17 }
 0x3aa   : > { %3303 = vst.msk [vmem:[#allocation2 + $0x91] sm:$0xff] %vm411_vm1, %v3215_v11  ;;  %3304 = vst.msk [vmem:[#allocation2 + $0x99] sm:$0xff] %vm411_vm1, %v3216_v6  ;;  %v3231_v21 = vmul.f32 %v9723_v48, %v11137_v1  ;;  %v3232_v20 = vmul.f32 %v9723_v48, %v11140_v12  ;;  %v3233_v16 = vmul.f32 %v9723_v48, %v11142_v35 }
 0x3ab   : > { %3305 = vst.msk [vmem:[#allocation2 + $0xa9] sm:$0xff] %vm411_vm1, %v3217_v24  ;;  %3306 = vst.msk [vmem:[#allocation2 + $0xb1] sm:$0xff] %vm411_vm1, %v3218_v32  ;;  %v3234_v60 = vmul.f32 %v9723_v48, %v11144_v27  ;;  %v3236_v36 = vmul.f32 %v9723_v48, %v11148_v57 }
 0x3ac   : > { %3307 = vst.msk [vmem:[#allocation2 + $0xc1] sm:$0xff] %vm411_vm1, %v3219_v19  ;;  %3308 = vst.msk [vmem:[#allocation2 + $0xc9] sm:$0xff] %vm411_vm1, %v3220_v23  ;;  %v11316_v31 = vld [vmem:[#allocation2 + $0x19] sm:$0xff]  ;;  %v11318_v41 = vld [vmem:[#allocation2 + $0x21] sm:$0xff] }
 0x3ad   : > { %3309 = vst.msk [vmem:[#allocation2 + $0xd9] sm:$0xff] %vm411_vm1, %v3221_v18  ;;  %3310 = vst.msk [vmem:[#allocation2 + $0xe1] sm:$0xff] %vm411_vm1, %v3222_v29  ;;  %8755 = vmatprep.mubr.msk.f32.mxu1 %vm411_vm1, %v11316_v31  ;;  %v11324_v10 = vld [vmem:[#allocation2 + $0x31] sm:$0xff]  ;;  %v11328_v17 = vld [vmem:[#allocation2 + $0x39] sm:$0xff] }
 0x3ae   : > { %3311 = vst.msk [vmem:[#allocation2 + $0xf1] sm:$0xff] %vm411_vm1, %v3223_v2  ;;  %3312 = vst.msk [vmem:[#allocation2 + $0xf9] sm:$0xff] %vm411_vm1, %v3224_v39  ;;  %8756 = vmatmul.mubr.msk.f32.gmra.mrb[2].mxu1 %vm411_vm1, %v11318_v41  ;;  %v11332_v1 = vld [vmem:[#allocation2 + $0x49] sm:$0xff]  ;;  %v11336_v12 = vld [vmem:[#allocation2 + $0x51] sm:$0xff] }
 0x3af   : > { %3313 = vst.msk [vmem:[#allocation2 + $0x109] sm:$0xff] %vm411_vm1, %v3225_v63  ;;  %3314 = vst.msk [vmem:[#allocation2 + $0x111] sm:$0xff] %vm411_vm1, %v3226_v7  ;;  %8758 = vmatprep.mubr.msk.f32.mxu1 %vm411_vm1, %v11324_v10  ;;  %v11340_v35 = vld [vmem:[#allocation2 + $0x61] sm:$0xff]  ;;  %v11344_v27 = vld [vmem:[#allocation2 + $0x69] sm:$0xff] }
 0x3b0   : > { %3315 = vst.msk [vmem:[#allocation2 + $0x121] sm:$0xff] %vm411_vm1, %v3227_v22  ;;  %3316 = vst.msk [vmem:[#allocation2 + $0x129] sm:$0xff] %vm411_vm1, %v3228_v15  ;;  %v11348_v57 = vld [vmem:[#allocation2 + $0x79] sm:$0xff]  ;;  %v11352_v45 = vld [vmem:[#allocation2 + $0x81] sm:$0xff] }
 0x3b1   : > { %3317 = vst.msk [vmem:[#allocation2 + $0x139] sm:$0xff] %vm411_vm1, %v3229_v46  ;;  %3318 = vst.msk [vmem:[#allocation2 + $0x141] sm:$0xff] %vm411_vm1, %v3230_v43  ;;  %v11356_v62 = vld [vmem:[#allocation2 + $0x91] sm:$0xff]  ;;  %v11360_v55 = vld [vmem:[#allocation2 + $0x99] sm:$0xff] }
 0x3b2   : > { %3319 = vst.msk [vmem:[#allocation2 + $0x151] sm:$0xff] %vm411_vm1, %v3231_v21  ;;  %3320 = vst.msk [vmem:[#allocation2 + $0x159] sm:$0xff] %vm411_vm1, %v3232_v20  ;;  %8759 = vmatmul.mubr.msk.f32.gmra.mrb[4].mxu1 %vm411_vm1, %v11328_v17  ;;  %v11364_v8 = vld [vmem:[#allocation2 + $0xa9] sm:$0xff]  ;;  %v11368_v50 = vld [vmem:[#allocation2 + $0xb1] sm:$0xff] }
 0x3b3   : > { %3321 = vst.msk [vmem:[#allocation2 + $0x169] sm:$0xff] %vm411_vm1, %v3233_v16  ;;  %3322 = vst.msk [vmem:[#allocation2 + $0x171] sm:$0xff] %vm411_vm1, %v3234_v60  ;;  %8761 = vmatprep.mubr.msk.f32.mxu1 %vm411_vm1, %v11332_v1  ;;  %v11372_v30 = vld [vmem:[#allocation2 + $0xc1] sm:$0xff]  ;;  %v11376_v47 = vld [vmem:[#allocation2 + $0xc9] sm:$0xff] }
 0x3b4   : > { %3324 = vst.msk [vmem:[#allocation2 + $0x189] sm:$0xff] %vm411_vm1, %v3236_v36  ;;  %v11380_v54 = vld [vmem:[#allocation2 + $0xd9] sm:$0xff]  ;;  %v11384_v3 = vld [vmem:[#allocation2 + $0xe1] sm:$0xff]  ;;  %v11453_v56 = vld [vmem:[#allocation2 + $0x30] sm:$0xff] }
 0x3b5   : > { %v11388_v37 = vld [vmem:[#allocation2 + $0xf1] sm:$0xff]  ;;  %v11392_v61 = vld [vmem:[#allocation2 + $0xf9] sm:$0xff]  ;;  %v11473_v28 = vld [vmem:[#allocation2 + $0x68] sm:$0xff] }
 0x3b6   : > { %8762 = vmatmul.mubr.msk.f32.gmra.mrb[6].mxu1 %vm411_vm1, %v11336_v12  ;;  %v11396_v34 = vld [vmem:[#allocation2 + $0x109] sm:$0xff]  ;;  %v11400_v5 = vld [vmem:[#allocation2 + $0x111] sm:$0xff]  ;;  %v11449_v52 = vld [vmem:[#allocation2 + $0x20] sm:$0xff] }
 0x3b7   : > { %8764 = vmatprep.mubr.msk.f32.mxu1 %vm411_vm1, %v11340_v35  ;;  %v11404_v13 = vld [vmem:[#allocation2 + $0x121] sm:$0xff]  ;;  %v11408_v4 = vld [vmem:[#allocation2 + $0x129] sm:$0xff]  ;;  %v11443_v25 = vld [vmem:[#allocation2 + $0x18] sm:$0xff] }
 0x3b8   : > { %12695 = vst [vmem:[#allocation3_spill] sm:$0xff] %v11408_v4  ;;  %v11412_v38 = vld [vmem:[#allocation2 + $0x139] sm:$0xff]  ;;  %v11416_v42 = vld [vmem:[#allocation2 + $0x141] sm:$0xff]  ;;  %v11465_v59 = vld [vmem:[#allocation2 + $0x50] sm:$0xff] }
 0x3b9   : > { %12696 = vst [vmem:[#allocation4_spill] sm:$0xff] %v11412_v38  ;;  %12697 = vst [vmem:[#allocation16_spill] sm:$0xff] %v11416_v42  ;;  %v11420_v58 = vld [vmem:[#allocation2 + $0x151] sm:$0xff]  ;;  %v11424_v0 = vld [vmem:[#allocation2 + $0x159] sm:$0xff] }
 0x3ba   : > { %8765 = vmatmul.mubr.msk.f32.gmra.mrb[8].mxu1 %vm411_vm1, %v11344_v27  ;;  %12698 = vst [vmem:[#allocation26_spill] sm:$0xff] %v11420_v58  ;;  %12699 = vst [vmem:[#allocation27_spill] sm:$0xff] %v11424_v0  ;;  %v11428_v9 = vld [vmem:[#allocation2 + $0x169] sm:$0xff]  ;;  %v11432_v48 = vld [vmem:[#allocation2 + $0x171] sm:$0xff] }
 0x3bb   : > { %8767 = vmatprep.mubr.msk.f32.mxu1 %vm411_vm1, %v11348_v57  ;;  %12700 = vst [vmem:[#allocation28_spill] sm:$0xff] %v11428_v9  ;;  %12701 = vst [vmem:[#allocation29_spill] sm:$0xff] %v11432_v48  ;;  %v11457_v14 = vld [vmem:[#allocation2 + $0x38] sm:$0xff]  ;;  %v11469_v26 = vld [vmem:[#allocation2 + $0x60] sm:$0xff] }
 0x3bc   : > { %v11477_v53 = vld [vmem:[#allocation2 + $0x78] sm:$0xff]  ;;  %v11481_v40 = vld [vmem:[#allocation2 + $0x80] sm:$0xff]  ;;  %v11485_v11 = vld [vmem:[#allocation2 + $0x90] sm:$0xff] }
 0x3bd   : > { %v11489_v6 = vld [vmem:[#allocation2 + $0x98] sm:$0xff]  ;;  %v11493_v24 = vld [vmem:[#allocation2 + $0xa8] sm:$0xff]  ;;  %v11497_v32 = vld [vmem:[#allocation2 + $0xb0] sm:$0xff] }
 0x3be   : > { %8768 = vmatmul.mubr.msk.f32.gmra.mrb[10].mxu1 %vm411_vm1, %v11352_v45  ;;  %v11501_v19 = vld [vmem:[#allocation2 + $0xc0] sm:$0xff]  ;;  %v11505_v23 = vld [vmem:[#allocation2 + $0xc8] sm:$0xff]  ;;  %v11509_v18 = vld [vmem:[#allocation2 + $0xd8] sm:$0xff] }
 0x3bf   : > { %8770 = vmatprep.mubr.msk.f32.mxu1 %vm411_vm1, %v11356_v62  ;;  %v11513_v29 = vld [vmem:[#allocation2 + $0xe0] sm:$0xff]  ;;  %v11517_v2 = vld [vmem:[#allocation2 + $0xf0] sm:$0xff]  ;;  %v11521_v39 = vld [vmem:[#allocation2 + $0xf8] sm:$0xff] }
 0x3c0   : > { %v11525_v63 = vld [vmem:[#allocation2 + $0x108] sm:$0xff]  ;;  %v11529_v7 = vld [vmem:[#allocation2 + $0x110] sm:$0xff]  ;;  %v11533_v22 = vld [vmem:[#allocation2 + $0x120] sm:$0xff] }
 0x3c1   : > { %v11537_v15 = vld [vmem:[#allocation2 + $0x128] sm:$0xff]  ;;  %v11541_v46 = vld [vmem:[#allocation2 + $0x138] sm:$0xff]  ;;  %v11545_v43 = vld [vmem:[#allocation2 + $0x140] sm:$0xff] }
 0x3c2   : > { %8771 = vmatmul.mubr.msk.f32.gmra.mrb[12].mxu1 %vm411_vm1, %v11360_v55  ;;  %v11549_v21 = vld [vmem:[#allocation2 + $0x150] sm:$0xff]  ;;  %v11553_v20 = vld [vmem:[#allocation2 + $0x158] sm:$0xff]  ;;  %v11557_v16 = vld [vmem:[#allocation2 + $0x168] sm:$0xff] }
 0x3c3   : > { %8773 = vmatprep.mubr.msk.f32.mxu1 %vm411_vm1, %v11364_v8  ;;  %v4034_v60 = vld [vmem:[#allocation2 + $0x2] sm:$0xff]  ;;  %v11561_v36 = vld [vmem:[#allocation2 + $0x170] sm:$0xff] }
 0x3c6   : > { %8774 = vmatmul.mubr.msk.f32.gmra.mrb[14].mxu1 %vm411_vm1, %v11368_v50 }
 0x3c7   : > { %8776 = vmatprep.mubr.msk.f32.mxu1 %vm411_vm1, %v11372_v30 }
 0x3ca   : > { %8777 = vmatmul.mubr.msk.f32.gmra.mrb[16].mxu1 %vm411_vm1, %v11376_v47 }
 0x3cb   : > { %8779 = vmatprep.mubr.msk.f32.mxu1 %vm411_vm1, %v11380_v54 }
 0x3ce   : > { %8780 = vmatmul.mubr.msk.f32.gmra.mrb[18].mxu1 %vm411_vm1, %v11384_v3 }
 0x3cf   : > { %8782 = vmatprep.mubr.msk.f32.mxu1 %vm411_vm1, %v11388_v37 }
 0x3d2   : > { %8783 = vmatmul.mubr.msk.f32.gmra.mrb[20].mxu1 %vm411_vm1, %v11392_v61 }
 0x3d3   : > { %8785 = vmatprep.mubr.msk.f32.mxu1 %vm411_vm1, %v11396_v34 }
 0x3d6   : > { %8786 = vmatmul.mubr.msk.f32.gmra.mrb[22].mxu1 %vm411_vm1, %v11400_v5 }
 0x3d7   : > { %8788 = vmatprep.mubr.msk.f32.mxu1 %vm411_vm1, %v11404_v13 }
 0x3da   : > { %8789 = vmatmul.mubr.msk.f32.gmra.mrb[24].mxu1 %vm411_vm1, %v11408_v4 }
 0x3db   : > { %8791 = vmatprep.mubr.msk.f32.mxu1 %vm411_vm1, %v11412_v38 }
 0x3de   : > { %8792 = vmatmul.mubr.msk.f32.gmra.mrb[26].mxu1 %vm411_vm1, %v11416_v42 }
 0x3df   : > { %8794 = vmatprep.mubr.msk.f32.mxu1 %vm411_vm1, %v11420_v58 }
 0x3e2   : > { %8795 = vmatmul.mubr.msk.f32.gmra.mrb[28].mxu1 %vm411_vm1, %v11424_v0 }
 0x3e3   : > { %8797 = vmatprep.mubr.msk.f32.mxu1 %vm411_vm1, %v11428_v9  ;;  %v11578_v9 = vld [vmem:[#allocation2 + $0x22] sm:$0xff] }
 0x3e4   : > { %12703 = vst [vmem:[#allocation41_spill] sm:$0xff] %v11578_v9 }
 0x3e6   : > { %8798 = vmatmul.mubr.msk.f32.gmra.mrb[30].mxu1 %vm411_vm1, %v11432_v48  ;;  %v11572_v48 = vld [vmem:[#allocation2 + $0x1a] sm:$0xff] }
 0x3e7   : > { %8802 = vmatprep.mubr.msk.f32.mxu1 %vm411_vm1, %v3325_v44  ;;  %v4035_v44 = vld [vmem:[#allocation2 + $0xa] sm:$0xff]  ;;  %12702 = vst [vmem:[#allocation36_spill] sm:$0xff] %v11572_v48 }
 0x3ea   : > { %8803 = vmatmul.mubr.msk.f32.vlgmr.msra.gmra.mrb[0].mxu1 %vm411_vm1, %v3326_v49  ;;  %v11569_v49 = vld [vmem:[%s12418_s2 + $0x20] sm:$0xff] }
 0x3eb   : > { %8851 = vmatpush3.msra.mxu1 %v11208_v33  ;;  %8805 = vmatprep.mubr.msk.f32.mxu1 %vm411_vm1, %v11443_v25  ;;  %v11461_v33 = vld [vmem:[#allocation2 + $0x48] sm:$0xff] }
 0x3ec   : > { %8900 = vmatprep.subr.mxu1 %v11440_v51 }
 0x3ee   : > { %8806 = vmatmul.mubr.msk.f32.gmra.mrb[2].mxu1 %vm411_vm1, %v11449_v52 }
 0x3ef   : > { %8808 = vmatprep.mubr.msk.f32.mxu1 %vm411_vm1, %v11453_v56 }
 0x3f2   : > { %8809 = vmatmul.mubr.msk.f32.gmra.mrb[4].mxu1 %vm411_vm1, %v11457_v14 }
 0x3f3   : > { %8811 = vmatprep.mubr.msk.f32.mxu1 %vm411_vm1, %v11461_v33 }
 0x3f6   : > { %8812 = vmatmul.mubr.msk.f32.gmra.mrb[6].mxu1 %vm411_vm1, %v11465_v59 }
 0x3f7   : > { %8814 = vmatprep.mubr.msk.f32.mxu1 %vm411_vm1, %v11469_v26 }
 0x3fa   : > { %8815 = vmatmul.mubr.msk.f32.gmra.mrb[8].mxu1 %vm411_vm1, %v11473_v28 }
 0x3fb   : > { %8817 = vmatprep.mubr.msk.f32.mxu1 %vm411_vm1, %v11477_v53 }
 0x3fe   : > { %8818 = vmatmul.mubr.msk.f32.gmra.mrb[10].mxu1 %vm411_vm1, %v11481_v40 }
 0x3ff   : > { %8820 = vmatprep.mubr.msk.f32.mxu1 %vm411_vm1, %v11485_v11 }
 0x402   : > { %8821 = vmatmul.mubr.msk.f32.gmra.mrb[12].mxu1 %vm411_vm1, %v11489_v6 }
 0x403   : > { %8823 = vmatprep.mubr.msk.f32.mxu1 %vm411_vm1, %v11493_v24 }
 0x406   : > { %8824 = vmatmul.mubr.msk.f32.gmra.mrb[14].mxu1 %vm411_vm1, %v11497_v32 }
 0x407   : > { %8826 = vmatprep.mubr.msk.f32.mxu1 %vm411_vm1, %v11501_v19 }
 0x40a   : > { %8827 = vmatmul.mubr.msk.f32.gmra.mrb[16].mxu1 %vm411_vm1, %v11505_v23 }
 0x40b   : > { %8829 = vmatprep.mubr.msk.f32.mxu1 %vm411_vm1, %v11509_v18 }
 0x40e   : > { %8830 = vmatmul.mubr.msk.f32.gmra.mrb[18].mxu1 %vm411_vm1, %v11513_v29 }
 0x40f   : > { %8832 = vmatprep.mubr.msk.f32.mxu1 %vm411_vm1, %v11517_v2 }
 0x412   : > { %8833 = vmatmul.mubr.msk.f32.gmra.mrb[20].mxu1 %vm411_vm1, %v11521_v39 }
 0x413   : > { %8835 = vmatprep.mubr.msk.f32.mxu1 %vm411_vm1, %v11525_v63 }
 0x416   : > { %8836 = vmatmul.mubr.msk.f32.gmra.mrb[22].mxu1 %vm411_vm1, %v11529_v7 }
 0x417   : > { %8838 = vmatprep.mubr.msk.f32.mxu1 %vm411_vm1, %v11533_v22 }
 0x41a   : > { %8839 = vmatmul.mubr.msk.f32.gmra.mrb[24].mxu1 %vm411_vm1, %v11537_v15 }
 0x41b   : > { %8841 = vmatprep.mubr.msk.f32.mxu1 %vm411_vm1, %v11541_v46 }
 0x41e   : > { %8842 = vmatmul.mubr.msk.f32.gmra.mrb[26].mxu1 %vm411_vm1, %v11545_v43 }
 0x41f   : > { %8844 = vmatprep.mubr.msk.f32.mxu1 %vm411_vm1, %v11549_v21 }
 0x422   : > { %8845 = vmatmul.mubr.msk.f32.gmra.mrb[28].mxu1 %vm411_vm1, %v11553_v20 }
 0x423   : > { %8847 = vmatprep.mubr.msk.f32.mxu1 %vm411_vm1, %v11557_v16 }
 0x426   : > { %8848 = vmatmul.mubr.msk.f32.gmra.mrb[30].mxu1 %vm411_vm1, %v11561_v36 }
 0x427   : > { %8852 = vmatprep.mubr.msk.f32.mxu1 %vm411_vm1, %v4034_v60  ;;  %v11582_v60 = vld [vmem:[#allocation2 + $0x32] sm:$0xff] }
 0x428   : > { %12704 = vst [vmem:[#allocation5_spill] sm:$0xff] %v11582_v60 }
 0x42a   : > { %8853 = vmatmul.mubr.msk.f32.vlgmr.msra.gmra.mrb[0].mxu1 %vm411_vm1, %v4035_v44  ;;  %v11586_v44 = vld [vmem:[#allocation2 + $0x3a] sm:$0xff] }
 0x42b   : > { %8901 = vmatpush3.msra.mxu1 %v11440_v51  ;;  %8855 = vmatprep.mubr.msk.f32.mxu1 %vm411_vm1, %v11572_v48  ;;  %12705 = vst [vmem:[#allocation6_spill] sm:$0xff] %v11586_v44  ;;  %v11590_v51 = vld [vmem:[#allocation2 + $0x4a] sm:$0xff]  ;;  %v11594_v48 = vld [vmem:[#allocation2 + $0x52] sm:$0xff] }
 0x42c   : > { %8950 = vmatprep.subr.mxu1 %v11569_v49  ;;  %12706 = vst [vmem:[#allocation7_spill] sm:$0xff] %v11590_v51  ;;  %12707 = vst [vmem:[#allocation8_spill] sm:$0xff] %v11594_v48 }
 0x42e   : > { %8856 = vmatmul.mubr.msk.f32.gmra.mrb[2].mxu1 %vm411_vm1, %v11578_v9  ;;  %v11598_v9 = vld [vmem:[#allocation2 + $0x62] sm:$0xff] }
 0x42f   : > { %8858 = vmatprep.mubr.msk.f32.mxu1 %vm411_vm1, %v11582_v60  ;;  %12708 = vst [vmem:[#allocation9_spill] sm:$0xff] %v11598_v9  ;;  %v11602_v60 = vld [vmem:[#allocation2 + $0x6a] sm:$0xff] }
 0x430   : > { %12709 = vst [vmem:[#allocation10_spill] sm:$0xff] %v11602_v60 }
 0x432   : > { %8859 = vmatmul.mubr.msk.f32.gmra.mrb[4].mxu1 %vm411_vm1, %v11586_v44  ;;  %v11606_v44 = vld [vmem:[#allocation2 + $0x7a] sm:$0xff] }
 0x433   : > { %8861 = vmatprep.mubr.msk.f32.mxu1 %vm411_vm1, %v11590_v51  ;;  %12710 = vst [vmem:[#allocation11_spill] sm:$0xff] %v11606_v44  ;;  %v11610_v51 = vld [vmem:[#allocation2 + $0x82] sm:$0xff] }
 0x434   : > { %12711 = vst [vmem:[#allocation12_spill] sm:$0xff] %v11610_v51 }
 0x436   : > { %8862 = vmatmul.mubr.msk.f32.gmra.mrb[6].mxu1 %vm411_vm1, %v11594_v48  ;;  %v11614_v48 = vld [vmem:[#allocation2 + $0x92] sm:$0xff] }
 0x437   : > { %8864 = vmatprep.mubr.msk.f32.mxu1 %vm411_vm1, %v11598_v9  ;;  %12712 = vst [vmem:[#allocation13_spill] sm:$0xff] %v11614_v48  ;;  %v11618_v9 = vld [vmem:[#allocation2 + $0x9a] sm:$0xff] }
 0x438   : > { %12713 = vst [vmem:[#allocation14_spill] sm:$0xff] %v11618_v9 }
 0x43a   : > { %8865 = vmatmul.mubr.msk.f32.gmra.mrb[8].mxu1 %vm411_vm1, %v11602_v60  ;;  %v11622_v60 = vld [vmem:[#allocation2 + $0xaa] sm:$0xff] }
 0x43b   : > { %8867 = vmatprep.mubr.msk.f32.mxu1 %vm411_vm1, %v11606_v44  ;;  %12714 = vst [vmem:[#allocation15_spill] sm:$0xff] %v11622_v60  ;;  %v11626_v44 = vld [vmem:[#allocation2 + $0xb2] sm:$0xff] }
 0x43c   : > { %12715 = vst [vmem:[#allocation17_spill] sm:$0xff] %v11626_v44 }
 0x43e   : > { %8868 = vmatmul.mubr.msk.f32.gmra.mrb[10].mxu1 %vm411_vm1, %v11610_v51  ;;  %v11630_v51 = vld [vmem:[#allocation2 + $0xc2] sm:$0xff] }
 0x43f   : > { %8870 = vmatprep.mubr.msk.f32.mxu1 %vm411_vm1, %v11614_v48  ;;  %12716 = vst [vmem:[#allocation18_spill] sm:$0xff] %v11630_v51  ;;  %v11634_v48 = vld [vmem:[#allocation2 + $0xca] sm:$0xff] }
 0x440   : > { %12717 = vst [vmem:[#allocation19_spill] sm:$0xff] %v11634_v48 }
 0x442   : > { %8871 = vmatmul.mubr.msk.f32.gmra.mrb[12].mxu1 %vm411_vm1, %v11618_v9  ;;  %v11638_v9 = vld [vmem:[#allocation2 + $0xda] sm:$0xff] }
 0x443   : > { %8873 = vmatprep.mubr.msk.f32.mxu1 %vm411_vm1, %v11622_v60  ;;  %12718 = vst [vmem:[#allocation20_spill] sm:$0xff] %v11638_v9  ;;  %v11642_v60 = vld [vmem:[#allocation2 + $0xe2] sm:$0xff] }
 0x444   : > { %12719 = vst [vmem:[#allocation21_spill] sm:$0xff] %v11642_v60 }
 0x446   : > { %8874 = vmatmul.mubr.msk.f32.gmra.mrb[14].mxu1 %vm411_vm1, %v11626_v44  ;;  %v11646_v44 = vld [vmem:[#allocation2 + $0xf2] sm:$0xff] }
 0x447   : > { %8876 = vmatprep.mubr.msk.f32.mxu1 %vm411_vm1, %v11630_v51  ;;  %12720 = vst [vmem:[#allocation22_spill] sm:$0xff] %v11646_v44  ;;  %v11650_v51 = vld [vmem:[#allocation2 + $0xfa] sm:$0xff] }
 0x448   : > { %12721 = vst [vmem:[#allocation23_spill] sm:$0xff] %v11650_v51 }
 0x44a   : > { %8877 = vmatmul.mubr.msk.f32.gmra.mrb[16].mxu1 %vm411_vm1, %v11634_v48  ;;  %v11654_v48 = vld [vmem:[#allocation2 + $0x10a] sm:$0xff] }
 0x44b   : > { %8879 = vmatprep.mubr.msk.f32.mxu1 %vm411_vm1, %v11638_v9  ;;  %12722 = vst [vmem:[#allocation24_spill] sm:$0xff] %v11654_v48  ;;  %v11658_v9 = vld [vmem:[#allocation2 + $0x112] sm:$0xff] }
 0x44c   : > { %12723 = vst [vmem:[#allocation25_spill] sm:$0xff] %v11658_v9 }
 0x44e   : > { %8880 = vmatmul.mubr.msk.f32.gmra.mrb[18].mxu1 %vm411_vm1, %v11642_v60  ;;  %v11662_v60 = vld [vmem:[#allocation2 + $0x122] sm:$0xff] }
 0x44f   : > { %8882 = vmatprep.mubr.msk.f32.mxu1 %vm411_vm1, %v11646_v44  ;;  %12724 = vst [vmem:[#allocation30_spill] sm:$0xff] %v11662_v60  ;;  %v11666_v44 = vld [vmem:[#allocation2 + $0x12a] sm:$0xff] }
 0x450   : > { %12725 = vst [vmem:[#allocation31_spill] sm:$0xff] %v11666_v44 }
 0x452   : > { %8883 = vmatmul.mubr.msk.f32.gmra.mrb[20].mxu1 %vm411_vm1, %v11650_v51  ;;  %v11670_v51 = vld [vmem:[#allocation2 + $0x13a] sm:$0xff] }
 0x453   : > { %8885 = vmatprep.mubr.msk.f32.mxu1 %vm411_vm1, %v11654_v48  ;;  %12726 = vst [vmem:[#allocation32_spill] sm:$0xff] %v11670_v51  ;;  %v11674_v48 = vld [vmem:[#allocation2 + $0x142] sm:$0xff] }
 0x456   : > { %8886 = vmatmul.mubr.msk.f32.gmra.mrb[22].mxu1 %vm411_vm1, %v11658_v9  ;;  %v11678_v9 = vld [vmem:[#allocation2 + $0x152] sm:$0xff] }
 0x457   : > { %8888 = vmatprep.mubr.msk.f32.mxu1 %vm411_vm1, %v11662_v60  ;;  %12727 = vst [vmem:[#allocation33_spill] sm:$0xff] %v11678_v9  ;;  %v11682_v60 = vld [vmem:[#allocation2 + $0x15a] sm:$0xff] }
 0x45a   : > { %8889 = vmatmul.mubr.msk.f32.gmra.mrb[24].mxu1 %vm411_vm1, %v11666_v44  ;;  %v11686_v44 = vld [vmem:[#allocation2 + $0x16a] sm:$0xff] }
 0x45b   : > { %8891 = vmatprep.mubr.msk.f32.mxu1 %vm411_vm1, %v11670_v51  ;;  %12728 = vst [vmem:[#allocation34_spill] sm:$0xff] %v11686_v44  ;;  %v11690_v51 = vld [vmem:[#allocation2 + $0x172] sm:$0xff] }
 0x45e   : > { %8892 = vmatmul.mubr.msk.f32.gmra.mrb[26].mxu1 %vm411_vm1, %v11674_v48 }
 0x45f   : > { %8894 = vmatprep.mubr.msk.f32.mxu1 %vm411_vm1, %v11678_v9  ;;  %v7571_v9 = vld [vmem:[%s12418_s2 + $0x28] sm:$0xff] }
 0x462   : > { %8895 = vmatmul.mubr.msk.f32.gmra.mrb[28].mxu1 %vm411_vm1, %v11682_v60 }
 0x463   : > { %8897 = vmatprep.mubr.msk.f32.mxu1 %vm411_vm1, %v11686_v44 }
 0x466   : > { %8898 = vmatmul.mubr.msk.f32.gmra.mrb[30].mxu1 %vm411_vm1, %v11690_v51 }
 0x467   : > { %8902 = vmatprep.mubr.msk.f32.mxu1 %vm411_vm1, %v11443_v25  ;;  %v11758_v25 = vld [vmem:[#allocation2 + $0x180] sm:$0xff] }
 0x46a   : > { %8903 = vmatmul.mubr.msk.f32.vlgmr.msra.gmra.mrb[0].mxu1 %vm411_vm1, %v11449_v52  ;;  %v11762_v52 = vld [vmem:[#allocation2 + $0x188] sm:$0xff] }
 0x46b   : > { %8951 = vmatpush3.msra.mxu1 %v11569_v49  ;;  %8905 = vmatprep.mubr.msk.f32.mxu1 %vm411_vm1, %v11453_v56  ;;  %v7604_v49 = vld [vmem:[%s12418_s2 + $0x30] sm:$0xff] }
 0x46c   : > { %9000 = vmatprep.subr.mxu1 %v7571_v9 }
 0x46e   : > { %8906 = vmatmul.mubr.msk.f32.gmra.mrb[2].mxu1 %vm411_vm1, %v11457_v14 }
 0x46f   : > { %8908 = vmatprep.mubr.msk.f32.mxu1 %vm411_vm1, %v11461_v33 }
 0x472   : > { %8909 = vmatmul.mubr.msk.f32.gmra.mrb[4].mxu1 %vm411_vm1, %v11465_v59 }
 0x473   : > { %8911 = vmatprep.mubr.msk.f32.mxu1 %vm411_vm1, %v11469_v26 }
 0x476   : > { %8912 = vmatmul.mubr.msk.f32.gmra.mrb[6].mxu1 %vm411_vm1, %v11473_v28 }
 0x477   : > { %8914 = vmatprep.mubr.msk.f32.mxu1 %vm411_vm1, %v11477_v53 }
 0x47a   : > { %8915 = vmatmul.mubr.msk.f32.gmra.mrb[8].mxu1 %vm411_vm1, %v11481_v40 }
 0x47b   : > { %8917 = vmatprep.mubr.msk.f32.mxu1 %vm411_vm1, %v11485_v11 }
 0x47e   : > { %8918 = vmatmul.mubr.msk.f32.gmra.mrb[10].mxu1 %vm411_vm1, %v11489_v6 }
 0x47f   : > { %8920 = vmatprep.mubr.msk.f32.mxu1 %vm411_vm1, %v11493_v24 }
 0x482   : > { %8921 = vmatmul.mubr.msk.f32.gmra.mrb[12].mxu1 %vm411_vm1, %v11497_v32 }
 0x483   : > { %8923 = vmatprep.mubr.msk.f32.mxu1 %vm411_vm1, %v11501_v19 }
 0x486   : > { %8924 = vmatmul.mubr.msk.f32.gmra.mrb[14].mxu1 %vm411_vm1, %v11505_v23 }
 0x487   : > { %8926 = vmatprep.mubr.msk.f32.mxu1 %vm411_vm1, %v11509_v18 }
 0x48a   : > { %8927 = vmatmul.mubr.msk.f32.gmra.mrb[16].mxu1 %vm411_vm1, %v11513_v29 }
 0x48b   : > { %8929 = vmatprep.mubr.msk.f32.mxu1 %vm411_vm1, %v11517_v2 }
 0x48e   : > { %8930 = vmatmul.mubr.msk.f32.gmra.mrb[18].mxu1 %vm411_vm1, %v11521_v39 }
 0x48f   : > { %8932 = vmatprep.mubr.msk.f32.mxu1 %vm411_vm1, %v11525_v63 }
 0x492   : > { %8933 = vmatmul.mubr.msk.f32.gmra.mrb[20].mxu1 %vm411_vm1, %v11529_v7 }
 0x493   : > { %8935 = vmatprep.mubr.msk.f32.mxu1 %vm411_vm1, %v11533_v22 }
 0x496   : > { %8936 = vmatmul.mubr.msk.f32.gmra.mrb[22].mxu1 %vm411_vm1, %v11537_v15 }
 0x497   : > { %8938 = vmatprep.mubr.msk.f32.mxu1 %vm411_vm1, %v11541_v46 }
 0x49a   : > { %8939 = vmatmul.mubr.msk.f32.gmra.mrb[24].mxu1 %vm411_vm1, %v11545_v43 }
 0x49b   : > { %8941 = vmatprep.mubr.msk.f32.mxu1 %vm411_vm1, %v11549_v21 }
 0x49e   : > { %8942 = vmatmul.mubr.msk.f32.gmra.mrb[26].mxu1 %vm411_vm1, %v11553_v20 }
 0x49f   : > { %8944 = vmatprep.mubr.msk.f32.mxu1 %vm411_vm1, %v11557_v16 }
 0x4a2   : > { %8945 = vmatmul.mubr.msk.f32.gmra.mrb[28].mxu1 %vm411_vm1, %v11561_v36 }
 0x4a3   : > { %8947 = vmatprep.mubr.msk.f32.mxu1 %vm411_vm1, %v11758_v25 }
 0x4a6   : > { %8948 = vmatmul.mubr.msk.f32.gmra.mrb[30].mxu1 %vm411_vm1, %v11762_v52 }
 0x4a7   : > { %8952 = vmatprep.mubr.msk.f32.mxu1 %vm411_vm1, %v11316_v31  ;;  %v12729_v31 = vld [vmem:[#allocation28_spill] sm:$0xff] }
 0x4aa   : > { %8953 = vmatmul.mubr.msk.f32.vlgmr.msra.gmra.mrb[0].mxu1 %vm411_vm1, %v11318_v41  ;;  %v12730_v41 = vld [vmem:[#allocation29_spill] sm:$0xff] }
 0x4ab   : > { %9001 = vmatpush3.msra.mxu1 %v7571_v9  ;;  %8955 = vmatprep.mubr.msk.f32.mxu1 %vm411_vm1, %v11324_v10  ;;  %v11829_v9 = vld [vmem:[#allocation2 + $0x181] sm:$0xff] }
 0x4ac   : > { %9050 = vmatprep.subr.mxu1 %v7604_v49  ;;  %12731 = vst [vmem:[#allocation35_spill] sm:$0xff] %v11829_v9 }
 0x4ae   : > { %8956 = vmatmul.mubr.msk.f32.gmra.mrb[2].mxu1 %vm411_vm1, %v11328_v17 }
 0x4af   : > { %8958 = vmatprep.mubr.msk.f32.mxu1 %vm411_vm1, %v11332_v1 }
 0x4b2   : > { %8959 = vmatmul.mubr.msk.f32.gmra.mrb[4].mxu1 %vm411_vm1, %v11336_v12 }
 0x4b3   : > { %8961 = vmatprep.mubr.msk.f32.mxu1 %vm411_vm1, %v11340_v35 }
 0x4b6   : > { %8962 = vmatmul.mubr.msk.f32.gmra.mrb[6].mxu1 %vm411_vm1, %v11344_v27 }
 0x4b7   : > { %8964 = vmatprep.mubr.msk.f32.mxu1 %vm411_vm1, %v11348_v57 }
 0x4ba   : > { %8965 = vmatmul.mubr.msk.f32.gmra.mrb[8].mxu1 %vm411_vm1, %v11352_v45 }
 0x4bb   : > { %8967 = vmatprep.mubr.msk.f32.mxu1 %vm411_vm1, %v11356_v62 }
 0x4be   : > { %8968 = vmatmul.mubr.msk.f32.gmra.mrb[10].mxu1 %vm411_vm1, %v11360_v55 }
 0x4bf   : > { %8970 = vmatprep.mubr.msk.f32.mxu1 %vm411_vm1, %v11364_v8 }
 0x4c2   : > { %8971 = vmatmul.mubr.msk.f32.gmra.mrb[12].mxu1 %vm411_vm1, %v11368_v50 }
 0x4c3   : > { %8973 = vmatprep.mubr.msk.f32.mxu1 %vm411_vm1, %v11372_v30 }
 0x4c6   : > { %8974 = vmatmul.mubr.msk.f32.gmra.mrb[14].mxu1 %vm411_vm1, %v11376_v47 }
 0x4c7   : > { %8976 = vmatprep.mubr.msk.f32.mxu1 %vm411_vm1, %v11380_v54 }
 0x4ca   : > { %8977 = vmatmul.mubr.msk.f32.gmra.mrb[16].mxu1 %vm411_vm1, %v11384_v3 }
 0x4cb   : > { %8979 = vmatprep.mubr.msk.f32.mxu1 %vm411_vm1, %v11388_v37 }
 0x4ce   : > { %8980 = vmatmul.mubr.msk.f32.gmra.mrb[18].mxu1 %vm411_vm1, %v11392_v61 }
 0x4cf   : > { %8982 = vmatprep.mubr.msk.f32.mxu1 %vm411_vm1, %v11396_v34 }
 0x4d2   : > { %8983 = vmatmul.mubr.msk.f32.gmra.mrb[20].mxu1 %vm411_vm1, %v11400_v5 }
 0x4d3   : > { %8985 = vmatprep.mubr.msk.f32.mxu1 %vm411_vm1, %v11404_v13 }
 0x4d6   : > { %8986 = vmatmul.mubr.msk.f32.gmra.mrb[22].mxu1 %vm411_vm1, %v11408_v4  ;;  %v12740_v4 = vld [vmem:[#allocation10_spill] sm:$0xff] }
 0x4d7   : > { %8988 = vmatprep.mubr.msk.f32.mxu1 %vm411_vm1, %v11412_v38  ;;  %v11833_v38 = vld [vmem:[#allocation2 + $0x189] sm:$0xff] }
 0x4d8   : > { %12732 = vst [vmem:[#allocation37_spill] sm:$0xff] %v11833_v38 }
 0x4da   : > { %8989 = vmatmul.mubr.msk.f32.gmra.mrb[24].mxu1 %vm411_vm1, %v11416_v42  ;;  %v12737_v42 = vld [vmem:[#allocation7_spill] sm:$0xff] }
 0x4db   : > { %8991 = vmatprep.mubr.msk.f32.mxu1 %vm411_vm1, %v11420_v58  ;;  %v12733_v58 = vld [vmem:[#allocation36_spill] sm:$0xff] }
 0x4de   : > { %8992 = vmatmul.mubr.msk.f32.gmra.mrb[26].mxu1 %vm411_vm1, %v11424_v0  ;;  %v12734_v0 = vld [vmem:[#allocation41_spill] sm:$0xff] }
 0x4df   : > { %8994 = vmatprep.mubr.msk.f32.mxu1 %vm411_vm1, %v12729_v31  ;;  %v7637_v31 = vld [vmem:[%s12418_s2 + $0x38] sm:$0xff] }
 0x4e2   : > { %8995 = vmatmul.mubr.msk.f32.gmra.mrb[28].mxu1 %vm411_vm1, %v12730_v41  ;;  %v12735_v41 = vld [vmem:[#allocation5_spill] sm:$0xff] }
 0x4e3   : > { %8997 = vmatprep.mubr.msk.f32.mxu1 %vm411_vm1, %v11829_v9  ;;  %v12736_v9 = vld [vmem:[#allocation6_spill] sm:$0xff] }
 0x4e6   : > { %8998 = vmatmul.mubr.msk.f32.gmra.mrb[30].mxu1 %vm411_vm1, %v11833_v38  ;;  %v12738_v38 = vld [vmem:[#allocation8_spill] sm:$0xff] }
 0x4e7   : > { %9002 = vmatprep.mubr.msk.f32.mxu1 %vm411_vm1, %v12733_v58  ;;  %v12739_v58 = vld [vmem:[#allocation9_spill] sm:$0xff] }
 0x4ea   : > { %9003 = vmatmul.mubr.msk.f32.vlgmr.msra.gmra.mrb[0].mxu1 %vm411_vm1, %v12734_v0  ;;  %v12741_v0 = vld [vmem:[#allocation11_spill] sm:$0xff] }
 0x4eb   : > { %9051 = vmatpush3.msra.mxu1 %v7604_v49  ;;  %9005 = vmatprep.mubr.msk.f32.mxu1 %vm411_vm1, %v12735_v41  ;;  %v12742_v49 = vld [vmem:[#allocation12_spill] sm:$0xff]  ;;  %v12743_v41 = vld [vmem:[#allocation13_spill] sm:$0xff] }
 0x4ec   : > { %9100 = vmatprep.subr.mxu1 %v7637_v31 }
 0x4ee   : > { %9006 = vmatmul.mubr.msk.f32.gmra.mrb[2].mxu1 %vm411_vm1, %v12736_v9  ;;  %v12744_v9 = vld [vmem:[#allocation14_spill] sm:$0xff] }
 0x4ef   : > { %9008 = vmatprep.mubr.msk.f32.mxu1 %vm411_vm1, %v12737_v42  ;;  %v12745_v42 = vld [vmem:[#allocation15_spill] sm:$0xff] }
 0x4f2   : > { %9009 = vmatmul.mubr.msk.f32.gmra.mrb[4].mxu1 %vm411_vm1, %v12738_v38  ;;  %v12746_v38 = vld [vmem:[#allocation17_spill] sm:$0xff] }
 0x4f3   : > { %9011 = vmatprep.mubr.msk.f32.mxu1 %vm411_vm1, %v12739_v58  ;;  %v12747_v58 = vld [vmem:[#allocation18_spill] sm:$0xff] }
 0x4f6   : > { %9012 = vmatmul.mubr.msk.f32.gmra.mrb[6].mxu1 %vm411_vm1, %v12740_v4  ;;  %v12748_v4 = vld [vmem:[#allocation19_spill] sm:$0xff] }
 0x4f7   : > { %9014 = vmatprep.mubr.msk.f32.mxu1 %vm411_vm1, %v12741_v0  ;;  %v12749_v0 = vld [vmem:[#allocation20_spill] sm:$0xff] }
 0x4fa   : > { %9015 = vmatmul.mubr.msk.f32.gmra.mrb[8].mxu1 %vm411_vm1, %v12742_v49  ;;  %v12750_v49 = vld [vmem:[#allocation21_spill] sm:$0xff] }
 0x4fb   : > { %9017 = vmatprep.mubr.msk.f32.mxu1 %vm411_vm1, %v12743_v41  ;;  %v12751_v41 = vld [vmem:[#allocation22_spill] sm:$0xff] }
 0x4fe   : > { %9018 = vmatmul.mubr.msk.f32.gmra.mrb[10].mxu1 %vm411_vm1, %v12744_v9  ;;  %v12752_v9 = vld [vmem:[#allocation23_spill] sm:$0xff] }
 0x4ff   : > { %9020 = vmatprep.mubr.msk.f32.mxu1 %vm411_vm1, %v12745_v42  ;;  %v12753_v42 = vld [vmem:[#allocation24_spill] sm:$0xff] }
 0x502   : > { %9021 = vmatmul.mubr.msk.f32.gmra.mrb[12].mxu1 %vm411_vm1, %v12746_v38  ;;  %v12754_v38 = vld [vmem:[#allocation25_spill] sm:$0xff] }
 0x503   : > { %9023 = vmatprep.mubr.msk.f32.mxu1 %vm411_vm1, %v12747_v58  ;;  %v12755_v58 = vld [vmem:[#allocation30_spill] sm:$0xff] }
 0x506   : > { %9024 = vmatmul.mubr.msk.f32.gmra.mrb[14].mxu1 %vm411_vm1, %v12748_v4  ;;  %v12756_v4 = vld [vmem:[#allocation31_spill] sm:$0xff] }
 0x507   : > { %9026 = vmatprep.mubr.msk.f32.mxu1 %vm411_vm1, %v12749_v0  ;;  %v12757_v0 = vld [vmem:[#allocation32_spill] sm:$0xff] }
 0x50a   : > { %9027 = vmatmul.mubr.msk.f32.gmra.mrb[16].mxu1 %vm411_vm1, %v12750_v49 }
 0x50b   : > { %9029 = vmatprep.mubr.msk.f32.mxu1 %vm411_vm1, %v12751_v41  ;;  %v12758_v41 = vld [vmem:[#allocation33_spill] sm:$0xff] }
 0x50e   : > { %9030 = vmatmul.mubr.msk.f32.gmra.mrb[18].mxu1 %vm411_vm1, %v12752_v9 }
 0x50f   : > { %9032 = vmatprep.mubr.msk.f32.mxu1 %vm411_vm1, %v12753_v42 }
 0x512   : > { %9033 = vmatmul.mubr.msk.f32.gmra.mrb[20].mxu1 %vm411_vm1, %v12754_v38 }
 0x513   : > { %9035 = vmatprep.mubr.msk.f32.mxu1 %vm411_vm1, %v12755_v58  ;;  %v11900_v58 = vld [vmem:[#allocation2 + $0x182] sm:$0xff] }
 0x516   : > { %9036 = vmatmul.mubr.msk.f32.gmra.mrb[22].mxu1 %vm411_vm1, %v12756_v4 }
 0x517   : > { %9038 = vmatprep.mubr.msk.f32.mxu1 %vm411_vm1, %v12757_v0  ;;  %v11904_v0 = vld [vmem:[#allocation2 + $0x18a] sm:$0xff] }
 0x51a   : > { %9039 = vmatmul.mubr.msk.f32.gmra.mrb[24].mxu1 %vm411_vm1, %v11674_v48 }
 0x51b   : > { %9041 = vmatprep.mubr.msk.f32.mxu1 %vm411_vm1, %v12758_v41 }
 0x51e   : > { %9042 = vmatmul.mubr.msk.f32.gmra.mrb[26].mxu1 %vm411_vm1, %v11682_v60 }
 0x51f   : > { %9044 = vmatprep.mubr.msk.f32.mxu1 %vm411_vm1, %v11686_v44  ;;  %v7670_v44 = vld [vmem:[%s12418_s2 + $0x40] sm:$0xff] }
 0x522   : > { %9045 = vmatmul.mubr.msk.f32.gmra.mrb[28].mxu1 %vm411_vm1, %v11690_v51 }
 0x523   : > { %9047 = vmatprep.mubr.msk.f32.mxu1 %vm411_vm1, %v11900_v58 }
 0x526   : > { %9048 = vmatmul.mubr.msk.f32.gmra.mrb[30].mxu1 %vm411_vm1, %v11904_v0 }
 0x527   : > { %9052 = vmatprep.mubr.msk.f32.mxu1 %vm411_vm1, %v11453_v56  ;;  %v5613_v56 = vld [vmem:[#allocation2 + $0x198] sm:$0xff] }
 0x52a   : > { %9053 = vmatmul.mubr.msk.f32.vlgmr.msra.gmra.mrb[0].mxu1 %vm411_vm1, %v11457_v14  ;;  %v5614_v14 = vld [vmem:[#allocation2 + $0x1a0] sm:$0xff] }
 0x52b   : > { %9101 = vmatpush3.msra.mxu1 %v7637_v31  ;;  %9055 = vmatprep.mubr.msk.f32.mxu1 %vm411_vm1, %v11461_v33  ;;  %v12778_v33 = vld [vmem:[#allocation15_spill] sm:$0xff] }
 0x52c   : > { %9150 = vmatprep.subr.mxu1 %v7670_v44 }
 0x52e   : > { %9056 = vmatmul.mubr.msk.f32.gmra.mrb[2].mxu1 %vm411_vm1, %v11465_v59  ;;  %v12779_v59 = vld [vmem:[#allocation17_spill] sm:$0xff] }
 0x52f   : > { %9058 = vmatprep.mubr.msk.f32.mxu1 %vm411_vm1, %v11469_v26  ;;  %v12780_v26 = vld [vmem:[#allocation18_spill] sm:$0xff] }
 0x532   : > { %9059 = vmatmul.mubr.msk.f32.gmra.mrb[4].mxu1 %vm411_vm1, %v11473_v28  ;;  %v12781_v28 = vld [vmem:[#allocation19_spill] sm:$0xff] }
 0x533   : > { %9061 = vmatprep.mubr.msk.f32.mxu1 %vm411_vm1, %v11477_v53  ;;  %v12782_v53 = vld [vmem:[#allocation20_spill] sm:$0xff] }
 0x536   : > { %9062 = vmatmul.mubr.msk.f32.gmra.mrb[6].mxu1 %vm411_vm1, %v11481_v40  ;;  %v12783_v40 = vld [vmem:[#allocation22_spill] sm:$0xff] }
 0x537   : > { %9064 = vmatprep.mubr.msk.f32.mxu1 %vm411_vm1, %v11485_v11  ;;  %v12784_v11 = vld [vmem:[#allocation30_spill] sm:$0xff] }
 0x53a   : > { %9065 = vmatmul.mubr.msk.f32.gmra.mrb[8].mxu1 %vm411_vm1, %v11489_v6  ;;  %v12785_v6 = vld [vmem:[#allocation32_spill] sm:$0xff] }
 0x53b   : > { %9067 = vmatprep.mubr.msk.f32.mxu1 %vm411_vm1, %v11493_v24 }
 0x53e   : > { %9068 = vmatmul.mubr.msk.f32.gmra.mrb[10].mxu1 %vm411_vm1, %v11497_v32 }
 0x53f   : > { %9070 = vmatprep.mubr.msk.f32.mxu1 %vm411_vm1, %v11501_v19 }
 0x542   : > { %9071 = vmatmul.mubr.msk.f32.gmra.mrb[12].mxu1 %vm411_vm1, %v11505_v23 }
 0x543   : > { %9073 = vmatprep.mubr.msk.f32.mxu1 %vm411_vm1, %v11509_v18 }
 0x546   : > { %9074 = vmatmul.mubr.msk.f32.gmra.mrb[14].mxu1 %vm411_vm1, %v11513_v29 }
 0x547   : > { %9076 = vmatprep.mubr.msk.f32.mxu1 %vm411_vm1, %v11517_v2 }
 0x54a   : > { %9077 = vmatmul.mubr.msk.f32.gmra.mrb[16].mxu1 %vm411_vm1, %v11521_v39 }
 0x54b   : > { %9079 = vmatprep.mubr.msk.f32.mxu1 %vm411_vm1, %v11525_v63 }
 0x54e   : > { %9080 = vmatmul.mubr.msk.f32.gmra.mrb[18].mxu1 %vm411_vm1, %v11529_v7 }
 0x54f   : > { %9082 = vmatprep.mubr.msk.f32.mxu1 %vm411_vm1, %v11533_v22 }
 0x552   : > { %9083 = vmatmul.mubr.msk.f32.gmra.mrb[20].mxu1 %vm411_vm1, %v11537_v15 }
 0x553   : > { %9085 = vmatprep.mubr.msk.f32.mxu1 %vm411_vm1, %v11541_v46 }
 0x556   : > { %9086 = vmatmul.mubr.msk.f32.gmra.mrb[22].mxu1 %vm411_vm1, %v11545_v43 }
 0x557   : > { %9088 = vmatprep.mubr.msk.f32.mxu1 %vm411_vm1, %v11549_v21 }
 0x55a   : > { %9089 = vmatmul.mubr.msk.f32.gmra.mrb[24].mxu1 %vm411_vm1, %v11553_v20 }
 0x55b   : > { %9091 = vmatprep.mubr.msk.f32.mxu1 %vm411_vm1, %v11557_v16 }
 0x55e   : > { %9092 = vmatmul.mubr.msk.f32.gmra.mrb[26].mxu1 %vm411_vm1, %v11561_v36 }
 0x55f   : > { %9094 = vmatprep.mubr.msk.f32.mxu1 %vm411_vm1, %v11758_v25 }
 0x562   : > { %9095 = vmatmul.mubr.msk.f32.gmra.mrb[28].mxu1 %vm411_vm1, %v11762_v52 }
 0x563   : > { %9097 = vmatprep.mubr.msk.f32.mxu1 %vm411_vm1, %v5613_v56 }
 0x566   : > { %9098 = vmatmul.mubr.msk.f32.gmra.mrb[30].mxu1 %vm411_vm1, %v5614_v14 }
 0x567   : > { %9102 = vmatprep.mubr.msk.f32.mxu1 %vm411_vm1, %v11324_v10  ;;  %v12759_v10 = vld [vmem:[#allocation3_spill] sm:$0xff] }
 0x56a   : > { %9103 = vmatmul.mubr.msk.f32.vlgmr.msra.gmra.mrb[0].mxu1 %vm411_vm1, %v11328_v17  ;;  %v12760_v17 = vld [vmem:[#allocation4_spill] sm:$0xff] }
 0x56b   : > { %9151 = vmatpush3.msra.mxu1 %v7670_v44  ;;  %9105 = vmatprep.mubr.msk.f32.mxu1 %vm411_vm1, %v11332_v1  ;;  %v12761_v1 = vld [vmem:[#allocation16_spill] sm:$0xff] }
 0x56e   : > { %9106 = vmatmul.mubr.msk.f32.gmra.mrb[2].mxu1 %vm411_vm1, %v11336_v12  ;;  %v12762_v12 = vld [vmem:[#allocation26_spill] sm:$0xff] }
 0x56f   : > { %9108 = vmatprep.mubr.msk.f32.mxu1 %vm411_vm1, %v11340_v35  ;;  %v12763_v35 = vld [vmem:[#allocation27_spill] sm:$0xff] }
 0x572   : > { %9109 = vmatmul.mubr.msk.f32.gmra.mrb[4].mxu1 %vm411_vm1, %v11344_v27  ;;  %v12764_v27 = vld [vmem:[#allocation28_spill] sm:$0xff] }
 0x573   : > { %9111 = vmatprep.mubr.msk.f32.mxu1 %vm411_vm1, %v11348_v57  ;;  %v12765_v57 = vld [vmem:[#allocation29_spill] sm:$0xff] }
 0x576   : > { %9112 = vmatmul.mubr.msk.f32.gmra.mrb[6].mxu1 %vm411_vm1, %v11352_v45  ;;  %v12766_v45 = vld [vmem:[#allocation35_spill] sm:$0xff] }
 0x577   : > { %9114 = vmatprep.mubr.msk.f32.mxu1 %vm411_vm1, %v11356_v62  ;;  %v6000_v62 = vld [vmem:[#allocation2 + $0x199] sm:$0xff] }
 0x57a   : > { %9115 = vmatmul.mubr.msk.f32.gmra.mrb[8].mxu1 %vm411_vm1, %v11360_v55  ;;  %v12767_v55 = vld [vmem:[#allocation37_spill] sm:$0xff] }
 0x57b   : > { %9117 = vmatprep.mubr.msk.f32.mxu1 %vm411_vm1, %v11364_v8  ;;  %v6001_v8 = vld [vmem:[#allocation2 + $0x1a1] sm:$0xff] }
 0x57e   : > { %9118 = vmatmul.mubr.msk.f32.gmra.mrb[10].mxu1 %vm411_vm1, %v11368_v50  ;;  %v12768_v50 = vld [vmem:[#allocation5_spill] sm:$0xff] }
 0x57f   : > { %9120 = vmatprep.mubr.msk.f32.mxu1 %vm411_vm1, %v11372_v30  ;;  %v12769_v30 = vld [vmem:[#allocation6_spill] sm:$0xff] }
 0x582   : > { %9121 = vmatmul.mubr.msk.f32.gmra.mrb[12].mxu1 %vm411_vm1, %v11376_v47  ;;  %v12770_v47 = vld [vmem:[#allocation7_spill] sm:$0xff] }
 0x583   : > { %9123 = vmatprep.mubr.msk.f32.mxu1 %vm411_vm1, %v11380_v54  ;;  %v12771_v54 = vld [vmem:[#allocation8_spill] sm:$0xff] }
 0x586   : > { %9124 = vmatmul.mubr.msk.f32.gmra.mrb[14].mxu1 %vm411_vm1, %v11384_v3  ;;  %v12772_v3 = vld [vmem:[#allocation9_spill] sm:$0xff] }
 0x587   : > { %9126 = vmatprep.mubr.msk.f32.mxu1 %vm411_vm1, %v11388_v37  ;;  %v12773_v37 = vld [vmem:[#allocation10_spill] sm:$0xff] }
 0x58a   : > { %9127 = vmatmul.mubr.msk.f32.gmra.mrb[16].mxu1 %vm411_vm1, %v11392_v61  ;;  %v12774_v61 = vld [vmem:[#allocation11_spill] sm:$0xff] }
 0x58b   : > { %9129 = vmatprep.mubr.msk.f32.mxu1 %vm411_vm1, %v11396_v34  ;;  %v12775_v34 = vld [vmem:[#allocation12_spill] sm:$0xff] }
 0x58e   : > { %9130 = vmatmul.mubr.msk.f32.gmra.mrb[18].mxu1 %vm411_vm1, %v11400_v5  ;;  %v12776_v5 = vld [vmem:[#allocation13_spill] sm:$0xff] }
 0x58f   : > { %9132 = vmatprep.mubr.msk.f32.mxu1 %vm411_vm1, %v11404_v13  ;;  %v12777_v13 = vld [vmem:[#allocation14_spill] sm:$0xff] }
 0x592   : > { %9133 = vmatmul.mubr.msk.f32.gmra.mrb[20].mxu1 %vm411_vm1, %v12759_v10 }
 0x593   : > { %9135 = vmatprep.mubr.msk.f32.mxu1 %vm411_vm1, %v12760_v17 }
 0x596   : > { %9136 = vmatmul.mubr.msk.f32.gmra.mrb[22].mxu1 %vm411_vm1, %v12761_v1 }
 0x597   : > { %9138 = vmatprep.mubr.msk.f32.mxu1 %vm411_vm1, %v12762_v12 }
 0x59a   : > { %9139 = vmatmul.mubr.msk.f32.gmra.mrb[24].mxu1 %vm411_vm1, %v12763_v35 }
 0x59b   : > { %9141 = vmatprep.mubr.msk.f32.mxu1 %vm411_vm1, %v12764_v27 }
 0x59e   : > { %9142 = vmatmul.mubr.msk.f32.gmra.mrb[26].mxu1 %vm411_vm1, %v12765_v57 }
 0x59f   : > { %9144 = vmatprep.mubr.msk.f32.mxu1 %vm411_vm1, %v12766_v45 }
 0x5a2   : > { %9145 = vmatmul.mubr.msk.f32.gmra.mrb[28].mxu1 %vm411_vm1, %v12767_v55 }
 0x5a3   : > { %9147 = vmatprep.mubr.msk.f32.mxu1 %vm411_vm1, %v6000_v62 }
 0x5a6   : > { %9148 = vmatmul.mubr.msk.f32.gmra.mrb[30].mxu1 %vm411_vm1, %v6001_v8 }
 0x5a7   : > { %9152 = vmatprep.mubr.msk.f32.mxu1 %vm411_vm1, %v12768_v50 }
 0x5aa   : > { %9153 = vmatmul.mubr.msk.f32.vlgmr.msra.gmra.mrb[0].mxu1 %vm411_vm1, %v12769_v30 }
 0x5ab   : > { %9155 = vmatprep.mubr.msk.f32.mxu1 %vm411_vm1, %v12770_v47 }
 0x5ae   : > { %9156 = vmatmul.mubr.msk.f32.gmra.mrb[2].mxu1 %vm411_vm1, %v12771_v54 }
 0x5af   : > { %9158 = vmatprep.mubr.msk.f32.mxu1 %vm411_vm1, %v12772_v3 }
 0x5b2   : > { %9159 = vmatmul.mubr.msk.f32.gmra.mrb[4].mxu1 %vm411_vm1, %v12773_v37 }
 0x5b3   : > { %9161 = vmatprep.mubr.msk.f32.mxu1 %vm411_vm1, %v12774_v61 }
 0x5b6   : > { %9162 = vmatmul.mubr.msk.f32.gmra.mrb[6].mxu1 %vm411_vm1, %v12775_v34 }
 0x5b7   : > { %9164 = vmatprep.mubr.msk.f32.mxu1 %vm411_vm1, %v12776_v5 }
 0x5ba   : > { %9165 = vmatmul.mubr.msk.f32.gmra.mrb[8].mxu1 %vm411_vm1, %v12777_v13 }
 0x5bb   : > { %9167 = vmatprep.mubr.msk.f32.mxu1 %vm411_vm1, %v12778_v33 }
 0x5be   : > { %9168 = vmatmul.mubr.msk.f32.gmra.mrb[10].mxu1 %vm411_vm1, %v12779_v59 }
 0x5bf   : > { %9170 = vmatprep.mubr.msk.f32.mxu1 %vm411_vm1, %v12780_v26 }
 0x5c2   : > { %9171 = vmatmul.mubr.msk.f32.gmra.mrb[12].mxu1 %vm411_vm1, %v12781_v28 }
 0x5c3   : > { %9173 = vmatprep.mubr.msk.f32.mxu1 %vm411_vm1, %v12782_v53 }
 0x5c6   : > { %9174 = vmatmul.mubr.msk.f32.gmra.mrb[14].mxu1 %vm411_vm1, %v12750_v49 }
 0x5c7   : > { %9176 = vmatprep.mubr.msk.f32.mxu1 %vm411_vm1, %v12783_v40 }
 0x5ca   : > { %9177 = vmatmul.mubr.msk.f32.gmra.mrb[16].mxu1 %vm411_vm1, %v12752_v9 }
 0x5cb   : > { %9179 = vmatprep.mubr.msk.f32.mxu1 %vm411_vm1, %v12753_v42  ;;  %v12786_v42 = vld [vmem:[#allocation34_spill] sm:$0xff] }
 0x5ce   : > { %9180 = vmatmul.mubr.msk.f32.gmra.mrb[18].mxu1 %vm411_vm1, %v12754_v38  ;;  %v6388_v38 = vld [vmem:[#allocation2 + $0x1a2] sm:$0xff] }
 0x5cf   : > { %9182 = vmatprep.mubr.msk.f32.mxu1 %vm411_vm1, %v12784_v11 }
 0x5d2   : > { %9183 = vmatmul.mubr.msk.f32.gmra.mrb[20].mxu1 %vm411_vm1, %v12756_v4  ;;  %v6387_v4 = vld [vmem:[#allocation2 + $0x19a] sm:$0xff] }
 0x5d3   : > { %9185 = vmatprep.mubr.msk.f32.mxu1 %vm411_vm1, %v12785_v6 }
 0x5d6   : > { %9186 = vmatmul.mubr.msk.f32.gmra.mrb[22].mxu1 %vm411_vm1, %v11674_v48 }
 0x5d7   : > { %9188 = vmatprep.mubr.msk.f32.mxu1 %vm411_vm1, %v12758_v41 }
 0x5da   : > { %9189 = vmatmul.mubr.msk.f32.gmra.mrb[24].mxu1 %vm411_vm1, %v11682_v60 }
 0x5db   : > { %9191 = vmatprep.mubr.msk.f32.mxu1 %vm411_vm1, %v12786_v42 }
 0x5de   : > { %9192 = vmatmul.mubr.msk.f32.gmra.mrb[26].mxu1 %vm411_vm1, %v11690_v51 }
 0x5df   : > { %9194 = vmatprep.mubr.msk.f32.mxu1 %vm411_vm1, %v11900_v58 }
 0x5e2   : > { %9195 = vmatmul.mubr.msk.f32.gmra.mrb[28].mxu1 %vm411_vm1, %v11904_v0 }
 0x5e3   : > { %9197 = vmatprep.mubr.msk.f32.mxu1 %vm411_vm1, %v6387_v4 }
 0x5e6   : > { %9198 = vmatmul.mubr.msk.f32.gmra.mrb[30].mxu1 %vm411_vm1, %v6388_v38 }
 0x67d   : > { %v12097_v48 = vpop.f32.mrb[0].mxu1 }
 0x67e   : > { %v6745_v24 = vsel %vm411_vm1, %v12097_v48, 0.0  ;;  %v12101_v32 = vpop.f32.mrb[1].mxu1 }
 0x67f   : > { %v6744_v19 = vsel %vm411_vm1, %v12101_v32, 0.0 }
 0x680   : > { %v6746_v23 = vadd.f32 %v6745_v24, %v6744_v19 }
 0x681   : > { %v12105_v18 = vpop.f32.mrb[2].mxu1 }
 0x682   : > { %v12107_v29 = vpop.f32.mrb[3].mxu1  ;;  %v6749_v63 = vsel %vm411_vm1, %v12105_v18, 0.0 }
 0x683   : > { %v6747_v2 = vsel %vm411_vm1, %v12107_v29, 0.0 }
 0x684   : > { %v6748_v39 = vadd.f32 %v6747_v2, %v6746_v23 }
 0x685   : > { %v12113_v7 = vpop.f32.mrb[4].mxu1 }
 0x686   : > { %v12115_v22 = vpop.f32.mrb[5].mxu1  ;;  %v6750_v15 = vadd.f32 %v6749_v63, %v6748_v39  ;;  %v6753_v21 = vsel %vm411_vm1, %v12113_v7, 0.0 }
 0x687   : > { %v6751_v46 = vsel %vm411_vm1, %v12115_v22, 0.0 }
 0x688   : > { %v6752_v43 = vadd.f32 %v6751_v46, %v6750_v15 }
 0x689   : > { %v12121_v20 = vpop.f32.mrb[6].mxu1 }
 0x68a   : > { %v12123_v16 = vpop.f32.mrb[7].mxu1  ;;  %v6754_v36 = vadd.f32 %v6753_v21, %v6752_v43  ;;  %v6757_v51 = vsel %vm411_vm1, %v12121_v20, 0.0 }
 0x68b   : > { %v6755_v60 = vsel %vm411_vm1, %v12123_v16, 0.0 }
 0x68c   : > { %v6756_v44 = vadd.f32 %v6755_v60, %v6754_v36 }
 0x68d   : > { %v12129_v25 = vpop.f32.mrb[8].mxu1 }
 0x68e   : > { %v12131_v52 = vpop.f32.mrb[9].mxu1  ;;  %v6758_v31 = vadd.f32 %v6757_v51, %v6756_v44  ;;  %v6761_v58 = vsel %vm411_vm1, %v12129_v25, 0.0 }
 0x68f   : > { %v6759_v41 = vsel %vm411_vm1, %v12131_v52, 0.0 }
 0x690   : > { %v6760_v9 = vadd.f32 %v6759_v41, %v6758_v31 }
 0x691   : > { %v12137_v0 = vpop.f32.mrb[10].mxu1 }
 0x692   : > { %v12139_v49 = vpop.f32.mrb[11].mxu1  ;;  %v6762_v56 = vadd.f32 %v6761_v58, %v6760_v9  ;;  %v6765_v17 = vsel %vm411_vm1, %v12137_v0, 0.0 }
 0x693   : > { %v6763_v14 = vsel %vm411_vm1, %v12139_v49, 0.0 }
 0x694   : > { %v6764_v10 = vadd.f32 %v6763_v14, %v6762_v56 }
 0x695   : > { %v12145_v1 = vpop.f32.mrb[12].mxu1 }
 0x696   : > { %v12147_v12 = vpop.f32.mrb[13].mxu1  ;;  %v6766_v35 = vadd.f32 %v6765_v17, %v6764_v10  ;;  %v6769_v45 = vsel %vm411_vm1, %v12145_v1, 0.0 }
 0x697   : > { %v6767_v27 = vsel %vm411_vm1, %v12147_v12, 0.0 }
 0x698   : > { %v6768_v57 = vadd.f32 %v6767_v27, %v6766_v35 }
 0x699   : > { %v12153_v62 = vpop.f32.mrb[14].mxu1 }
 0x69a   : > { %v12155_v55 = vpop.f32.mrb[15].mxu1  ;;  %v6770_v8 = vadd.f32 %v6769_v45, %v6768_v57  ;;  %v6773_v47 = vsel %vm411_vm1, %v12153_v62, 0.0 }
 0x69b   : > { %v6771_v50 = vsel %vm411_vm1, %v12155_v55, 0.0 }
 0x69c   : > { %v6772_v30 = vadd.f32 %v6771_v50, %v6770_v8 }
 0x69d   : > { %v12161_v54 = vpop.f32.mrb[16].mxu1 }
 0x69e   : > { %v12163_v3 = vpop.f32.mrb[17].mxu1  ;;  %v6774_v37 = vadd.f32 %v6773_v47, %v6772_v30  ;;  %v6777_v5 = vsel %vm411_vm1, %v12161_v54, 0.0 }
 0x69f   : > { %v6775_v61 = vsel %vm411_vm1, %v12163_v3, 0.0 }
 0x6a0   : > { %v6776_v34 = vadd.f32 %v6775_v61, %v6774_v37 }
 0x6a1   : > { %v12169_v13 = vpop.f32.mrb[18].mxu1 }
 0x6a2   : > { %v12171_v33 = vpop.f32.mrb[19].mxu1  ;;  %v6778_v59 = vadd.f32 %v6777_v5, %v6776_v34  ;;  %v6781_v53 = vsel %vm411_vm1, %v12169_v13, 0.0 }
 0x6a3   : > { %v6779_v26 = vsel %vm411_vm1, %v12171_v33, 0.0 }
 0x6a4   : > { %v6780_v28 = vadd.f32 %v6779_v26, %v6778_v59 }
 0x6a5   : > { %v12177_v40 = vpop.f32.mrb[20].mxu1 }
 0x6a6   : > { %v12179_v11 = vpop.f32.mrb[21].mxu1  ;;  %v6782_v6 = vadd.f32 %v6781_v53, %v6780_v28  ;;  %v6785_v38 = vsel %vm411_vm1, %v12177_v40, 0.0 }
 0x6a7   : > { %v6783_v42 = vsel %vm411_vm1, %v12179_v11, 0.0 }
 0x6a8   : > { %v6784_v4 = vadd.f32 %v6783_v42, %v6782_v6 }
 0x6a9   : > { %v9187_v24 = vpop.f32.mrb[22].mxu1 }
 0x6aa   : > { %v6663_v19 = vpop.f32.mrb[23].mxu1  ;;  %v6786_v23 = vadd.f32 %v6785_v38, %v6784_v4  ;;  %v6789_v63 = vsel %vm411_vm1, %v9187_v24, 0.0 }
 0x6ab   : > { %v6787_v2 = vsel %vm411_vm1, %v6663_v19, 0.0 }
 0x6ac   : > { %v6788_v39 = vadd.f32 %v6787_v2, %v6786_v23 }
 0x6ad   : > { %v9190_v15 = vpop.f32.mrb[24].mxu1 }
 0x6ae   : > { %v6673_v46 = vpop.f32.mrb[25].mxu1  ;;  %v6790_v43 = vadd.f32 %v6789_v63, %v6788_v39  ;;  %v6793_v60 = vsel %vm411_vm1, %v9190_v15, 0.0 }
 0x6af   : > { %v6791_v21 = vsel %vm411_vm1, %v6673_v46, 0.0 }
 0x6b0   : > { %v6792_v36 = vadd.f32 %v6791_v21, %v6790_v43 }
 0x6b1   : > { %v9193_v44 = vpop.f32.mrb[26].mxu1 }
 0x6b2   : > { %v6683_v51 = vpop.f32.mrb[27].mxu1  ;;  %v6794_v31 = vadd.f32 %v6793_v60, %v6792_v36  ;;  %v6797_v58 = vsel %vm411_vm1, %v9193_v44, 0.0 }
 0x6b3   : > { %v6795_v41 = vsel %vm411_vm1, %v6683_v51, 0.0 }
 0x6b4   : > { %v6796_v9 = vadd.f32 %v6795_v41, %v6794_v31 }
 0x6b5   : > { %v9196_v56 = vpop.f32.mrb[28].mxu1 }
 0x6b6   : > { %v6693_v14 = vpop.f32.mrb[29].mxu1  ;;  %v6798_v10 = vadd.f32 %v6797_v58, %v6796_v9  ;;  %v6801_v27 = vsel %vm411_vm1, %v9196_v56, 0.0 }
 0x6b7   : > { %v6799_v17 = vsel %vm411_vm1, %v6693_v14, 0.0 }
 0x6b8   : > { %v6800_v35 = vadd.f32 %v6799_v17, %v6798_v10 }
 0x6b9   : > { %v9199_v57 = vpop.f32.mrb[30].mxu1 }
 0x6ba   : > { %v6703_v45 = vpop.f32.mrb[31].mxu1  ;;  %v6802_v8 = vadd.f32 %v6801_v27, %v6800_v35  ;;  %v6805_v47 = vsel %vm411_vm1, %v9199_v57, 0.0 }
 0x6bb   : > { %v6803_v50 = vsel %vm411_vm1, %v6703_v45, 0.0 }
 0x6bc   : > { %v6804_v30 = vadd.f32 %v6803_v50, %v6802_v8 }
 0x6be   : > { %v6806_v37 = vadd.f32 %v6805_v47, %v6804_v30 }
 0x6c0   : > { %v6807_v61 = vrot.slane %v6806_v37, 4 }
 0x6c2   : > { %v6808_v34 = vadd.f32 %v6807_v61, %v6806_v37 }
 0x6c4   : > { %v6809_v5 = vrot.slane %v6808_v34, 2 }
 0x6c6   : > { %v6810_v59 = vadd.f32 %v6809_v5, %v6808_v34 }
 0x6c8   : > { %v6811_v26 = vrot.slane %v6810_v59, 1 }
 0x6ca   : > { %v6812_v28 = vadd.f32 %v6811_v26, %v6810_v59 }
 0x6cc   : > { %v6813_v53 = vmul.f32 0.00390625, %v6812_v28 }
 0x6ce   : > { %v12196_v6 = vsub.f32 %v12101_v32, %v6813_v53  ;;  %v12199_v42 = vsub.f32 %v12097_v48, %v6813_v53  ;;  %v12202_v4 = vsub.f32 %v12107_v29, %v6813_v53  ;;  %v12205_v38 = vsub.f32 %v12105_v18, %v6813_v53 }
 0x6cf   : > { %v12208_v23 = vsub.f32 %v12115_v22, %v6813_v53  ;;  %v12211_v2 = vsub.f32 %v12113_v7, %v6813_v53  ;;  %v12214_v39 = vsub.f32 %v12123_v16, %v6813_v53  ;;  %v12217_v32 = vsub.f32 %v12121_v20, %v6813_v53 }
 0x6d0   : > { %v12220_v48 = vsub.f32 %v12131_v52, %v6813_v53  ;;  %v12223_v29 = vsub.f32 %v12129_v25, %v6813_v53  ;;  %v12226_v18 = vsub.f32 %v12139_v49, %v6813_v53  ;;  %v12229_v22 = vsub.f32 %v12137_v0, %v6813_v53 }
 0x6d1   : > { %v12232_v7 = vsub.f32 %v12147_v12, %v6813_v53  ;;  %v12235_v16 = vsub.f32 %v12145_v1, %v6813_v53  ;;  %v12238_v20 = vsub.f32 %v12155_v55, %v6813_v53  ;;  %v12241_v52 = vsub.f32 %v12153_v62, %v6813_v53 }
 0x6d2   : > { %v12244_v25 = vsub.f32 %v12163_v3, %v6813_v53  ;;  %v12247_v49 = vsub.f32 %v12161_v54, %v6813_v53  ;;  %v12250_v0 = vsub.f32 %v12171_v33, %v6813_v53  ;;  %v12253_v12 = vsub.f32 %v12169_v13, %v6813_v53 }
 0x6d3   : > { %v12256_v1 = vsub.f32 %v12179_v11, %v6813_v53  ;;  %v12259_v55 = vsub.f32 %v12177_v40, %v6813_v53  ;;  %v12261_v62 = vsub.f32 %v6663_v19, %v6813_v53  ;;  %v12263_v63 = vsub.f32 %v9187_v24, %v6813_v53 }
 0x6d4   : > { %v12265_v3 = vsub.f32 %v6673_v46, %v6813_v53  ;;  %v12267_v54 = vsub.f32 %v9190_v15, %v6813_v53  ;;  %v12269_v43 = vsub.f32 %v6683_v51, %v6813_v53  ;;  %v12271_v33 = vsub.f32 %v9193_v44, %v6813_v53 }
 0x6d5   : > { %v12273_v13 = vsub.f32 %v6693_v14, %v6813_v53  ;;  %v12275_v21 = vsub.f32 %v9196_v56, %v6813_v53  ;;  %v12277_v11 = vsub.f32 %v6703_v45, %v6813_v53  ;;  %v12279_v40 = vsub.f32 %v9199_v57, %v6813_v53 }
 0x6d6   : > { %v6846_v24 = vmul.f32 %v12196_v6, %v12196_v6  ;;  %v6847_v19 = vmul.f32 %v12199_v42, %v12199_v42  ;;  %v6848_v15 = vmul.f32 %v12202_v4, %v12202_v4  ;;  %v6849_v46 = vmul.f32 %v12205_v38, %v12205_v38 }
 0x6d7   : > { %v6850_v51 = vmul.f32 %v12208_v23, %v12208_v23  ;;  %v6851_v9 = vmul.f32 %v12211_v2, %v12211_v2  ;;  %v6852_v14 = vmul.f32 %v12214_v39, %v12214_v39  ;;  %v6853_v35 = vmul.f32 %v12217_v32, %v12217_v32 }
 0x6d8   : > { %v6878_v36 = vsel %vm411_vm1, %v6846_v24, 0.0  ;;  %v6879_v60 = vsel %vm411_vm1, %v6847_v19, 0.0  ;;  %v6881_v31 = vsel %vm411_vm1, %v6848_v15, 0.0  ;;  %v6883_v58 = vsel %vm411_vm1, %v6849_v46, 0.0 }
 0x6d9   : > { %v6880_v44 = vadd.f32 %v6879_v60, %v6878_v36  ;;  %v6885_v10 = vsel %vm411_vm1, %v6850_v51, 0.0  ;;  %v6887_v27 = vsel %vm411_vm1, %v6851_v9, 0.0  ;;  %v6854_v45 = vmul.f32 %v12220_v48, %v12220_v48 }
 0x6da   : > { %v6889_v8 = vsel %vm411_vm1, %v6852_v14, 0.0  ;;  %v6855_v30 = vmul.f32 %v12223_v29, %v12223_v29  ;;  %v6891_v47 = vsel %vm411_vm1, %v6853_v35, 0.0  ;;  %v6856_v61 = vmul.f32 %v12226_v18, %v12226_v18 }
 0x6db   : > { %v6882_v41 = vadd.f32 %v6881_v31, %v6880_v44  ;;  %v6893_v34 = vsel %vm411_vm1, %v6854_v45, 0.0  ;;  %v6857_v59 = vmul.f32 %v12229_v22, %v12229_v22  ;;  %v6858_v53 = vmul.f32 %v12232_v7, %v12232_v7 }
 0x6dc   : > { %v6895_v26 = vsel %vm411_vm1, %v6855_v30, 0.0  ;;  %v6897_v24 = vsel %vm411_vm1, %v6856_v61, 0.0  ;;  %v6859_v15 = vmul.f32 %v12235_v16, %v12235_v16  ;;  %v6860_v60 = vmul.f32 %v12238_v20, %v12238_v20 }
 0x6dd   : > { %v6884_v56 = vadd.f32 %v6883_v58, %v6882_v41  ;;  %v6899_v46 = vsel %vm411_vm1, %v6857_v59, 0.0  ;;  %v6901_v44 = vsel %vm411_vm1, %v6858_v53, 0.0  ;;  %v6861_v31 = vmul.f32 %v12241_v52, %v12241_v52 }
 0x6de   : > { %v6903_v41 = vsel %vm411_vm1, %v6859_v15, 0.0  ;;  %v6862_v58 = vmul.f32 %v12244_v25, %v12244_v25 }
 0x6df   : > { %v6886_v17 = vadd.f32 %v6885_v10, %v6884_v56  ;;  %v6905_v56 = vsel %vm411_vm1, %v6860_v60, 0.0  ;;  %v6863_v10 = vmul.f32 %v12247_v49, %v12247_v49 }
 0x6e1   : > { %v6888_v57 = vadd.f32 %v6887_v27, %v6886_v17  ;;  %v6907_v17 = vsel %vm411_vm1, %v6861_v31, 0.0  ;;  %v6864_v27 = vmul.f32 %v12250_v0, %v12250_v0 }
 0x6e3   : > { %v6890_v50 = vadd.f32 %v6889_v8, %v6888_v57  ;;  %v6909_v57 = vsel %vm411_vm1, %v6862_v58, 0.0  ;;  %v6865_v8 = vmul.f32 %v12253_v12, %v12253_v12 }
 0x6e5   : > { %v6892_v37 = vadd.f32 %v6891_v47, %v6890_v50  ;;  %v6911_v50 = vsel %vm411_vm1, %v6863_v10, 0.0  ;;  %v6866_v47 = vmul.f32 %v12256_v1, %v12256_v1 }
 0x6e7   : > { %v6894_v5 = vadd.f32 %v6893_v34, %v6892_v37  ;;  %v6913_v37 = vsel %vm411_vm1, %v6864_v27, 0.0  ;;  %v6867_v34 = vmul.f32 %v12259_v55, %v12259_v55 }
 0x6e9   : > { %v6896_v28 = vadd.f32 %v6895_v26, %v6894_v5  ;;  %v6915_v5 = vsel %vm411_vm1, %v6865_v8, 0.0  ;;  %v6868_v26 = vmul.f32 %v12261_v62, %v12261_v62 }
 0x6eb   : > { %v6898_v19 = vadd.f32 %v6897_v24, %v6896_v28  ;;  %v6917_v28 = vsel %vm411_vm1, %v6866_v47, 0.0  ;;  %v6869_v24 = vmul.f32 %v12263_v63, %v12263_v63 }
 0x6ed   : > { %v6900_v36 = vadd.f32 %v6899_v46, %v6898_v19  ;;  %v6919_v19 = vsel %vm411_vm1, %v6867_v34, 0.0  ;;  %v6870_v46 = vmul.f32 %v12265_v3, %v12265_v3 }
 0x6ef   : > { %v6902_v51 = vadd.f32 %v6901_v44, %v6900_v36  ;;  %v6921_v36 = vsel %vm411_vm1, %v6868_v26, 0.0  ;;  %v6871_v44 = vmul.f32 %v12267_v54, %v12267_v54 }
 0x6f1   : > { %v6904_v9 = vadd.f32 %v6903_v41, %v6902_v51  ;;  %v6923_v51 = vsel %vm411_vm1, %v6869_v24, 0.0  ;;  %v6872_v41 = vmul.f32 %v12269_v43, %v12269_v43 }
 0x6f3   : > { %v6906_v14 = vadd.f32 %v6905_v56, %v6904_v9  ;;  %v6925_v9 = vsel %vm411_vm1, %v6870_v46, 0.0  ;;  %v6873_v56 = vmul.f32 %v12271_v33, %v12271_v33 }
 0x6f5   : > { %v6908_v35 = vadd.f32 %v6907_v17, %v6906_v14  ;;  %v6927_v14 = vsel %vm411_vm1, %v6871_v44, 0.0  ;;  %v6874_v17 = vmul.f32 %v12273_v13, %v12273_v13 }
 0x6f7   : > { %v6910_v45 = vadd.f32 %v6909_v57, %v6908_v35  ;;  %v6929_v35 = vsel %vm411_vm1, %v6872_v41, 0.0  ;;  %v6875_v57 = vmul.f32 %v12275_v21, %v12275_v21 }
 0x6f9   : > { %v6912_v30 = vadd.f32 %v6911_v50, %v6910_v45  ;;  %v6931_v45 = vsel %vm411_vm1, %v6873_v56, 0.0  ;;  %v6876_v50 = vmul.f32 %v12277_v11, %v12277_v11 }
 0x6fb   : > { %v6914_v61 = vadd.f32 %v6913_v37, %v6912_v30  ;;  %v6933_v30 = vsel %vm411_vm1, %v6874_v17, 0.0  ;;  %v6877_v37 = vmul.f32 %v12279_v40, %v12279_v40 }
 0x6fd   : > { %v6916_v59 = vadd.f32 %v6915_v5, %v6914_v61  ;;  %v6935_v61 = vsel %vm411_vm1, %v6875_v57, 0.0  ;;  %v6937_v5 = vsel %vm411_vm1, %v6876_v50, 0.0  ;;  %v6939_v26 = vsel %vm411_vm1, %v6877_v37, 0.0 }
 0x6ff   : > { %v6918_v53 = vadd.f32 %v6917_v28, %v6916_v59 }
 0x701   : > { %v6920_v15 = vadd.f32 %v6919_v19, %v6918_v53 }
 0x703   : > { %v6922_v60 = vadd.f32 %v6921_v36, %v6920_v15 }
 0x705   : > { %v6924_v31 = vadd.f32 %v6923_v51, %v6922_v60 }
 0x707   : > { %v6926_v58 = vadd.f32 %v6925_v9, %v6924_v31 }
 0x709   : > { %v6928_v10 = vadd.f32 %v6927_v14, %v6926_v58 }
 0x70b   : > { %v6930_v27 = vadd.f32 %v6929_v35, %v6928_v10 }
 0x70d   : > { %v6932_v8 = vadd.f32 %v6931_v45, %v6930_v27 }
 0x70f   : > { %v6934_v47 = vadd.f32 %v6933_v30, %v6932_v8 }
 0x711   : > { %v6936_v34 = vadd.f32 %v6935_v61, %v6934_v47 }
 0x713   : > { %v6938_v59 = vadd.f32 %v6937_v5, %v6936_v34 }
 0x715   : > { %v6940_v28 = vadd.f32 %v6939_v26, %v6938_v59 }
 0x717   : > { %v6941_v53 = vrot.slane %v6940_v28, 4 }
 0x719   : > { %v6942_v24 = vadd.f32 %v6941_v53, %v6940_v28 }
 0x71b   : > { %v6943_v19 = vrot.slane %v6942_v24, 2 }
 0x71d   : > { %v6944_v15 = vadd.f32 %v6943_v19, %v6942_v24 }
 0x71f   : > { %v6945_v46 = vrot.slane %v6944_v15, 1 }
 0x721   : > { %v6946_v36 = vadd.f32 %v6945_v46, %v6944_v15 }
 0x723   : > { %v6947_v60 = vmul.f32 0.00390625, %v6946_v36 }
 0x725   : > { %v6948_v44 = vadd.f32 1e-05, %v6947_v60 }
 0x727   : > { %9724 = vrsqrt.f32 %v6948_v44 }
 0x731   : > { %v9725_v51 = vpop.eup %9724 }
 0x732   : > { %v6966_v31 = vmul.f32 %v9725_v51, %v12244_v25  ;;  %v6950_v41 = vmul.f32 %v9725_v51, %v12196_v6  ;;  %v6967_v9 = vmul.f32 %v9725_v51, %v12247_v49  ;;  %v6951_v58 = vmul.f32 %v9725_v51, %v12199_v42 }
 0x733   : > { %v6968_v56 = vmul.f32 %v9725_v51, %v12250_v0  ;;  %v6952_v14 = vmul.f32 %v9725_v51, %v12202_v4  ;;  %v6969_v10 = vmul.f32 %v9725_v51, %v12253_v12  ;;  %v6953_v25 = vmul.f32 %v9725_v51, %v12205_v38 }
 0x734   : > { %7014 = vxpose.xlu1.b32.start [1/16] (narrow) %v6966_v31, 8  ;;  %6982 = vxpose.xlu0.b32.start [1/16] (narrow) %v6950_v41, 8  ;;  %v6970_v6 = vmul.f32 %v9725_v51, %v12256_v1  ;;  %v6954_v49 = vmul.f32 %v9725_v51, %v12208_v23  ;;  %v6971_v42 = vmul.f32 %v9725_v51, %v12259_v55 }
 0x735   : > { %v6955_v0 = vmul.f32 %v9725_v51, %v12211_v2  ;;  %v6972_v4 = vmul.f32 %v9725_v51, %v12261_v62  ;;  %v6956_v12 = vmul.f32 %v9725_v51, %v12214_v39  ;;  %v6973_v38 = vmul.f32 %v9725_v51, %v12263_v63 }
 0x736   : > { %v6957_v1 = vmul.f32 %v9725_v51, %v12217_v32  ;;  %v6974_v23 = vmul.f32 %v9725_v51, %v12265_v3  ;;  %v6958_v55 = vmul.f32 %v9725_v51, %v12220_v48  ;;  %v6975_v2 = vmul.f32 %v9725_v51, %v12267_v54 }
 0x737   : > { %v6959_v62 = vmul.f32 %v9725_v51, %v12223_v29  ;;  %v6976_v39 = vmul.f32 %v9725_v51, %v12269_v43  ;;  %v6960_v63 = vmul.f32 %v9725_v51, %v12226_v18  ;;  %v6977_v32 = vmul.f32 %v9725_v51, %v12271_v33 }
 0x738   : > { %7015 = vxpose.xlu1.b32.cont [2/16] (narrow) %v6967_v9, 8  ;;  %6983 = vxpose.xlu0.b32.cont [2/16] (narrow) %v6951_v58, 8  ;;  %v6961_v3 = vmul.f32 %v9725_v51, %v12229_v22  ;;  %v6978_v48 = vmul.f32 %v9725_v51, %v12273_v13  ;;  %v6962_v54 = vmul.f32 %v9725_v51, %v12232_v7 }
 0x739   : > { %v6979_v29 = vmul.f32 %v9725_v51, %v12275_v21  ;;  %v6963_v43 = vmul.f32 %v9725_v51, %v12235_v16  ;;  %v6980_v18 = vmul.f32 %v9725_v51, %v12277_v11  ;;  %v6964_v33 = vmul.f32 %v9725_v51, %v12238_v20 }
 0x73a   : > { %v6981_v22 = vmul.f32 %v9725_v51, %v12279_v40  ;;  %v6965_v13 = vmul.f32 %v9725_v51, %v12241_v52 }
 0x73c   : > { %7016 = vxpose.xlu1.b32.cont [3/16] (narrow) %v6968_v56, 8  ;;  %6984 = vxpose.xlu0.b32.cont [3/16] (narrow) %v6952_v14, 8 }
 0x740   : > { %7017 = vxpose.xlu1.b32.cont [4/16] (narrow) %v6969_v10, 8  ;;  %6985 = vxpose.xlu0.b32.cont [4/16] (narrow) %v6953_v25, 8 }
 0x744   : > { %7018 = vxpose.xlu1.b32.cont [5/16] (narrow) %v6970_v6, 8  ;;  %6986 = vxpose.xlu0.b32.cont [5/16] (narrow) %v6954_v49, 8 }
 0x748   : > { %7019 = vxpose.xlu1.b32.cont [6/16] (narrow) %v6971_v42, 8  ;;  %6987 = vxpose.xlu0.b32.cont [6/16] (narrow) %v6955_v0, 8 }
 0x74c   : > { %7020 = vxpose.xlu1.b32.cont [7/16] (narrow) %v6972_v4, 8  ;;  %6988 = vxpose.xlu0.b32.cont [7/16] (narrow) %v6956_v12, 8 }
 0x750   : > { %7021 = vxpose.xlu1.b32.cont [8/16] (narrow) %v6973_v38, 8  ;;  %6989 = vxpose.xlu0.b32.cont [8/16] (narrow) %v6957_v1, 8 }
 0x754   : > { %7022 = vxpose.xlu1.b32.cont [9/16] (narrow) %v6974_v23, 8  ;;  %6990 = vxpose.xlu0.b32.cont [9/16] (narrow) %v6958_v55, 8 }
 0x758   : > { %7023 = vxpose.xlu1.b32.cont [10/16] (narrow) %v6975_v2, 8  ;;  %6991 = vxpose.xlu0.b32.cont [10/16] (narrow) %v6959_v62, 8 }
 0x75c   : > { %7024 = vxpose.xlu1.b32.cont [11/16] (narrow) %v6976_v39, 8  ;;  %6992 = vxpose.xlu0.b32.cont [11/16] (narrow) %v6960_v63, 8 }
 0x760   : > { %7025 = vxpose.xlu1.b32.cont [12/16] (narrow) %v6977_v32, 8  ;;  %6993 = vxpose.xlu0.b32.cont [12/16] (narrow) %v6961_v3, 8 }
 0x764   : > { %7026 = vxpose.xlu1.b32.cont [13/16] (narrow) %v6978_v48, 8  ;;  %6994 = vxpose.xlu0.b32.cont [13/16] (narrow) %v6962_v54, 8 }
 0x768   : > { %7027 = vxpose.xlu1.b32.cont [14/16] (narrow) %v6979_v29, 8  ;;  %6995 = vxpose.xlu0.b32.cont [14/16] (narrow) %v6963_v43, 8 }
 0x76c   : > { %7028 = vxpose.xlu1.b32.cont [15/16] (narrow) %v6980_v18, 8  ;;  %6996 = vxpose.xlu0.b32.cont [15/16] (narrow) %v6964_v33, 8 }
 0x770   : > { %7029 = vxpose.xlu1.b32.end [16/16] (narrow) %v6981_v22, 8  ;;  %6997 = vxpose.xlu0.b32.end [16/16] (narrow) %v6965_v13, 8 }
 0x7b4   : > { %v7030_v7 = vpop.trf.xlu1  ;;  %v6998_v16 = vpop.trf.xlu0 }
 0x7b5   : > { %7047 = vst [vmem:[%s170_s5 + $0x8] sm:$0xff] %v7030_v7  ;;  %7046 = vst [vmem:[%s170_s5] sm:$0xff] %v6998_v16 }
 0x7b6 PF: > { %s13_s12 = sadd.s32 1, %s9732_s12  }
 0x7b7   : > { %p10_p4 = scmp.ge.s32.totalorder %s13_s12, 4  }
 0x7b9   :  { %12 = sbr.rel (!%p10_p4) target bundleno = 1 (0x1), region = 80 }

</bundles_post_ra>
